<compile_context>
chip_gen: v7x
topology: tpu7x:2x2x1
jax: 0.10.0
libtpu: 0.0.40
codegen_flags: <defaults>
</compile_context>

<pallas_src>
import functools

import jax
import jax.numpy as jnp
from jax import lax
from jax.experimental import pallas as pl
from jax.experimental.pallas import tpu as pltpu

LN_EPS = 1e-5  # PyTorch nn.LayerNorm default
NEG_INF = -1e9


# --------------------------------------------------------------------------
# Single fused kernel: the whole TransformerBlock forward pass.
# --------------------------------------------------------------------------
def fused_block_kernel(ems_ref, buf_ref,
                       mask_ee_ref, mask_bb_ref, mask_eb_ref, mask_be_ref,
                       a_wqkv_ref, a_bqkv_ref, a_wo_ref, a_bo_ref,
                       a_g_ref, a_b_ref,
                       m_w1_ref, m_b1_ref, m_w2_ref, m_b2_ref,
                       m_g_ref, m_b_ref,
                       ems_out_ref, buf_out_ref,
                       *, n_head, d_model):
    D = d_model
    dh = D // n_head

    def layernorm(x, gamma, beta):
        mean = jnp.mean(x, axis=-1, keepdims=True)
        cen = x - mean
        var = jnp.mean(cen * cen, axis=-1, keepdims=True)
        return cen * lax.rsqrt(var + LN_EPS) * gamma + beta

    def attn_addnorm(x_q, x_kv, mask, idx, self_attn):
        """Multi-head attention + residual + LayerNorm.

        x_q:  (Nq, D) rows = batch-folded queries
        x_kv: (Nk, D) rows = batch-folded keys/values
        mask: (Nq, Nk) additive mask (block-diagonal batch mask + key padding)
        idx:  which attention stage's stacked parameters to use
        """
        wqkv = a_wqkv_ref[idx]          # (D, 3D); 1/sqrt(dh) pre-folded into Q cols
        bqkv = a_bqkv_ref[idx]          # (1, 3D)
        if self_attn:
            # one fused QKV GEMM
            qkv = jnp.dot(x_q, wqkv, preferred_element_type=jnp.float32) + bqkv
            q, k, v = qkv[:, :D], qkv[:, D:2 * D], qkv[:, 2 * D:]
        else:
            q = jnp.dot(x_q, wqkv[:, :D],
                        preferred_element_type=jnp.float32) + bqkv[:, :D]
            kv = jnp.dot(x_kv, wqkv[:, D:],
                         preferred_element_type=jnp.float32) + bqkv[:, D:]
            k, v = kv[:, :D], kv[:, D:]

        wo = a_wo_ref[idx]              # (D, D)
        out = None
        for h in range(n_head):         # static unroll (n_head is small)
            sl = slice(h * dh, (h + 1) * dh)
            qh, kh, vh = q[:, sl], k[:, sl], v[:, sl]
            # q @ k^T without an explicit transpose (contract last dims)
            s = lax.dot_general(qh, kh, (((1,), (1,)), ((), ())),
                                preferred_element_type=jnp.float32)
            s = s + mask
            s = s - jnp.max(s, axis=-1, keepdims=True)
            p = jnp.exp(s)
            p = p * pl.reciprocal(jnp.sum(p, axis=-1, keepdims=True), approx=True)
            ctx = jnp.dot(p, vh, preferred_element_type=jnp.float32)   # (Nq, dh)
            # accumulate this head's slice of the output projection
            # (replaces a lane-axis concatenate)
            contrib = jnp.dot(ctx, wo[sl, :], preferred_element_type=jnp.float32)
            out = contrib if out is None else out + contrib
        out = out + a_bo_ref[idx]
        return layernorm(x_q + out, a_g_ref[idx], a_b_ref[idx])

    def mlp_addnorm(x, idx):
        h = jnp.dot(x, m_w1_ref[idx], preferred_element_type=jnp.float32) + m_b1_ref[idx]
        h = jnp.maximum(h, 0.0)
        y = jnp.dot(h, m_w2_ref[idx], preferred_element_type=jnp.float32) + m_b2_ref[idx]
        return layernorm(x + y, m_g_ref[idx], m_b_ref[idx])

    ems = ems_ref[...]                  # (B*S_ems, D), VMEM-resident for all 8 stages
    buf = buf_ref[...]                  # (B*S_buf, D)

    # 1+2: EMS self-attention, Add & Norm
    ems = attn_addnorm(ems, ems, mask_ee_ref[...], 0, True)
    # 3+4: EMS MLP, Add & Norm
    ems = mlp_addnorm(ems, 0)
    #      Buffer self-attention, Add & Norm
    buf = attn_addnorm(buf, buf, mask_bb_ref[...], 1, True)
    #      Buffer MLP, Add & Norm
    buf = mlp_addnorm(buf, 1)
    # 5+6: cross-attention EMS <- buffer, Add & Norm
    ems = attn_addnorm(ems, buf, mask_eb_ref[...], 2, False)
    #      cross-attention buffer <- (updated) EMS, Add & Norm
    buf = attn_addnorm(buf, ems, mask_be_ref[...], 3, False)
    # 7+8: final MLPs, Add & Norm
    ems = mlp_addnorm(ems, 2)
    buf = mlp_addnorm(buf, 3)

    ems_out_ref[...] = ems
    buf_out_ref[...] = buf


# --------------------------------------------------------------------------
# Host wrapper: layout plumbing + additive masks + the single pallas_call.
# --------------------------------------------------------------------------
def transformer_block_forward(ems_sbd, buf_sbd, ems_mask, params, n_head):
    """ems_sbd: [max_ems, B, D], buf_sbd: [buffer_size, B, D],
    ems_mask: [B, max_ems] bool (True = ignore that EMS slot) or None."""
    S_ems, B, D = ems_sbd.shape
    S_buf = buf_sbd.shape[0]

    # [S, B, D] -> batch-first -> fold batch into rows: (B*S, D)
    ems = jnp.transpose(ems_sbd, (1, 0, 2)).astype(jnp.float32).reshape(B * S_ems, D)
    buf = jnp.transpose(buf_sbd, (1, 0, 2)).astype(jnp.float32).reshape(B * S_buf, D)

    # Block-diagonal additive masks keep batches separated after row-folding.
    def block_mask(sq, sk):
        qb = jnp.repeat(jnp.arange(B), sq)
        kb = jnp.repeat(jnp.arange(B), sk)
        return jnp.where(qb[:, None] == kb[None, :], 0.0, NEG_INF).astype(jnp.float32)

    mask_ee = block_mask(S_ems, S_ems)
    if ems_mask is not None:
        kp = jnp.where(ems_mask, NEG_INF, 0.0).astype(jnp.float32).reshape(B * S_ems)
        mask_ee = mask_ee + kp[None, :]
    mask_bb = block_mask(S_buf, S_buf)
    mask_eb = block_mask(S_ems, S_buf)   # ems queries <- buf keys
    mask_be = block_mask(S_buf, S_ems)   # buf queries <- ems keys (no padding mask,
                                         # matching the PyTorch reference)

    kernel = functools.partial(fused_block_kernel, n_head=n_head, d_model=D)

    vmem_spec = lambda: pl.BlockSpec(memory_space=pltpu.MemorySpace.VMEM)
    n_in = 18

    ems_out, buf_out = pl.pallas_call(
        kernel,
        out_shape=(jax.ShapeDtypeStruct((B * S_ems, D), jnp.float32),
                   jax.ShapeDtypeStruct((B * S_buf, D), jnp.float32)),
        in_specs=[vmem_spec() for _ in range(n_in)],
        out_specs=(vmem_spec(), vmem_spec()),
    )(ems, buf, mask_ee, mask_bb, mask_eb, mask_be,
      params["a_wqkv"], params["a_bqkv"], params["a_wo"], params["a_bo"],
      params["a_gamma"], params["a_beta"],
      params["m_w1"], params["m_b1"], params["m_w2"], params["m_b2"],
      params["m_gamma"], params["m_beta"])

    ems_out = ems_out.reshape(B, S_ems, D).transpose(1, 0, 2)
    buf_out = buf_out.reshape(B, S_buf, D).transpose(1, 0, 2)
    return ems_out, buf_out


# --------------------------------------------------------------------------
# Pure-JAX reference (same packed params) for a correctness check.
# --------------------------------------------------------------------------
def reference_forward(ems_sbd, buf_sbd, ems_mask, params, n_head):
    S_e, B, D = ems_sbd.shape
    dh = D // n_head

    def layernorm(x, g, b):
        mean = jnp.mean(x, -1, keepdims=True)
        var = jnp.mean((x - mean) ** 2, -1, keepdims=True)
        return (x - mean) / jnp.sqrt(var + LN_EPS) * g + b

    def mha(xq, xkv, idx, key_pad=None):
        wqkv = params["a_wqkv"][idx]
        bqkv = params["a_bqkv"][idx][0]
        q = xq @ wqkv[:, :D] + bqkv[:D]              # scale already folded into Q
        k = xkv @ wqkv[:, D:2 * D] + bqkv[D:2 * D]
        v = xkv @ wqkv[:, 2 * D:] + bqkv[2 * D:]

        def split(t):
            return t.reshape(t.shape[0], t.shape[1], n_head, dh).transpose(0, 2, 1, 3)

        qh, kh, vh = split(q), split(k), split(v)
        s = jnp.einsum("bhqd,bhkd->bhqk", qh, kh)
        if key_pad is not None:
            s = s + jnp.where(key_pad, NEG_INF, 0.0)[:, None, None, :]
        p = jax.nn.softmax(s, axis=-1)
        ctx = jnp.einsum("bhqk,bhkd->bhqd", p, vh)
        ctx = ctx.transpose(0, 2, 1, 3).reshape(xq.shape[0], xq.shape[1], D)
        return ctx @ params["a_wo"][idx] + params["a_bo"][idx][0]

    def mlp(x, idx):
        h = jnp.maximum(x @ params["m_w1"][idx] + params["m_b1"][idx][0], 0.0)
        return h @ params["m_w2"][idx] + params["m_b2"][idx][0]

    ag, ab = params["a_gamma"], params["a_beta"]
    mg, mb = params["m_gamma"], params["m_beta"]

    ems = ems_sbd.transpose(1, 0, 2).astype(jnp.float32)   # (B, S, D)
    buf = buf_sbd.transpose(1, 0, 2).astype(jnp.float32)

    ems = layernorm(ems + mha(ems, ems, 0, ems_mask), ag[0][0], ab[0][0])
    ems = layernorm(ems + mlp(ems, 0), mg[0][0], mb[0][0])
    buf = layernorm(buf + mha(buf, buf, 1), ag[1][0], ab[1][0])
    buf = layernorm(buf + mlp(buf, 1), mg[1][0], mb[1][0])
    ems = layernorm(ems + mha(ems, buf, 2), ag[2][0], ab[2][0])
    buf = layernorm(buf + mha(buf, ems, 3), ag[3][0], ab[3][0])
    ems = layernorm(ems + mlp(ems, 2), mg[2][0], mb[2][0])
    buf = layernorm(buf + mlp(buf, 3), mg[3][0], mb[3][0])
    return ems.transpose(1, 0, 2), buf.transpose(1, 0, 2)


# --------------------------------------------------------------------------
# Parameter init (deterministic, synthetic), pre-packed for the fused kernel.
# Attention stage order: [self_ems, self_buf, cross_ems, cross_buf]
# MLP stage order:       [mlp_ems, mlp_buf, mlp_final_ems, mlp_final_buf]
# --------------------------------------------------------------------------
def init_params(key, d_model, n_head, d_ff):
    # TODO(synk): weights are synthetic and laid out for x @ W; porting real
    # PyTorch checkpoints requires transposing nn.Linear / nn.MultiheadAttention
    # (out_features, in_features) weights and splitting in_proj_weight.
    keys = iter(jax.random.split(key, 64))

    def mat(shape, scale=0.05):
        return jax.random.normal(next(keys), shape, jnp.float32) * scale

    dh = d_model // n_head
    qk_scale = 1.0 / (dh ** 0.5)

    a_wqkv, a_bqkv, a_wo, a_bo, a_g, a_b = [], [], [], [], [], []
    for _ in range(4):
        wq, wk, wv = (mat((d_model, d_model)) for _ in range(3))
        bq, bk, bv = (mat((d_model,)) for _ in range(3))
        # fold the 1/sqrt(d_head) attention scale into the Q projection
        a_wqkv.append(jnp.concatenate([wq * qk_scale, wk, wv], axis=1))      # (D, 3D)
        a_bqkv.append(jnp.concatenate([bq * qk_scale, bk, bv])[None, :])     # (1, 3D)
        a_wo.append(mat((d_model, d_model)))
        a_bo.append(mat((d_model,))[None, :])
        a_g.append(jnp.ones((1, d_model), jnp.float32))
        a_b.append(jnp.zeros((1, d_model), jnp.float32))

    m_w1, m_b1, m_w2, m_b2, m_g, m_b = [], [], [], [], [], []
    for _ in range(4):
        m_w1.append(mat((d_model, d_ff)))
        m_b1.append(mat((d_ff,))[None, :])
        m_w2.append(mat((d_ff, d_model)))
        m_b2.append(mat((d_model,))[None, :])
        m_g.append(jnp.ones((1, d_model), jnp.float32))
        m_b.append(jnp.zeros((1, d_model), jnp.float32))

    return {
        "a_wqkv": jnp.stack(a_wqkv), "a_bqkv": jnp.stack(a_bqkv),
        "a_wo": jnp.stack(a_wo), "a_bo": jnp.stack(a_bo),
        "a_gamma": jnp.stack(a_g), "a_beta": jnp.stack(a_b),
        "m_w1": jnp.stack(m_w1), "m_b1": jnp.stack(m_b1),
        "m_w2": jnp.stack(m_w2), "m_b2": jnp.stack(m_b2),
        "m_gamma": jnp.stack(m_g), "m_beta": jnp.stack(m_b),
    }


if __name__ == "__main__":
    d_model, n_head, d_feedforward = 32, 4, 64
    max_ems, buffer_size, batch = 8, 6, 2

    key = jax.random.PRNGKey(0)
    k_ems, k_buf, k_par = jax.random.split(key, 3)
    ems_in = jax.random.normal(k_ems, (max_ems, batch, d_model), jnp.float32)
    buf_in = jax.random.normal(k_buf, (buffer_size, batch, d_model), jnp.float32)
    # key_padding_mask: True = ignore that EMS slot (mask the last slot of batch 0)
    ems_mask = jnp.zeros((batch, max_ems), dtype=bool).at[0, -1].set(True)

    params = init_params(k_par, d_model, n_head, d_feedforward)

    fwd = jax.jit(lambda e, b, m: transformer_block_forward(e, b, m, params, n_head))
    out_ems, out_buf = fwd(ems_in, buf_in, ems_mask)
    jax.block_until_ready((out_ems, out_buf))

    assert out_ems.shape == (max_ems, batch, d_model)
    assert out_buf.shape == (buffer_size, batch, d_model)
    assert bool(jnp.all(jnp.isfinite(out_ems))) and bool(jnp.all(jnp.isfinite(out_buf)))

    # Correctness vs. a pure-JAX reference (tolerance covers the EUP approx recip).
    ref_ems, ref_buf = reference_forward(ems_in, buf_in, ems_mask, params, n_head)
    err = max(float(jnp.max(jnp.abs(out_ems - ref_ems))),
              float(jnp.max(jnp.abs(out_buf - ref_buf))))
    assert err < 5e-2, f"max abs error vs reference too large: {err}"

    print("KERNEL_OK")
</pallas_src>

<mosaic_0001>
module attributes {stable_mosaic.version = 11 : i64} {
  func.func @fused_block_kernel(%arg0: memref<16x32xf32, #tpu.memory_space<vmem>>, %arg1: memref<12x32xf32, #tpu.memory_space<vmem>>, %arg2: memref<16x16xf32, #tpu.memory_space<vmem>>, %arg3: memref<12x12xf32, #tpu.memory_space<vmem>>, %arg4: memref<16x12xf32, #tpu.memory_space<vmem>>, %arg5: memref<12x16xf32, #tpu.memory_space<vmem>>, %arg6: memref<4x32x96xf32, #tpu.memory_space<vmem>>, %arg7: memref<4x1x96xf32, #tpu.memory_space<vmem>>, %arg8: memref<4x32x32xf32, #tpu.memory_space<vmem>>, %arg9: memref<4x1x32xf32, #tpu.memory_space<vmem>>, %arg10: memref<4x1x32xf32, #tpu.memory_space<vmem>>, %arg11: memref<4x1x32xf32, #tpu.memory_space<vmem>>, %arg12: memref<4x32x64xf32, #tpu.memory_space<vmem>>, %arg13: memref<4x1x64xf32, #tpu.memory_space<vmem>>, %arg14: memref<4x64x32xf32, #tpu.memory_space<vmem>>, %arg15: memref<4x1x32xf32, #tpu.memory_space<vmem>>, %arg16: memref<4x1x32xf32, #tpu.memory_space<vmem>>, %arg17: memref<4x1x32xf32, #tpu.memory_space<vmem>>, %arg18: memref<16x32xf32, #tpu.memory_space<vmem>>, %arg19: memref<12x32xf32, #tpu.memory_space<vmem>>) attributes {dimension_semantics = [], scalar_prefetch = 0 : i64, scratch_operands = 0 : i64, tpu.core_type = #tpu.core_type<tc>} {
    %c0 = arith.constant 0 : index
    %c0_0 = arith.constant 0 : index
    %0 = vector.load %arg0[%c0, %c0_0] : memref<16x32xf32, #tpu.memory_space<vmem>>, vector<16x32xf32>
    %c0_1 = arith.constant 0 : index
    %c0_2 = arith.constant 0 : index
    %1 = vector.load %arg1[%c0_1, %c0_2] : memref<12x32xf32, #tpu.memory_space<vmem>>, vector<12x32xf32>
    %c0_3 = arith.constant 0 : index
    %c0_4 = arith.constant 0 : index
    %2 = vector.load %arg2[%c0_3, %c0_4] : memref<16x16xf32, #tpu.memory_space<vmem>>, vector<16x16xf32>
    %c0_5 = arith.constant 0 : index
    %c0_6 = arith.constant 0 : index
    %c0_7 = arith.constant 0 : index
    %3 = vector.load %arg6[%c0_5, %c0_6, %c0_7] : memref<4x32x96xf32, #tpu.memory_space<vmem>>, vector<1x32x96xf32>
    %4 = vector.shape_cast %3 : vector<1x32x96xf32> to vector<32x96xf32>
    %c0_8 = arith.constant 0 : index
    %c0_9 = arith.constant 0 : index
    %c0_10 = arith.constant 0 : index
    %5 = vector.load %arg7[%c0_8, %c0_9, %c0_10] : memref<4x1x96xf32, #tpu.memory_space<vmem>>, vector<1x1x96xf32>
    %6 = vector.shape_cast %5 : vector<1x1x96xf32> to vector<1x96xf32>
    %cst = arith.constant dense<0.000000e+00> : vector<16x96xf32>
    %7 = tpu.matmul %0, %4, %cst {dimension_numbers = #tpu.dot_dimension_numbers<[1], [0], [0], [1], [0, 0, 1, 1], [], []>} : vector<16x32xf32>, vector<32x96xf32>, vector<16x96xf32> -> vector<16x96xf32>
    %8 = vector.broadcast %6 : vector<1x96xf32> to vector<16x96xf32>
    %9 = arith.addf %7, %8 : vector<16x96xf32>
    %10 = vector.extract_strided_slice %9 {offsets = [0, 0], sizes = [16, 32], strides = [1, 1]} : vector<16x96xf32> to vector<16x32xf32>
    %11 = vector.extract_strided_slice %9 {offsets = [0, 32], sizes = [16, 32], strides = [1, 1]} : vector<16x96xf32> to vector<16x32xf32>
    %12 = vector.extract_strided_slice %9 {offsets = [0, 64], sizes = [16, 32], strides = [1, 1]} : vector<16x96xf32> to vector<16x32xf32>
    %c0_11 = arith.constant 0 : index
    %c0_12 = arith.constant 0 : index
    %c0_13 = arith.constant 0 : index
    %13 = vector.load %arg8[%c0_11, %c0_12, %c0_13] : memref<4x32x32xf32, #tpu.memory_space<vmem>>, vector<1x32x32xf32>
    %14 = vector.shape_cast %13 : vector<1x32x32xf32> to vector<32x32xf32>
    %15 = vector.extract_strided_slice %10 {offsets = [0, 0], sizes = [16, 8], strides = [1, 1]} : vector<16x32xf32> to vector<16x8xf32>
    %16 = vector.extract_strided_slice %11 {offsets = [0, 0], sizes = [16, 8], strides = [1, 1]} : vector<16x32xf32> to vector<16x8xf32>
    %17 = vector.extract_strided_slice %12 {offsets = [0, 0], sizes = [16, 8], strides = [1, 1]} : vector<16x32xf32> to vector<16x8xf32>
    %cst_14 = arith.constant dense<0.000000e+00> : vector<16x16xf32>
    %18 = tpu.matmul %15, %16, %cst_14 {dimension_numbers = #tpu.dot_dimension_numbers<[1], [1], [0], [0], [0, 0, 1, 0], [], []>} : vector<16x8xf32>, vector<16x8xf32>, vector<16x16xf32> -> vector<16x16xf32>
    %19 = arith.addf %18, %2 : vector<16x16xf32>
    %cst_15 = arith.constant dense<0xFF800000> : vector<16xf32>
    %20 = vector.multi_reduction <maximumf>, %19, %cst_15 [1] : vector<16x16xf32> to vector<16xf32>
    %21 = vector.shape_cast %20 : vector<16xf32> to vector<16x1xf32>
    %22 = vector.broadcast %21 : vector<16x1xf32> to vector<16x16xf32>
    %23 = arith.subf %19, %22 : vector<16x16xf32>
    %24 = math.exp %23 : vector<16x16xf32>
    %cst_16 = arith.constant dense<0.000000e+00> : vector<16xf32>
    %25 = vector.multi_reduction <add>, %24, %cst_16 [1] : vector<16x16xf32> to vector<16xf32>
    %26 = vector.shape_cast %25 : vector<16xf32> to vector<16x1xf32>
    %27 = tpu.reciprocal %26 {approx = true} : vector<16x1xf32> -> vector<16x1xf32>
    %28 = vector.broadcast %27 : vector<16x1xf32> to vector<16x16xf32>
    %29 = arith.mulf %24, %28 : vector<16x16xf32>
    %cst_17 = arith.constant dense<0.000000e+00> : vector<16x8xf32>
    %30 = tpu.matmul %29, %17, %cst_17 {dimension_numbers = #tpu.dot_dimension_numbers<[1], [0], [0], [1], [0, 0, 1, 1], [], []>} : vector<16x16xf32>, vector<16x8xf32>, vector<16x8xf32> -> vector<16x8xf32>
    %31 = vector.extract_strided_slice %14 {offsets = [0, 0], sizes = [8, 32], strides = [1, 1]} : vector<32x32xf32> to vector<8x32xf32>
    %cst_18 = arith.constant dense<0.000000e+00> : vector<16x32xf32>
    %32 = tpu.matmul %30, %31, %cst_18 {dimension_numbers = #tpu.dot_dimension_numbers<[1], [0], [0], [1], [0, 0, 1, 1], [], []>} : vector<16x8xf32>, vector<8x32xf32>, vector<16x32xf32> -> vector<16x32xf32>
    %33 = vector.extract_strided_slice %10 {offsets = [0, 8], sizes = [16, 8], strides = [1, 1]} : vector<16x32xf32> to vector<16x8xf32>
    %34 = vector.extract_strided_slice %11 {offsets = [0, 8], sizes = [16, 8], strides = [1, 1]} : vector<16x32xf32> to vector<16x8xf32>
    %35 = vector.extract_strided_slice %12 {offsets = [0, 8], sizes = [16, 8], strides = [1, 1]} : vector<16x32xf32> to vector<16x8xf32>
    %cst_19 = arith.constant dense<0.000000e+00> : vector<16x16xf32>
    %36 = tpu.matmul %33, %34, %cst_19 {dimension_numbers = #tpu.dot_dimension_numbers<[1], [1], [0], [0], [0, 0, 1, 0], [], []>} : vector<16x8xf32>, vector<16x8xf32>, vector<16x16xf32> -> vector<16x16xf32>
    %37 = arith.addf %36, %2 : vector<16x16xf32>
    %cst_20 = arith.constant dense<0xFF800000> : vector<16xf32>
    %38 = vector.multi_reduction <maximumf>, %37, %cst_20 [1] : vector<16x16xf32> to vector<16xf32>
    %39 = vector.shape_cast %38 : vector<16xf32> to vector<16x1xf32>
    %40 = vector.broadcast %39 : vector<16x1xf32> to vector<16x16xf32>
    %41 = arith.subf %37, %40 : vector<16x16xf32>
    %42 = math.exp %41 : vector<16x16xf32>
    %cst_21 = arith.constant dense<0.000000e+00> : vector<16xf32>
    %43 = vector.multi_reduction <add>, %42, %cst_21 [1] : vector<16x16xf32> to vector<16xf32>
    %44 = vector.shape_cast %43 : vector<16xf32> to vector<16x1xf32>
    %45 = tpu.reciprocal %44 {approx = true} : vector<16x1xf32> -> vector<16x1xf32>
    %46 = vector.broadcast %45 : vector<16x1xf32> to vector<16x16xf32>
    %47 = arith.mulf %42, %46 : vector<16x16xf32>
    %cst_22 = arith.constant dense<0.000000e+00> : vector<16x8xf32>
    %48 = tpu.matmul %47, %35, %cst_22 {dimension_numbers = #tpu.dot_dimension_numbers<[1], [0], [0], [1], [0, 0, 1, 1], [], []>} : vector<16x16xf32>, vector<16x8xf32>, vector<16x8xf32> -> vector<16x8xf32>
    %49 = vector.extract_strided_slice %14 {offsets = [8, 0], sizes = [8, 32], strides = [1, 1]} : vector<32x32xf32> to vector<8x32xf32>
    %cst_23 = arith.constant dense<0.000000e+00> : vector<16x32xf32>
    %50 = tpu.matmul %48, %49, %cst_23 {dimension_numbers = #tpu.dot_dimension_numbers<[1], [0], [0], [1], [0, 0, 1, 1], [], []>} : vector<16x8xf32>, vector<8x32xf32>, vector<16x32xf32> -> vector<16x32xf32>
    %51 = arith.addf %32, %50 : vector<16x32xf32>
    %52 = vector.extract_strided_slice %10 {offsets = [0, 16], sizes = [16, 8], strides = [1, 1]} : vector<16x32xf32> to vector<16x8xf32>
    %53 = vector.extract_strided_slice %11 {offsets = [0, 16], sizes = [16, 8], strides = [1, 1]} : vector<16x32xf32> to vector<16x8xf32>
    %54 = vector.extract_strided_slice %12 {offsets = [0, 16], sizes = [16, 8], strides = [1, 1]} : vector<16x32xf32> to vector<16x8xf32>
    %cst_24 = arith.constant dense<0.000000e+00> : vector<16x16xf32>
    %55 = tpu.matmul %52, %53, %cst_24 {dimension_numbers = #tpu.dot_dimension_numbers<[1], [1], [0], [0], [0, 0, 1, 0], [], []>} : vector<16x8xf32>, vector<16x8xf32>, vector<16x16xf32> -> vector<16x16xf32>
    %56 = arith.addf %55, %2 : vector<16x16xf32>
    %cst_25 = arith.constant dense<0xFF800000> : vector<16xf32>
    %57 = vector.multi_reduction <maximumf>, %56, %cst_25 [1] : vector<16x16xf32> to vector<16xf32>
    %58 = vector.shape_cast %57 : vector<16xf32> to vector<16x1xf32>
    %59 = vector.broadcast %58 : vector<16x1xf32> to vector<16x16xf32>
    %60 = arith.subf %56, %59 : vector<16x16xf32>
    %61 = math.exp %60 : vector<16x16xf32>
    %cst_26 = arith.constant dense<0.000000e+00> : vector<16xf32>
    %62 = vector.multi_reduction <add>, %61, %cst_26 [1] : vector<16x16xf32> to vector<16xf32>
    %63 = vector.shape_cast %62 : vector<16xf32> to vector<16x1xf32>
    %64 = tpu.reciprocal %63 {approx = true} : vector<16x1xf32> -> vector<16x1xf32>
    %65 = vector.broadcast %64 : vector<16x1xf32> to vector<16x16xf32>
    %66 = arith.mulf %61, %65 : vector<16x16xf32>
    %cst_27 = arith.constant dense<0.000000e+00> : vector<16x8xf32>
    %67 = tpu.matmul %66, %54, %cst_27 {dimension_numbers = #tpu.dot_dimension_numbers<[1], [0], [0], [1], [0, 0, 1, 1], [], []>} : vector<16x16xf32>, vector<16x8xf32>, vector<16x8xf32> -> vector<16x8xf32>
    %68 = vector.extract_strided_slice %14 {offsets = [16, 0], sizes = [8, 32], strides = [1, 1]} : vector<32x32xf32> to vector<8x32xf32>
    %cst_28 = arith.constant dense<0.000000e+00> : vector<16x32xf32>
    %69 = tpu.matmul %67, %68, %cst_28 {dimension_numbers = #tpu.dot_dimension_numbers<[1], [0], [0], [1], [0, 0, 1, 1], [], []>} : vector<16x8xf32>, vector<8x32xf32>, vector<16x32xf32> -> vector<16x32xf32>
    %70 = arith.addf %51, %69 : vector<16x32xf32>
    %71 = vector.extract_strided_slice %10 {offsets = [0, 24], sizes = [16, 8], strides = [1, 1]} : vector<16x32xf32> to vector<16x8xf32>
    %72 = vector.extract_strided_slice %11 {offsets = [0, 24], sizes = [16, 8], strides = [1, 1]} : vector<16x32xf32> to vector<16x8xf32>
    %73 = vector.extract_strided_slice %12 {offsets = [0, 24], sizes = [16, 8], strides = [1, 1]} : vector<16x32xf32> to vector<16x8xf32>
    %cst_29 = arith.constant dense<0.000000e+00> : vector<16x16xf32>
    %74 = tpu.matmul %71, %72, %cst_29 {dimension_numbers = #tpu.dot_dimension_numbers<[1], [1], [0], [0], [0, 0, 1, 0], [], []>} : vector<16x8xf32>, vector<16x8xf32>, vector<16x16xf32> -> vector<16x16xf32>
    %75 = arith.addf %74, %2 : vector<16x16xf32>
    %cst_30 = arith.constant dense<0xFF800000> : vector<16xf32>
    %76 = vector.multi_reduction <maximumf>, %75, %cst_30 [1] : vector<16x16xf32> to vector<16xf32>
    %77 = vector.shape_cast %76 : vector<16xf32> to vector<16x1xf32>
    %78 = vector.broadcast %77 : vector<16x1xf32> to vector<16x16xf32>
    %79 = arith.subf %75, %78 : vector<16x16xf32>
    %80 = math.exp %79 : vector<16x16xf32>
    %cst_31 = arith.constant dense<0.000000e+00> : vector<16xf32>
    %81 = vector.multi_reduction <add>, %80, %cst_31 [1] : vector<16x16xf32> to vector<16xf32>
    %82 = vector.shape_cast %81 : vector<16xf32> to vector<16x1xf32>
    %83 = tpu.reciprocal %82 {approx = true} : vector<16x1xf32> -> vector<16x1xf32>
    %84 = vector.broadcast %83 : vector<16x1xf32> to vector<16x16xf32>
    %85 = arith.mulf %80, %84 : vector<16x16xf32>
    %cst_32 = arith.constant dense<0.000000e+00> : vector<16x8xf32>
    %86 = tpu.matmul %85, %73, %cst_32 {dimension_numbers = #tpu.dot_dimension_numbers<[1], [0], [0], [1], [0, 0, 1, 1], [], []>} : vector<16x16xf32>, vector<16x8xf32>, vector<16x8xf32> -> vector<16x8xf32>
    %87 = vector.extract_strided_slice %14 {offsets = [24, 0], sizes = [8, 32], strides = [1, 1]} : vector<32x32xf32> to vector<8x32xf32>
    %cst_33 = arith.constant dense<0.000000e+00> : vector<16x32xf32>
    %88 = tpu.matmul %86, %87, %cst_33 {dimension_numbers = #tpu.dot_dimension_numbers<[1], [0], [0], [1], [0, 0, 1, 1], [], []>} : vector<16x8xf32>, vector<8x32xf32>, vector<16x32xf32> -> vector<16x32xf32>
    %89 = arith.addf %70, %88 : vector<16x32xf32>
    %c0_34 = arith.constant 0 : index
    %c0_35 = arith.constant 0 : index
    %c0_36 = arith.constant 0 : index
    %90 = vector.load %arg9[%c0_34, %c0_35, %c0_36] : memref<4x1x32xf32, #tpu.memory_space<vmem>>, vector<1x1x32xf32>
    %91 = vector.shape_cast %90 : vector<1x1x32xf32> to vector<1x32xf32>
    %92 = vector.broadcast %91 : vector<1x32xf32> to vector<16x32xf32>
    %93 = arith.addf %89, %92 : vector<16x32xf32>
    %94 = arith.addf %0, %93 : vector<16x32xf32>
    %c0_37 = arith.constant 0 : index
    %c0_38 = arith.constant 0 : index
    %c0_39 = arith.constant 0 : index
    %95 = vector.load %arg10[%c0_37, %c0_38, %c0_39] : memref<4x1x32xf32, #tpu.memory_space<vmem>>, vector<1x1x32xf32>
    %96 = vector.shape_cast %95 : vector<1x1x32xf32> to vector<1x32xf32>
    %c0_40 = arith.constant 0 : index
    %c0_41 = arith.constant 0 : index
    %c0_42 = arith.constant 0 : index
    %97 = vector.load %arg11[%c0_40, %c0_41, %c0_42] : memref<4x1x32xf32, #tpu.memory_space<vmem>>, vector<1x1x32xf32>
    %98 = vector.shape_cast %97 : vector<1x1x32xf32> to vector<1x32xf32>
    %cst_43 = arith.constant dense<0.000000e+00> : vector<16xf32>
    %99 = vector.multi_reduction <add>, %94, %cst_43 [1] : vector<16x32xf32> to vector<16xf32>
    %100 = vector.shape_cast %99 : vector<16xf32> to vector<16x1xf32>
    %cst_44 = arith.constant 3.200000e+01 : f32
    %101 = vector.broadcast %cst_44 : f32 to vector<16x1xf32>
    %102 = arith.divf %100, %101 : vector<16x1xf32>
    %103 = vector.broadcast %102 : vector<16x1xf32> to vector<16x32xf32>
    %104 = arith.subf %94, %103 : vector<16x32xf32>
    %105 = arith.mulf %104, %104 : vector<16x32xf32>
    %cst_45 = arith.constant dense<0.000000e+00> : vector<16xf32>
    %106 = vector.multi_reduction <add>, %105, %cst_45 [1] : vector<16x32xf32> to vector<16xf32>
    %107 = vector.shape_cast %106 : vector<16xf32> to vector<16x1xf32>
    %cst_46 = arith.constant 3.200000e+01 : f32
    %108 = vector.broadcast %cst_46 : f32 to vector<16x1xf32>
    %109 = arith.divf %107, %108 : vector<16x1xf32>
    %cst_47 = arith.constant 9.99999974E-6 : f32
    %110 = vector.broadcast %cst_47 : f32 to vector<16x1xf32>
    %111 = arith.addf %109, %110 : vector<16x1xf32>
    %112 = math.rsqrt %111 : vector<16x1xf32>
    %113 = vector.broadcast %112 : vector<16x1xf32> to vector<16x32xf32>
    %114 = arith.mulf %104, %113 : vector<16x32xf32>
    %115 = vector.broadcast %96 : vector<1x32xf32> to vector<16x32xf32>
    %116 = arith.mulf %114, %115 : vector<16x32xf32>
    %117 = vector.broadcast %98 : vector<1x32xf32> to vector<16x32xf32>
    %118 = arith.addf %116, %117 : vector<16x32xf32>
    %c0_48 = arith.constant 0 : index
    %c0_49 = arith.constant 0 : index
    %c0_50 = arith.constant 0 : index
    %119 = vector.load %arg12[%c0_48, %c0_49, %c0_50] : memref<4x32x64xf32, #tpu.memory_space<vmem>>, vector<1x32x64xf32>
    %120 = vector.shape_cast %119 : vector<1x32x64xf32> to vector<32x64xf32>
    %cst_51 = arith.constant dense<0.000000e+00> : vector<16x64xf32>
    %121 = tpu.matmul %118, %120, %cst_51 {dimension_numbers = #tpu.dot_dimension_numbers<[1], [0], [0], [1], [0, 0, 1, 1], [], []>} : vector<16x32xf32>, vector<32x64xf32>, vector<16x64xf32> -> vector<16x64xf32>
    %c0_52 = arith.constant 0 : index
    %c0_53 = arith.constant 0 : index
    %c0_54 = arith.constant 0 : index
    %122 = vector.load %arg13[%c0_52, %c0_53, %c0_54] : memref<4x1x64xf32, #tpu.memory_space<vmem>>, vector<1x1x64xf32>
    %123 = vector.shape_cast %122 : vector<1x1x64xf32> to vector<1x64xf32>
    %124 = vector.broadcast %123 : vector<1x64xf32> to vector<16x64xf32>
    %125 = arith.addf %121, %124 : vector<16x64xf32>
    %cst_55 = arith.constant 0.000000e+00 : f32
    %126 = vector.broadcast %cst_55 : f32 to vector<16x64xf32>
    %127 = arith.maximumf %125, %126 : vector<16x64xf32>
    %c0_56 = arith.constant 0 : index
    %c0_57 = arith.constant 0 : index
    %c0_58 = arith.constant 0 : index
    %128 = vector.load %arg14[%c0_56, %c0_57, %c0_58] : memref<4x64x32xf32, #tpu.memory_space<vmem>>, vector<1x64x32xf32>
    %129 = vector.shape_cast %128 : vector<1x64x32xf32> to vector<64x32xf32>
    %cst_59 = arith.constant dense<0.000000e+00> : vector<16x32xf32>
    %130 = tpu.matmul %127, %129, %cst_59 {dimension_numbers = #tpu.dot_dimension_numbers<[1], [0], [0], [1], [0, 0, 1, 1], [], []>} : vector<16x64xf32>, vector<64x32xf32>, vector<16x32xf32> -> vector<16x32xf32>
    %c0_60 = arith.constant 0 : index
    %c0_61 = arith.constant 0 : index
    %c0_62 = arith.constant 0 : index
    %131 = vector.load %arg15[%c0_60, %c0_61, %c0_62] : memref<4x1x32xf32, #tpu.memory_space<vmem>>, vector<1x1x32xf32>
    %132 = vector.shape_cast %131 : vector<1x1x32xf32> to vector<1x32xf32>
    %133 = vector.broadcast %132 : vector<1x32xf32> to vector<16x32xf32>
    %134 = arith.addf %130, %133 : vector<16x32xf32>
    %135 = arith.addf %118, %134 : vector<16x32xf32>
    %c0_63 = arith.constant 0 : index
    %c0_64 = arith.constant 0 : index
    %c0_65 = arith.constant 0 : index
    %136 = vector.load %arg16[%c0_63, %c0_64, %c0_65] : memref<4x1x32xf32, #tpu.memory_space<vmem>>, vector<1x1x32xf32>
    %137 = vector.shape_cast %136 : vector<1x1x32xf32> to vector<1x32xf32>
    %c0_66 = arith.constant 0 : index
    %c0_67 = arith.constant 0 : index
    %c0_68 = arith.constant 0 : index
    %138 = vector.load %arg17[%c0_66, %c0_67, %c0_68] : memref<4x1x32xf32, #tpu.memory_space<vmem>>, vector<1x1x32xf32>
    %139 = vector.shape_cast %138 : vector<1x1x32xf32> to vector<1x32xf32>
    %cst_69 = arith.constant dense<0.000000e+00> : vector<16xf32>
    %140 = vector.multi_reduction <add>, %135, %cst_69 [1] : vector<16x32xf32> to vector<16xf32>
    %141 = vector.shape_cast %140 : vector<16xf32> to vector<16x1xf32>
    %cst_70 = arith.constant 3.200000e+01 : f32
    %142 = vector.broadcast %cst_70 : f32 to vector<16x1xf32>
    %143 = arith.divf %141, %142 : vector<16x1xf32>
    %144 = vector.broadcast %143 : vector<16x1xf32> to vector<16x32xf32>
    %145 = arith.subf %135, %144 : vector<16x32xf32>
    %146 = arith.mulf %145, %145 : vector<16x32xf32>
    %cst_71 = arith.constant dense<0.000000e+00> : vector<16xf32>
    %147 = vector.multi_reduction <add>, %146, %cst_71 [1] : vector<16x32xf32> to vector<16xf32>
    %148 = vector.shape_cast %147 : vector<16xf32> to vector<16x1xf32>
    %cst_72 = arith.constant 3.200000e+01 : f32
    %149 = vector.broadcast %cst_72 : f32 to vector<16x1xf32>
    %150 = arith.divf %148, %149 : vector<16x1xf32>
    %cst_73 = arith.constant 9.99999974E-6 : f32
    %151 = vector.broadcast %cst_73 : f32 to vector<16x1xf32>
    %152 = arith.addf %150, %151 : vector<16x1xf32>
    %153 = math.rsqrt %152 : vector<16x1xf32>
    %154 = vector.broadcast %153 : vector<16x1xf32> to vector<16x32xf32>
    %155 = arith.mulf %145, %154 : vector<16x32xf32>
    %156 = vector.broadcast %137 : vector<1x32xf32> to vector<16x32xf32>
    %157 = arith.mulf %155, %156 : vector<16x32xf32>
    %158 = vector.broadcast %139 : vector<1x32xf32> to vector<16x32xf32>
    %159 = arith.addf %157, %158 : vector<16x32xf32>
    %c0_74 = arith.constant 0 : index
    %c0_75 = arith.constant 0 : index
    %160 = vector.load %arg3[%c0_74, %c0_75] : memref<12x12xf32, #tpu.memory_space<vmem>>, vector<12x12xf32>
    %c1 = arith.constant 1 : index
    %c0_76 = arith.constant 0 : index
    %c0_77 = arith.constant 0 : index
    %161 = vector.load %arg6[%c1, %c0_76, %c0_77] : memref<4x32x96xf32, #tpu.memory_space<vmem>>, vector<1x32x96xf32>
    %162 = vector.shape_cast %161 : vector<1x32x96xf32> to vector<32x96xf32>
    %c1_78 = arith.constant 1 : index
    %c0_79 = arith.constant 0 : index
    %c0_80 = arith.constant 0 : index
    %163 = vector.load %arg7[%c1_78, %c0_79, %c0_80] : memref<4x1x96xf32, #tpu.memory_space<vmem>>, vector<1x1x96xf32>
    %164 = vector.shape_cast %163 : vector<1x1x96xf32> to vector<1x96xf32>
    %cst_81 = arith.constant dense<0.000000e+00> : vector<12x96xf32>
    %165 = tpu.matmul %1, %162, %cst_81 {dimension_numbers = #tpu.dot_dimension_numbers<[1], [0], [0], [1], [0, 0, 1, 1], [], []>} : vector<12x32xf32>, vector<32x96xf32>, vector<12x96xf32> -> vector<12x96xf32>
    %166 = vector.broadcast %164 : vector<1x96xf32> to vector<12x96xf32>
    %167 = arith.addf %165, %166 : vector<12x96xf32>
    %168 = vector.extract_strided_slice %167 {offsets = [0, 0], sizes = [12, 32], strides = [1, 1]} : vector<12x96xf32> to vector<12x32xf32>
    %169 = vector.extract_strided_slice %167 {offsets = [0, 32], sizes = [12, 32], strides = [1, 1]} : vector<12x96xf32> to vector<12x32xf32>
    %170 = vector.extract_strided_slice %167 {offsets = [0, 64], sizes = [12, 32], strides = [1, 1]} : vector<12x96xf32> to vector<12x32xf32>
    %c1_82 = arith.constant 1 : index
    %c0_83 = arith.constant 0 : index
    %c0_84 = arith.constant 0 : index
    %171 = vector.load %arg8[%c1_82, %c0_83, %c0_84] : memref<4x32x32xf32, #tpu.memory_space<vmem>>, vector<1x32x32xf32>
    %172 = vector.shape_cast %171 : vector<1x32x32xf32> to vector<32x32xf32>
    %173 = vector.extract_strided_slice %168 {offsets = [0, 0], sizes = [12, 8], strides = [1, 1]} : vector<12x32xf32> to vector<12x8xf32>
    %174 = vector.extract_strided_slice %169 {offsets = [0, 0], sizes = [12, 8], strides = [1, 1]} : vector<12x32xf32> to vector<12x8xf32>
    %175 = vector.extract_strided_slice %170 {offsets = [0, 0], sizes = [12, 8], strides = [1, 1]} : vector<12x32xf32> to vector<12x8xf32>
    %cst_85 = arith.constant dense<0.000000e+00> : vector<12x12xf32>
    %176 = tpu.matmul %173, %174, %cst_85 {dimension_numbers = #tpu.dot_dimension_numbers<[1], [1], [0], [0], [0, 0, 1, 0], [], []>} : vector<12x8xf32>, vector<12x8xf32>, vector<12x12xf32> -> vector<12x12xf32>
    %177 = arith.addf %176, %160 : vector<12x12xf32>
    %cst_86 = arith.constant dense<0xFF800000> : vector<12xf32>
    %178 = vector.multi_reduction <maximumf>, %177, %cst_86 [1] : vector<12x12xf32> to vector<12xf32>
    %179 = vector.shape_cast %178 : vector<12xf32> to vector<12x1xf32>
    %180 = vector.broadcast %179 : vector<12x1xf32> to vector<12x12xf32>
    %181 = arith.subf %177, %180 : vector<12x12xf32>
    %182 = math.exp %181 : vector<12x12xf32>
    %cst_87 = arith.constant dense<0.000000e+00> : vector<12xf32>
    %183 = vector.multi_reduction <add>, %182, %cst_87 [1] : vector<12x12xf32> to vector<12xf32>
    %184 = vector.shape_cast %183 : vector<12xf32> to vector<12x1xf32>
    %185 = tpu.reciprocal %184 {approx = true} : vector<12x1xf32> -> vector<12x1xf32>
    %186 = vector.broadcast %185 : vector<12x1xf32> to vector<12x12xf32>
    %187 = arith.mulf %182, %186 : vector<12x12xf32>
    %cst_88 = arith.constant dense<0.000000e+00> : vector<12x8xf32>
    %188 = tpu.matmul %187, %175, %cst_88 {dimension_numbers = #tpu.dot_dimension_numbers<[1], [0], [0], [1], [0, 0, 1, 1], [], []>} : vector<12x12xf32>, vector<12x8xf32>, vector<12x8xf32> -> vector<12x8xf32>
    %189 = vector.extract_strided_slice %172 {offsets = [0, 0], sizes = [8, 32], strides = [1, 1]} : vector<32x32xf32> to vector<8x32xf32>
    %cst_89 = arith.constant dense<0.000000e+00> : vector<12x32xf32>
    %190 = tpu.matmul %188, %189, %cst_89 {dimension_numbers = #tpu.dot_dimension_numbers<[1], [0], [0], [1], [0, 0, 1, 1], [], []>} : vector<12x8xf32>, vector<8x32xf32>, vector<12x32xf32> -> vector<12x32xf32>
    %191 = vector.extract_strided_slice %168 {offsets = [0, 8], sizes = [12, 8], strides = [1, 1]} : vector<12x32xf32> to vector<12x8xf32>
    %192 = vector.extract_strided_slice %169 {offsets = [0, 8], sizes = [12, 8], strides = [1, 1]} : vector<12x32xf32> to vector<12x8xf32>
    %193 = vector.extract_strided_slice %170 {offsets = [0, 8], sizes = [12, 8], strides = [1, 1]} : vector<12x32xf32> to vector<12x8xf32>
    %cst_90 = arith.constant dense<0.000000e+00> : vector<12x12xf32>
    %194 = tpu.matmul %191, %192, %cst_90 {dimension_numbers = #tpu.dot_dimension_numbers<[1], [1], [0], [0], [0, 0, 1, 0], [], []>} : vector<12x8xf32>, vector<12x8xf32>, vector<12x12xf32> -> vector<12x12xf32>
    %195 = arith.addf %194, %160 : vector<12x12xf32>
    %cst_91 = arith.constant dense<0xFF800000> : vector<12xf32>
    %196 = vector.multi_reduction <maximumf>, %195, %cst_91 [1] : vector<12x12xf32> to vector<12xf32>
    %197 = vector.shape_cast %196 : vector<12xf32> to vector<12x1xf32>
    %198 = vector.broadcast %197 : vector<12x1xf32> to vector<12x12xf32>
    %199 = arith.subf %195, %198 : vector<12x12xf32>
    %200 = math.exp %199 : vector<12x12xf32>
    %cst_92 = arith.constant dense<0.000000e+00> : vector<12xf32>
    %201 = vector.multi_reduction <add>, %200, %cst_92 [1] : vector<12x12xf32> to vector<12xf32>
    %202 = vector.shape_cast %201 : vector<12xf32> to vector<12x1xf32>
    %203 = tpu.reciprocal %202 {approx = true} : vector<12x1xf32> -> vector<12x1xf32>
    %204 = vector.broadcast %203 : vector<12x1xf32> to vector<12x12xf32>
    %205 = arith.mulf %200, %204 : vector<12x12xf32>
    %cst_93 = arith.constant dense<0.000000e+00> : vector<12x8xf32>
    %206 = tpu.matmul %205, %193, %cst_93 {dimension_numbers = #tpu.dot_dimension_numbers<[1], [0], [0], [1], [0, 0, 1, 1], [], []>} : vector<12x12xf32>, vector<12x8xf32>, vector<12x8xf32> -> vector<12x8xf32>
    %207 = vector.extract_strided_slice %172 {offsets = [8, 0], sizes = [8, 32], strides = [1, 1]} : vector<32x32xf32> to vector<8x32xf32>
    %cst_94 = arith.constant dense<0.000000e+00> : vector<12x32xf32>
    %208 = tpu.matmul %206, %207, %cst_94 {dimension_numbers = #tpu.dot_dimension_numbers<[1], [0], [0], [1], [0, 0, 1, 1], [], []>} : vector<12x8xf32>, vector<8x32xf32>, vector<12x32xf32> -> vector<12x32xf32>
    %209 = arith.addf %190, %208 : vector<12x32xf32>
    %210 = vector.extract_strided_slice %168 {offsets = [0, 16], sizes = [12, 8], strides = [1, 1]} : vector<12x32xf32> to vector<12x8xf32>
    %211 = vector.extract_strided_slice %169 {offsets = [0, 16], sizes = [12, 8], strides = [1, 1]} : vector<12x32xf32> to vector<12x8xf32>
    %212 = vector.extract_strided_slice %170 {offsets = [0, 16], sizes = [12, 8], strides = [1, 1]} : vector<12x32xf32> to vector<12x8xf32>
    %cst_95 = arith.constant dense<0.000000e+00> : vector<12x12xf32>
    %213 = tpu.matmul %210, %211, %cst_95 {dimension_numbers = #tpu.dot_dimension_numbers<[1], [1], [0], [0], [0, 0, 1, 0], [], []>} : vector<12x8xf32>, vector<12x8xf32>, vector<12x12xf32> -> vector<12x12xf32>
    %214 = arith.addf %213, %160 : vector<12x12xf32>
    %cst_96 = arith.constant dense<0xFF800000> : vector<12xf32>
    %215 = vector.multi_reduction <maximumf>, %214, %cst_96 [1] : vector<12x12xf32> to vector<12xf32>
    %216 = vector.shape_cast %215 : vector<12xf32> to vector<12x1xf32>
    %217 = vector.broadcast %216 : vector<12x1xf32> to vector<12x12xf32>
    %218 = arith.subf %214, %217 : vector<12x12xf32>
    %219 = math.exp %218 : vector<12x12xf32>
    %cst_97 = arith.constant dense<0.000000e+00> : vector<12xf32>
    %220 = vector.multi_reduction <add>, %219, %cst_97 [1] : vector<12x12xf32> to vector<12xf32>
    %221 = vector.shape_cast %220 : vector<12xf32> to vector<12x1xf32>
    %222 = tpu.reciprocal %221 {approx = true} : vector<12x1xf32> -> vector<12x1xf32>
    %223 = vector.broadcast %222 : vector<12x1xf32> to vector<12x12xf32>
    %224 = arith.mulf %219, %223 : vector<12x12xf32>
    %cst_98 = arith.constant dense<0.000000e+00> : vector<12x8xf32>
    %225 = tpu.matmul %224, %212, %cst_98 {dimension_numbers = #tpu.dot_dimension_numbers<[1], [0], [0], [1], [0, 0, 1, 1], [], []>} : vector<12x12xf32>, vector<12x8xf32>, vector<12x8xf32> -> vector<12x8xf32>
    %226 = vector.extract_strided_slice %172 {offsets = [16, 0], sizes = [8, 32], strides = [1, 1]} : vector<32x32xf32> to vector<8x32xf32>
    %cst_99 = arith.constant dense<0.000000e+00> : vector<12x32xf32>
    %227 = tpu.matmul %225, %226, %cst_99 {dimension_numbers = #tpu.dot_dimension_numbers<[1], [0], [0], [1], [0, 0, 1, 1], [], []>} : vector<12x8xf32>, vector<8x32xf32>, vector<12x32xf32> -> vector<12x32xf32>
    %228 = arith.addf %209, %227 : vector<12x32xf32>
    %229 = vector.extract_strided_slice %168 {offsets = [0, 24], sizes = [12, 8], strides = [1, 1]} : vector<12x32xf32> to vector<12x8xf32>
    %230 = vector.extract_strided_slice %169 {offsets = [0, 24], sizes = [12, 8], strides = [1, 1]} : vector<12x32xf32> to vector<12x8xf32>
    %231 = vector.extract_strided_slice %170 {offsets = [0, 24], sizes = [12, 8], strides = [1, 1]} : vector<12x32xf32> to vector<12x8xf32>
    %cst_100 = arith.constant dense<0.000000e+00> : vector<12x12xf32>
    %232 = tpu.matmul %229, %230, %cst_100 {dimension_numbers = #tpu.dot_dimension_numbers<[1], [1], [0], [0], [0, 0, 1, 0], [], []>} : vector<12x8xf32>, vector<12x8xf32>, vector<12x12xf32> -> vector<12x12xf32>
    %233 = arith.addf %232, %160 : vector<12x12xf32>
    %cst_101 = arith.constant dense<0xFF800000> : vector<12xf32>
    %234 = vector.multi_reduction <maximumf>, %233, %cst_101 [1] : vector<12x12xf32> to vector<12xf32>
    %235 = vector.shape_cast %234 : vector<12xf32> to vector<12x1xf32>
    %236 = vector.broadcast %235 : vector<12x1xf32> to vector<12x12xf32>
    %237 = arith.subf %233, %236 : vector<12x12xf32>
    %238 = math.exp %237 : vector<12x12xf32>
    %cst_102 = arith.constant dense<0.000000e+00> : vector<12xf32>
    %239 = vector.multi_reduction <add>, %238, %cst_102 [1] : vector<12x12xf32> to vector<12xf32>
    %240 = vector.shape_cast %239 : vector<12xf32> to vector<12x1xf32>
    %241 = tpu.reciprocal %240 {approx = true} : vector<12x1xf32> -> vector<12x1xf32>
    %242 = vector.broadcast %241 : vector<12x1xf32> to vector<12x12xf32>
    %243 = arith.mulf %238, %242 : vector<12x12xf32>
    %cst_103 = arith.constant dense<0.000000e+00> : vector<12x8xf32>
    %244 = tpu.matmul %243, %231, %cst_103 {dimension_numbers = #tpu.dot_dimension_numbers<[1], [0], [0], [1], [0, 0, 1, 1], [], []>} : vector<12x12xf32>, vector<12x8xf32>, vector<12x8xf32> -> vector<12x8xf32>
    %245 = vector.extract_strided_slice %172 {offsets = [24, 0], sizes = [8, 32], strides = [1, 1]} : vector<32x32xf32> to vector<8x32xf32>
    %cst_104 = arith.constant dense<0.000000e+00> : vector<12x32xf32>
    %246 = tpu.matmul %244, %245, %cst_104 {dimension_numbers = #tpu.dot_dimension_numbers<[1], [0], [0], [1], [0, 0, 1, 1], [], []>} : vector<12x8xf32>, vector<8x32xf32>, vector<12x32xf32> -> vector<12x32xf32>
    %247 = arith.addf %228, %246 : vector<12x32xf32>
    %c1_105 = arith.constant 1 : index
    %c0_106 = arith.constant 0 : index
    %c0_107 = arith.constant 0 : index
    %248 = vector.load %arg9[%c1_105, %c0_106, %c0_107] : memref<4x1x32xf32, #tpu.memory_space<vmem>>, vector<1x1x32xf32>
    %249 = vector.shape_cast %248 : vector<1x1x32xf32> to vector<1x32xf32>
    %250 = vector.broadcast %249 : vector<1x32xf32> to vector<12x32xf32>
    %251 = arith.addf %247, %250 : vector<12x32xf32>
    %252 = arith.addf %1, %251 : vector<12x32xf32>
    %c1_108 = arith.constant 1 : index
    %c0_109 = arith.constant 0 : index
    %c0_110 = arith.constant 0 : index
    %253 = vector.load %arg10[%c1_108, %c0_109, %c0_110] : memref<4x1x32xf32, #tpu.memory_space<vmem>>, vector<1x1x32xf32>
    %254 = vector.shape_cast %253 : vector<1x1x32xf32> to vector<1x32xf32>
    %c1_111 = arith.constant 1 : index
    %c0_112 = arith.constant 0 : index
    %c0_113 = arith.constant 0 : index
    %255 = vector.load %arg11[%c1_111, %c0_112, %c0_113] : memref<4x1x32xf32, #tpu.memory_space<vmem>>, vector<1x1x32xf32>
    %256 = vector.shape_cast %255 : vector<1x1x32xf32> to vector<1x32xf32>
    %cst_114 = arith.constant dense<0.000000e+00> : vector<12xf32>
    %257 = vector.multi_reduction <add>, %252, %cst_114 [1] : vector<12x32xf32> to vector<12xf32>
    %258 = vector.shape_cast %257 : vector<12xf32> to vector<12x1xf32>
    %cst_115 = arith.constant 3.200000e+01 : f32
    %259 = vector.broadcast %cst_115 : f32 to vector<12x1xf32>
    %260 = arith.divf %258, %259 : vector<12x1xf32>
    %261 = vector.broadcast %260 : vector<12x1xf32> to vector<12x32xf32>
    %262 = arith.subf %252, %261 : vector<12x32xf32>
    %263 = arith.mulf %262, %262 : vector<12x32xf32>
    %cst_116 = arith.constant dense<0.000000e+00> : vector<12xf32>
    %264 = vector.multi_reduction <add>, %263, %cst_116 [1] : vector<12x32xf32> to vector<12xf32>
    %265 = vector.shape_cast %264 : vector<12xf32> to vector<12x1xf32>
    %cst_117 = arith.constant 3.200000e+01 : f32
    %266 = vector.broadcast %cst_117 : f32 to vector<12x1xf32>
    %267 = arith.divf %265, %266 : vector<12x1xf32>
    %cst_118 = arith.constant 9.99999974E-6 : f32
    %268 = vector.broadcast %cst_118 : f32 to vector<12x1xf32>
    %269 = arith.addf %267, %268 : vector<12x1xf32>
    %270 = math.rsqrt %269 : vector<12x1xf32>
    %271 = vector.broadcast %270 : vector<12x1xf32> to vector<12x32xf32>
    %272 = arith.mulf %262, %271 : vector<12x32xf32>
    %273 = vector.broadcast %254 : vector<1x32xf32> to vector<12x32xf32>
    %274 = arith.mulf %272, %273 : vector<12x32xf32>
    %275 = vector.broadcast %256 : vector<1x32xf32> to vector<12x32xf32>
    %276 = arith.addf %274, %275 : vector<12x32xf32>
    %c1_119 = arith.constant 1 : index
    %c0_120 = arith.constant 0 : index
    %c0_121 = arith.constant 0 : index
    %277 = vector.load %arg12[%c1_119, %c0_120, %c0_121] : memref<4x32x64xf32, #tpu.memory_space<vmem>>, vector<1x32x64xf32>
    %278 = vector.shape_cast %277 : vector<1x32x64xf32> to vector<32x64xf32>
    %cst_122 = arith.constant dense<0.000000e+00> : vector<12x64xf32>
    %279 = tpu.matmul %276, %278, %cst_122 {dimension_numbers = #tpu.dot_dimension_numbers<[1], [0], [0], [1], [0, 0, 1, 1], [], []>} : vector<12x32xf32>, vector<32x64xf32>, vector<12x64xf32> -> vector<12x64xf32>
    %c1_123 = arith.constant 1 : index
    %c0_124 = arith.constant 0 : index
    %c0_125 = arith.constant 0 : index
    %280 = vector.load %arg13[%c1_123, %c0_124, %c0_125] : memref<4x1x64xf32, #tpu.memory_space<vmem>>, vector<1x1x64xf32>
    %281 = vector.shape_cast %280 : vector<1x1x64xf32> to vector<1x64xf32>
    %282 = vector.broadcast %281 : vector<1x64xf32> to vector<12x64xf32>
    %283 = arith.addf %279, %282 : vector<12x64xf32>
    %cst_126 = arith.constant 0.000000e+00 : f32
    %284 = vector.broadcast %cst_126 : f32 to vector<12x64xf32>
    %285 = arith.maximumf %283, %284 : vector<12x64xf32>
    %c1_127 = arith.constant 1 : index
    %c0_128 = arith.constant 0 : index
    %c0_129 = arith.constant 0 : index
    %286 = vector.load %arg14[%c1_127, %c0_128, %c0_129] : memref<4x64x32xf32, #tpu.memory_space<vmem>>, vector<1x64x32xf32>
    %287 = vector.shape_cast %286 : vector<1x64x32xf32> to vector<64x32xf32>
    %cst_130 = arith.constant dense<0.000000e+00> : vector<12x32xf32>
    %288 = tpu.matmul %285, %287, %cst_130 {dimension_numbers = #tpu.dot_dimension_numbers<[1], [0], [0], [1], [0, 0, 1, 1], [], []>} : vector<12x64xf32>, vector<64x32xf32>, vector<12x32xf32> -> vector<12x32xf32>
    %c1_131 = arith.constant 1 : index
    %c0_132 = arith.constant 0 : index
    %c0_133 = arith.constant 0 : index
    %289 = vector.load %arg15[%c1_131, %c0_132, %c0_133] : memref<4x1x32xf32, #tpu.memory_space<vmem>>, vector<1x1x32xf32>
    %290 = vector.shape_cast %289 : vector<1x1x32xf32> to vector<1x32xf32>
    %291 = vector.broadcast %290 : vector<1x32xf32> to vector<12x32xf32>
    %292 = arith.addf %288, %291 : vector<12x32xf32>
    %293 = arith.addf %276, %292 : vector<12x32xf32>
    %c1_134 = arith.constant 1 : index
    %c0_135 = arith.constant 0 : index
    %c0_136 = arith.constant 0 : index
    %294 = vector.load %arg16[%c1_134, %c0_135, %c0_136] : memref<4x1x32xf32, #tpu.memory_space<vmem>>, vector<1x1x32xf32>
    %295 = vector.shape_cast %294 : vector<1x1x32xf32> to vector<1x32xf32>
    %c1_137 = arith.constant 1 : index
    %c0_138 = arith.constant 0 : index
    %c0_139 = arith.constant 0 : index
    %296 = vector.load %arg17[%c1_137, %c0_138, %c0_139] : memref<4x1x32xf32, #tpu.memory_space<vmem>>, vector<1x1x32xf32>
    %297 = vector.shape_cast %296 : vector<1x1x32xf32> to vector<1x32xf32>
    %cst_140 = arith.constant dense<0.000000e+00> : vector<12xf32>
    %298 = vector.multi_reduction <add>, %293, %cst_140 [1] : vector<12x32xf32> to vector<12xf32>
    %299 = vector.shape_cast %298 : vector<12xf32> to vector<12x1xf32>
    %cst_141 = arith.constant 3.200000e+01 : f32
    %300 = vector.broadcast %cst_141 : f32 to vector<12x1xf32>
    %301 = arith.divf %299, %300 : vector<12x1xf32>
    %302 = vector.broadcast %301 : vector<12x1xf32> to vector<12x32xf32>
    %303 = arith.subf %293, %302 : vector<12x32xf32>
    %304 = arith.mulf %303, %303 : vector<12x32xf32>
    %cst_142 = arith.constant dense<0.000000e+00> : vector<12xf32>
    %305 = vector.multi_reduction <add>, %304, %cst_142 [1] : vector<12x32xf32> to vector<12xf32>
    %306 = vector.shape_cast %305 : vector<12xf32> to vector<12x1xf32>
    %cst_143 = arith.constant 3.200000e+01 : f32
    %307 = vector.broadcast %cst_143 : f32 to vector<12x1xf32>
    %308 = arith.divf %306, %307 : vector<12x1xf32>
    %cst_144 = arith.constant 9.99999974E-6 : f32
    %309 = vector.broadcast %cst_144 : f32 to vector<12x1xf32>
    %310 = arith.addf %308, %309 : vector<12x1xf32>
    %311 = math.rsqrt %310 : vector<12x1xf32>
    %312 = vector.broadcast %311 : vector<12x1xf32> to vector<12x32xf32>
    %313 = arith.mulf %303, %312 : vector<12x32xf32>
    %314 = vector.broadcast %295 : vector<1x32xf32> to vector<12x32xf32>
    %315 = arith.mulf %313, %314 : vector<12x32xf32>
    %316 = vector.broadcast %297 : vector<1x32xf32> to vector<12x32xf32>
    %317 = arith.addf %315, %316 : vector<12x32xf32>
    %c0_145 = arith.constant 0 : index
    %c0_146 = arith.constant 0 : index
    %318 = vector.load %arg4[%c0_145, %c0_146] : memref<16x12xf32, #tpu.memory_space<vmem>>, vector<16x12xf32>
    %c2 = arith.constant 2 : index
    %c0_147 = arith.constant 0 : index
    %c0_148 = arith.constant 0 : index
    %319 = vector.load %arg6[%c2, %c0_147, %c0_148] : memref<4x32x96xf32, #tpu.memory_space<vmem>>, vector<1x32x96xf32>
    %320 = vector.shape_cast %319 : vector<1x32x96xf32> to vector<32x96xf32>
    %c2_149 = arith.constant 2 : index
    %c0_150 = arith.constant 0 : index
    %c0_151 = arith.constant 0 : index
    %321 = vector.load %arg7[%c2_149, %c0_150, %c0_151] : memref<4x1x96xf32, #tpu.memory_space<vmem>>, vector<1x1x96xf32>
    %322 = vector.shape_cast %321 : vector<1x1x96xf32> to vector<1x96xf32>
    %323 = vector.extract_strided_slice %320 {offsets = [0, 0], sizes = [32, 32], strides = [1, 1]} : vector<32x96xf32> to vector<32x32xf32>
    %cst_152 = arith.constant dense<0.000000e+00> : vector<16x32xf32>
    %324 = tpu.matmul %159, %323, %cst_152 {dimension_numbers = #tpu.dot_dimension_numbers<[1], [0], [0], [1], [0, 0, 1, 1], [], []>} : vector<16x32xf32>, vector<32x32xf32>, vector<16x32xf32> -> vector<16x32xf32>
    %325 = vector.extract_strided_slice %322 {offsets = [0, 0], sizes = [1, 32], strides = [1, 1]} : vector<1x96xf32> to vector<1x32xf32>
    %326 = vector.broadcast %325 : vector<1x32xf32> to vector<16x32xf32>
    %327 = arith.addf %324, %326 : vector<16x32xf32>
    %328 = vector.extract_strided_slice %320 {offsets = [0, 32], sizes = [32, 64], strides = [1, 1]} : vector<32x96xf32> to vector<32x64xf32>
    %cst_153 = arith.constant dense<0.000000e+00> : vector<12x64xf32>
    %329 = tpu.matmul %317, %328, %cst_153 {dimension_numbers = #tpu.dot_dimension_numbers<[1], [0], [0], [1], [0, 0, 1, 1], [], []>} : vector<12x32xf32>, vector<32x64xf32>, vector<12x64xf32> -> vector<12x64xf32>
    %330 = vector.extract_strided_slice %322 {offsets = [0, 32], sizes = [1, 64], strides = [1, 1]} : vector<1x96xf32> to vector<1x64xf32>
    %331 = vector.broadcast %330 : vector<1x64xf32> to vector<12x64xf32>
    %332 = arith.addf %329, %331 : vector<12x64xf32>
    %333 = vector.extract_strided_slice %332 {offsets = [0, 0], sizes = [12, 32], strides = [1, 1]} : vector<12x64xf32> to vector<12x32xf32>
    %334 = vector.extract_strided_slice %332 {offsets = [0, 32], sizes = [12, 32], strides = [1, 1]} : vector<12x64xf32> to vector<12x32xf32>
    %c2_154 = arith.constant 2 : index
    %c0_155 = arith.constant 0 : index
    %c0_156 = arith.constant 0 : index
    %335 = vector.load %arg8[%c2_154, %c0_155, %c0_156] : memref<4x32x32xf32, #tpu.memory_space<vmem>>, vector<1x32x32xf32>
    %336 = vector.shape_cast %335 : vector<1x32x32xf32> to vector<32x32xf32>
    %337 = vector.extract_strided_slice %327 {offsets = [0, 0], sizes = [16, 8], strides = [1, 1]} : vector<16x32xf32> to vector<16x8xf32>
    %338 = vector.extract_strided_slice %333 {offsets = [0, 0], sizes = [12, 8], strides = [1, 1]} : vector<12x32xf32> to vector<12x8xf32>
    %339 = vector.extract_strided_slice %334 {offsets = [0, 0], sizes = [12, 8], strides = [1, 1]} : vector<12x32xf32> to vector<12x8xf32>
    %cst_157 = arith.constant dense<0.000000e+00> : vector<16x12xf32>
    %340 = tpu.matmul %337, %338, %cst_157 {dimension_numbers = #tpu.dot_dimension_numbers<[1], [1], [0], [0], [0, 0, 1, 0], [], []>} : vector<16x8xf32>, vector<12x8xf32>, vector<16x12xf32> -> vector<16x12xf32>
    %341 = arith.addf %340, %318 : vector<16x12xf32>
    %cst_158 = arith.constant dense<0xFF800000> : vector<16xf32>
    %342 = vector.multi_reduction <maximumf>, %341, %cst_158 [1] : vector<16x12xf32> to vector<16xf32>
    %343 = vector.shape_cast %342 : vector<16xf32> to vector<16x1xf32>
    %344 = vector.broadcast %343 : vector<16x1xf32> to vector<16x12xf32>
    %345 = arith.subf %341, %344 : vector<16x12xf32>
    %346 = math.exp %345 : vector<16x12xf32>
    %cst_159 = arith.constant dense<0.000000e+00> : vector<16xf32>
    %347 = vector.multi_reduction <add>, %346, %cst_159 [1] : vector<16x12xf32> to vector<16xf32>
    %348 = vector.shape_cast %347 : vector<16xf32> to vector<16x1xf32>
    %349 = tpu.reciprocal %348 {approx = true} : vector<16x1xf32> -> vector<16x1xf32>
    %350 = vector.broadcast %349 : vector<16x1xf32> to vector<16x12xf32>
    %351 = arith.mulf %346, %350 : vector<16x12xf32>
    %cst_160 = arith.constant dense<0.000000e+00> : vector<16x8xf32>
    %352 = tpu.matmul %351, %339, %cst_160 {dimension_numbers = #tpu.dot_dimension_numbers<[1], [0], [0], [1], [0, 0, 1, 1], [], []>} : vector<16x12xf32>, vector<12x8xf32>, vector<16x8xf32> -> vector<16x8xf32>
    %353 = vector.extract_strided_slice %336 {offsets = [0, 0], sizes = [8, 32], strides = [1, 1]} : vector<32x32xf32> to vector<8x32xf32>
    %cst_161 = arith.constant dense<0.000000e+00> : vector<16x32xf32>
    %354 = tpu.matmul %352, %353, %cst_161 {dimension_numbers = #tpu.dot_dimension_numbers<[1], [0], [0], [1], [0, 0, 1, 1], [], []>} : vector<16x8xf32>, vector<8x32xf32>, vector<16x32xf32> -> vector<16x32xf32>
    %355 = vector.extract_strided_slice %327 {offsets = [0, 8], sizes = [16, 8], strides = [1, 1]} : vector<16x32xf32> to vector<16x8xf32>
    %356 = vector.extract_strided_slice %333 {offsets = [0, 8], sizes = [12, 8], strides = [1, 1]} : vector<12x32xf32> to vector<12x8xf32>
    %357 = vector.extract_strided_slice %334 {offsets = [0, 8], sizes = [12, 8], strides = [1, 1]} : vector<12x32xf32> to vector<12x8xf32>
    %cst_162 = arith.constant dense<0.000000e+00> : vector<16x12xf32>
    %358 = tpu.matmul %355, %356, %cst_162 {dimension_numbers = #tpu.dot_dimension_numbers<[1], [1], [0], [0], [0, 0, 1, 0], [], []>} : vector<16x8xf32>, vector<12x8xf32>, vector<16x12xf32> -> vector<16x12xf32>
    %359 = arith.addf %358, %318 : vector<16x12xf32>
    %cst_163 = arith.constant dense<0xFF800000> : vector<16xf32>
    %360 = vector.multi_reduction <maximumf>, %359, %cst_163 [1] : vector<16x12xf32> to vector<16xf32>
    %361 = vector.shape_cast %360 : vector<16xf32> to vector<16x1xf32>
    %362 = vector.broadcast %361 : vector<16x1xf32> to vector<16x12xf32>
    %363 = arith.subf %359, %362 : vector<16x12xf32>
    %364 = math.exp %363 : vector<16x12xf32>
    %cst_164 = arith.constant dense<0.000000e+00> : vector<16xf32>
    %365 = vector.multi_reduction <add>, %364, %cst_164 [1] : vector<16x12xf32> to vector<16xf32>
    %366 = vector.shape_cast %365 : vector<16xf32> to vector<16x1xf32>
    %367 = tpu.reciprocal %366 {approx = true} : vector<16x1xf32> -> vector<16x1xf32>
    %368 = vector.broadcast %367 : vector<16x1xf32> to vector<16x12xf32>
    %369 = arith.mulf %364, %368 : vector<16x12xf32>
    %cst_165 = arith.constant dense<0.000000e+00> : vector<16x8xf32>
    %370 = tpu.matmul %369, %357, %cst_165 {dimension_numbers = #tpu.dot_dimension_numbers<[1], [0], [0], [1], [0, 0, 1, 1], [], []>} : vector<16x12xf32>, vector<12x8xf32>, vector<16x8xf32> -> vector<16x8xf32>
    %371 = vector.extract_strided_slice %336 {offsets = [8, 0], sizes = [8, 32], strides = [1, 1]} : vector<32x32xf32> to vector<8x32xf32>
    %cst_166 = arith.constant dense<0.000000e+00> : vector<16x32xf32>
    %372 = tpu.matmul %370, %371, %cst_166 {dimension_numbers = #tpu.dot_dimension_numbers<[1], [0], [0], [1], [0, 0, 1, 1], [], []>} : vector<16x8xf32>, vector<8x32xf32>, vector<16x32xf32> -> vector<16x32xf32>
    %373 = arith.addf %354, %372 : vector<16x32xf32>
    %374 = vector.extract_strided_slice %327 {offsets = [0, 16], sizes = [16, 8], strides = [1, 1]} : vector<16x32xf32> to vector<16x8xf32>
    %375 = vector.extract_strided_slice %333 {offsets = [0, 16], sizes = [12, 8], strides = [1, 1]} : vector<12x32xf32> to vector<12x8xf32>
    %376 = vector.extract_strided_slice %334 {offsets = [0, 16], sizes = [12, 8], strides = [1, 1]} : vector<12x32xf32> to vector<12x8xf32>
    %cst_167 = arith.constant dense<0.000000e+00> : vector<16x12xf32>
    %377 = tpu.matmul %374, %375, %cst_167 {dimension_numbers = #tpu.dot_dimension_numbers<[1], [1], [0], [0], [0, 0, 1, 0], [], []>} : vector<16x8xf32>, vector<12x8xf32>, vector<16x12xf32> -> vector<16x12xf32>
    %378 = arith.addf %377, %318 : vector<16x12xf32>
    %cst_168 = arith.constant dense<0xFF800000> : vector<16xf32>
    %379 = vector.multi_reduction <maximumf>, %378, %cst_168 [1] : vector<16x12xf32> to vector<16xf32>
    %380 = vector.shape_cast %379 : vector<16xf32> to vector<16x1xf32>
    %381 = vector.broadcast %380 : vector<16x1xf32> to vector<16x12xf32>
    %382 = arith.subf %378, %381 : vector<16x12xf32>
    %383 = math.exp %382 : vector<16x12xf32>
    %cst_169 = arith.constant dense<0.000000e+00> : vector<16xf32>
    %384 = vector.multi_reduction <add>, %383, %cst_169 [1] : vector<16x12xf32> to vector<16xf32>
    %385 = vector.shape_cast %384 : vector<16xf32> to vector<16x1xf32>
    %386 = tpu.reciprocal %385 {approx = true} : vector<16x1xf32> -> vector<16x1xf32>
    %387 = vector.broadcast %386 : vector<16x1xf32> to vector<16x12xf32>
    %388 = arith.mulf %383, %387 : vector<16x12xf32>
    %cst_170 = arith.constant dense<0.000000e+00> : vector<16x8xf32>
    %389 = tpu.matmul %388, %376, %cst_170 {dimension_numbers = #tpu.dot_dimension_numbers<[1], [0], [0], [1], [0, 0, 1, 1], [], []>} : vector<16x12xf32>, vector<12x8xf32>, vector<16x8xf32> -> vector<16x8xf32>
    %390 = vector.extract_strided_slice %336 {offsets = [16, 0], sizes = [8, 32], strides = [1, 1]} : vector<32x32xf32> to vector<8x32xf32>
    %cst_171 = arith.constant dense<0.000000e+00> : vector<16x32xf32>
    %391 = tpu.matmul %389, %390, %cst_171 {dimension_numbers = #tpu.dot_dimension_numbers<[1], [0], [0], [1], [0, 0, 1, 1], [], []>} : vector<16x8xf32>, vector<8x32xf32>, vector<16x32xf32> -> vector<16x32xf32>
    %392 = arith.addf %373, %391 : vector<16x32xf32>
    %393 = vector.extract_strided_slice %327 {offsets = [0, 24], sizes = [16, 8], strides = [1, 1]} : vector<16x32xf32> to vector<16x8xf32>
    %394 = vector.extract_strided_slice %333 {offsets = [0, 24], sizes = [12, 8], strides = [1, 1]} : vector<12x32xf32> to vector<12x8xf32>
    %395 = vector.extract_strided_slice %334 {offsets = [0, 24], sizes = [12, 8], strides = [1, 1]} : vector<12x32xf32> to vector<12x8xf32>
    %cst_172 = arith.constant dense<0.000000e+00> : vector<16x12xf32>
    %396 = tpu.matmul %393, %394, %cst_172 {dimension_numbers = #tpu.dot_dimension_numbers<[1], [1], [0], [0], [0, 0, 1, 0], [], []>} : vector<16x8xf32>, vector<12x8xf32>, vector<16x12xf32> -> vector<16x12xf32>
    %397 = arith.addf %396, %318 : vector<16x12xf32>
    %cst_173 = arith.constant dense<0xFF800000> : vector<16xf32>
    %398 = vector.multi_reduction <maximumf>, %397, %cst_173 [1] : vector<16x12xf32> to vector<16xf32>
    %399 = vector.shape_cast %398 : vector<16xf32> to vector<16x1xf32>
    %400 = vector.broadcast %399 : vector<16x1xf32> to vector<16x12xf32>
    %401 = arith.subf %397, %400 : vector<16x12xf32>
    %402 = math.exp %401 : vector<16x12xf32>
    %cst_174 = arith.constant dense<0.000000e+00> : vector<16xf32>
    %403 = vector.multi_reduction <add>, %402, %cst_174 [1] : vector<16x12xf32> to vector<16xf32>
    %404 = vector.shape_cast %403 : vector<16xf32> to vector<16x1xf32>
    %405 = tpu.reciprocal %404 {approx = true} : vector<16x1xf32> -> vector<16x1xf32>
    %406 = vector.broadcast %405 : vector<16x1xf32> to vector<16x12xf32>
    %407 = arith.mulf %402, %406 : vector<16x12xf32>
    %cst_175 = arith.constant dense<0.000000e+00> : vector<16x8xf32>
    %408 = tpu.matmul %407, %395, %cst_175 {dimension_numbers = #tpu.dot_dimension_numbers<[1], [0], [0], [1], [0, 0, 1, 1], [], []>} : vector<16x12xf32>, vector<12x8xf32>, vector<16x8xf32> -> vector<16x8xf32>
    %409 = vector.extract_strided_slice %336 {offsets = [24, 0], sizes = [8, 32], strides = [1, 1]} : vector<32x32xf32> to vector<8x32xf32>
    %cst_176 = arith.constant dense<0.000000e+00> : vector<16x32xf32>
    %410 = tpu.matmul %408, %409, %cst_176 {dimension_numbers = #tpu.dot_dimension_numbers<[1], [0], [0], [1], [0, 0, 1, 1], [], []>} : vector<16x8xf32>, vector<8x32xf32>, vector<16x32xf32> -> vector<16x32xf32>
    %411 = arith.addf %392, %410 : vector<16x32xf32>
    %c2_177 = arith.constant 2 : index
    %c0_178 = arith.constant 0 : index
    %c0_179 = arith.constant 0 : index
    %412 = vector.load %arg9[%c2_177, %c0_178, %c0_179] : memref<4x1x32xf32, #tpu.memory_space<vmem>>, vector<1x1x32xf32>
    %413 = vector.shape_cast %412 : vector<1x1x32xf32> to vector<1x32xf32>
    %414 = vector.broadcast %413 : vector<1x32xf32> to vector<16x32xf32>
    %415 = arith.addf %411, %414 : vector<16x32xf32>
    %416 = arith.addf %159, %415 : vector<16x32xf32>
    %c2_180 = arith.constant 2 : index
    %c0_181 = arith.constant 0 : index
    %c0_182 = arith.constant 0 : index
    %417 = vector.load %arg10[%c2_180, %c0_181, %c0_182] : memref<4x1x32xf32, #tpu.memory_space<vmem>>, vector<1x1x32xf32>
    %418 = vector.shape_cast %417 : vector<1x1x32xf32> to vector<1x32xf32>
    %c2_183 = arith.constant 2 : index
    %c0_184 = arith.constant 0 : index
    %c0_185 = arith.constant 0 : index
    %419 = vector.load %arg11[%c2_183, %c0_184, %c0_185] : memref<4x1x32xf32, #tpu.memory_space<vmem>>, vector<1x1x32xf32>
    %420 = vector.shape_cast %419 : vector<1x1x32xf32> to vector<1x32xf32>
    %cst_186 = arith.constant dense<0.000000e+00> : vector<16xf32>
    %421 = vector.multi_reduction <add>, %416, %cst_186 [1] : vector<16x32xf32> to vector<16xf32>
    %422 = vector.shape_cast %421 : vector<16xf32> to vector<16x1xf32>
    %cst_187 = arith.constant 3.200000e+01 : f32
    %423 = vector.broadcast %cst_187 : f32 to vector<16x1xf32>
    %424 = arith.divf %422, %423 : vector<16x1xf32>
    %425 = vector.broadcast %424 : vector<16x1xf32> to vector<16x32xf32>
    %426 = arith.subf %416, %425 : vector<16x32xf32>
    %427 = arith.mulf %426, %426 : vector<16x32xf32>
    %cst_188 = arith.constant dense<0.000000e+00> : vector<16xf32>
    %428 = vector.multi_reduction <add>, %427, %cst_188 [1] : vector<16x32xf32> to vector<16xf32>
    %429 = vector.shape_cast %428 : vector<16xf32> to vector<16x1xf32>
    %cst_189 = arith.constant 3.200000e+01 : f32
    %430 = vector.broadcast %cst_189 : f32 to vector<16x1xf32>
    %431 = arith.divf %429, %430 : vector<16x1xf32>
    %cst_190 = arith.constant 9.99999974E-6 : f32
    %432 = vector.broadcast %cst_190 : f32 to vector<16x1xf32>
    %433 = arith.addf %431, %432 : vector<16x1xf32>
    %434 = math.rsqrt %433 : vector<16x1xf32>
    %435 = vector.broadcast %434 : vector<16x1xf32> to vector<16x32xf32>
    %436 = arith.mulf %426, %435 : vector<16x32xf32>
    %437 = vector.broadcast %418 : vector<1x32xf32> to vector<16x32xf32>
    %438 = arith.mulf %436, %437 : vector<16x32xf32>
    %439 = vector.broadcast %420 : vector<1x32xf32> to vector<16x32xf32>
    %440 = arith.addf %438, %439 : vector<16x32xf32>
    %c0_191 = arith.constant 0 : index
    %c0_192 = arith.constant 0 : index
    %441 = vector.load %arg5[%c0_191, %c0_192] : memref<12x16xf32, #tpu.memory_space<vmem>>, vector<12x16xf32>
    %c3 = arith.constant 3 : index
    %c0_193 = arith.constant 0 : index
    %c0_194 = arith.constant 0 : index
    %442 = vector.load %arg6[%c3, %c0_193, %c0_194] : memref<4x32x96xf32, #tpu.memory_space<vmem>>, vector<1x32x96xf32>
    %443 = vector.shape_cast %442 : vector<1x32x96xf32> to vector<32x96xf32>
    %c3_195 = arith.constant 3 : index
    %c0_196 = arith.constant 0 : index
    %c0_197 = arith.constant 0 : index
    %444 = vector.load %arg7[%c3_195, %c0_196, %c0_197] : memref<4x1x96xf32, #tpu.memory_space<vmem>>, vector<1x1x96xf32>
    %445 = vector.shape_cast %444 : vector<1x1x96xf32> to vector<1x96xf32>
    %446 = vector.extract_strided_slice %443 {offsets = [0, 0], sizes = [32, 32], strides = [1, 1]} : vector<32x96xf32> to vector<32x32xf32>
    %cst_198 = arith.constant dense<0.000000e+00> : vector<12x32xf32>
    %447 = tpu.matmul %317, %446, %cst_198 {dimension_numbers = #tpu.dot_dimension_numbers<[1], [0], [0], [1], [0, 0, 1, 1], [], []>} : vector<12x32xf32>, vector<32x32xf32>, vector<12x32xf32> -> vector<12x32xf32>
    %448 = vector.extract_strided_slice %445 {offsets = [0, 0], sizes = [1, 32], strides = [1, 1]} : vector<1x96xf32> to vector<1x32xf32>
    %449 = vector.broadcast %448 : vector<1x32xf32> to vector<12x32xf32>
    %450 = arith.addf %447, %449 : vector<12x32xf32>
    %451 = vector.extract_strided_slice %443 {offsets = [0, 32], sizes = [32, 64], strides = [1, 1]} : vector<32x96xf32> to vector<32x64xf32>
    %cst_199 = arith.constant dense<0.000000e+00> : vector<16x64xf32>
    %452 = tpu.matmul %440, %451, %cst_199 {dimension_numbers = #tpu.dot_dimension_numbers<[1], [0], [0], [1], [0, 0, 1, 1], [], []>} : vector<16x32xf32>, vector<32x64xf32>, vector<16x64xf32> -> vector<16x64xf32>
    %453 = vector.extract_strided_slice %445 {offsets = [0, 32], sizes = [1, 64], strides = [1, 1]} : vector<1x96xf32> to vector<1x64xf32>
    %454 = vector.broadcast %453 : vector<1x64xf32> to vector<16x64xf32>
    %455 = arith.addf %452, %454 : vector<16x64xf32>
    %456 = vector.extract_strided_slice %455 {offsets = [0, 0], sizes = [16, 32], strides = [1, 1]} : vector<16x64xf32> to vector<16x32xf32>
    %457 = vector.extract_strided_slice %455 {offsets = [0, 32], sizes = [16, 32], strides = [1, 1]} : vector<16x64xf32> to vector<16x32xf32>
    %c3_200 = arith.constant 3 : index
    %c0_201 = arith.constant 0 : index
    %c0_202 = arith.constant 0 : index
    %458 = vector.load %arg8[%c3_200, %c0_201, %c0_202] : memref<4x32x32xf32, #tpu.memory_space<vmem>>, vector<1x32x32xf32>
    %459 = vector.shape_cast %458 : vector<1x32x32xf32> to vector<32x32xf32>
    %460 = vector.extract_strided_slice %450 {offsets = [0, 0], sizes = [12, 8], strides = [1, 1]} : vector<12x32xf32> to vector<12x8xf32>
    %461 = vector.extract_strided_slice %456 {offsets = [0, 0], sizes = [16, 8], strides = [1, 1]} : vector<16x32xf32> to vector<16x8xf32>
    %462 = vector.extract_strided_slice %457 {offsets = [0, 0], sizes = [16, 8], strides = [1, 1]} : vector<16x32xf32> to vector<16x8xf32>
    %cst_203 = arith.constant dense<0.000000e+00> : vector<12x16xf32>
    %463 = tpu.matmul %460, %461, %cst_203 {dimension_numbers = #tpu.dot_dimension_numbers<[1], [1], [0], [0], [0, 0, 1, 0], [], []>} : vector<12x8xf32>, vector<16x8xf32>, vector<12x16xf32> -> vector<12x16xf32>
    %464 = arith.addf %463, %441 : vector<12x16xf32>
    %cst_204 = arith.constant dense<0xFF800000> : vector<12xf32>
    %465 = vector.multi_reduction <maximumf>, %464, %cst_204 [1] : vector<12x16xf32> to vector<12xf32>
    %466 = vector.shape_cast %465 : vector<12xf32> to vector<12x1xf32>
    %467 = vector.broadcast %466 : vector<12x1xf32> to vector<12x16xf32>
    %468 = arith.subf %464, %467 : vector<12x16xf32>
    %469 = math.exp %468 : vector<12x16xf32>
    %cst_205 = arith.constant dense<0.000000e+00> : vector<12xf32>
    %470 = vector.multi_reduction <add>, %469, %cst_205 [1] : vector<12x16xf32> to vector<12xf32>
    %471 = vector.shape_cast %470 : vector<12xf32> to vector<12x1xf32>
    %472 = tpu.reciprocal %471 {approx = true} : vector<12x1xf32> -> vector<12x1xf32>
    %473 = vector.broadcast %472 : vector<12x1xf32> to vector<12x16xf32>
    %474 = arith.mulf %469, %473 : vector<12x16xf32>
    %cst_206 = arith.constant dense<0.000000e+00> : vector<12x8xf32>
    %475 = tpu.matmul %474, %462, %cst_206 {dimension_numbers = #tpu.dot_dimension_numbers<[1], [0], [0], [1], [0, 0, 1, 1], [], []>} : vector<12x16xf32>, vector<16x8xf32>, vector<12x8xf32> -> vector<12x8xf32>
    %476 = vector.extract_strided_slice %459 {offsets = [0, 0], sizes = [8, 32], strides = [1, 1]} : vector<32x32xf32> to vector<8x32xf32>
    %cst_207 = arith.constant dense<0.000000e+00> : vector<12x32xf32>
    %477 = tpu.matmul %475, %476, %cst_207 {dimension_numbers = #tpu.dot_dimension_numbers<[1], [0], [0], [1], [0, 0, 1, 1], [], []>} : vector<12x8xf32>, vector<8x32xf32>, vector<12x32xf32> -> vector<12x32xf32>
    %478 = vector.extract_strided_slice %450 {offsets = [0, 8], sizes = [12, 8], strides = [1, 1]} : vector<12x32xf32> to vector<12x8xf32>
    %479 = vector.extract_strided_slice %456 {offsets = [0, 8], sizes = [16, 8], strides = [1, 1]} : vector<16x32xf32> to vector<16x8xf32>
    %480 = vector.extract_strided_slice %457 {offsets = [0, 8], sizes = [16, 8], strides = [1, 1]} : vector<16x32xf32> to vector<16x8xf32>
    %cst_208 = arith.constant dense<0.000000e+00> : vector<12x16xf32>
    %481 = tpu.matmul %478, %479, %cst_208 {dimension_numbers = #tpu.dot_dimension_numbers<[1], [1], [0], [0], [0, 0, 1, 0], [], []>} : vector<12x8xf32>, vector<16x8xf32>, vector<12x16xf32> -> vector<12x16xf32>
    %482 = arith.addf %481, %441 : vector<12x16xf32>
    %cst_209 = arith.constant dense<0xFF800000> : vector<12xf32>
    %483 = vector.multi_reduction <maximumf>, %482, %cst_209 [1] : vector<12x16xf32> to vector<12xf32>
    %484 = vector.shape_cast %483 : vector<12xf32> to vector<12x1xf32>
    %485 = vector.broadcast %484 : vector<12x1xf32> to vector<12x16xf32>
    %486 = arith.subf %482, %485 : vector<12x16xf32>
    %487 = math.exp %486 : vector<12x16xf32>
    %cst_210 = arith.constant dense<0.000000e+00> : vector<12xf32>
    %488 = vector.multi_reduction <add>, %487, %cst_210 [1] : vector<12x16xf32> to vector<12xf32>
    %489 = vector.shape_cast %488 : vector<12xf32> to vector<12x1xf32>
    %490 = tpu.reciprocal %489 {approx = true} : vector<12x1xf32> -> vector<12x1xf32>
    %491 = vector.broadcast %490 : vector<12x1xf32> to vector<12x16xf32>
    %492 = arith.mulf %487, %491 : vector<12x16xf32>
    %cst_211 = arith.constant dense<0.000000e+00> : vector<12x8xf32>
    %493 = tpu.matmul %492, %480, %cst_211 {dimension_numbers = #tpu.dot_dimension_numbers<[1], [0], [0], [1], [0, 0, 1, 1], [], []>} : vector<12x16xf32>, vector<16x8xf32>, vector<12x8xf32> -> vector<12x8xf32>
    %494 = vector.extract_strided_slice %459 {offsets = [8, 0], sizes = [8, 32], strides = [1, 1]} : vector<32x32xf32> to vector<8x32xf32>
    %cst_212 = arith.constant dense<0.000000e+00> : vector<12x32xf32>
    %495 = tpu.matmul %493, %494, %cst_212 {dimension_numbers = #tpu.dot_dimension_numbers<[1], [0], [0], [1], [0, 0, 1, 1], [], []>} : vector<12x8xf32>, vector<8x32xf32>, vector<12x32xf32> -> vector<12x32xf32>
    %496 = arith.addf %477, %495 : vector<12x32xf32>
    %497 = vector.extract_strided_slice %450 {offsets = [0, 16], sizes = [12, 8], strides = [1, 1]} : vector<12x32xf32> to vector<12x8xf32>
    %498 = vector.extract_strided_slice %456 {offsets = [0, 16], sizes = [16, 8], strides = [1, 1]} : vector<16x32xf32> to vector<16x8xf32>
    %499 = vector.extract_strided_slice %457 {offsets = [0, 16], sizes = [16, 8], strides = [1, 1]} : vector<16x32xf32> to vector<16x8xf32>
    %cst_213 = arith.constant dense<0.000000e+00> : vector<12x16xf32>
    %500 = tpu.matmul %497, %498, %cst_213 {dimension_numbers = #tpu.dot_dimension_numbers<[1], [1], [0], [0], [0, 0, 1, 0], [], []>} : vector<12x8xf32>, vector<16x8xf32>, vector<12x16xf32> -> vector<12x16xf32>
    %501 = arith.addf %500, %441 : vector<12x16xf32>
    %cst_214 = arith.constant dense<0xFF800000> : vector<12xf32>
    %502 = vector.multi_reduction <maximumf>, %501, %cst_214 [1] : vector<12x16xf32> to vector<12xf32>
    %503 = vector.shape_cast %502 : vector<12xf32> to vector<12x1xf32>
    %504 = vector.broadcast %503 : vector<12x1xf32> to vector<12x16xf32>
    %505 = arith.subf %501, %504 : vector<12x16xf32>
    %506 = math.exp %505 : vector<12x16xf32>
    %cst_215 = arith.constant dense<0.000000e+00> : vector<12xf32>
    %507 = vector.multi_reduction <add>, %506, %cst_215 [1] : vector<12x16xf32> to vector<12xf32>
    %508 = vector.shape_cast %507 : vector<12xf32> to vector<12x1xf32>
    %509 = tpu.reciprocal %508 {approx = true} : vector<12x1xf32> -> vector<12x1xf32>
    %510 = vector.broadcast %509 : vector<12x1xf32> to vector<12x16xf32>
    %511 = arith.mulf %506, %510 : vector<12x16xf32>
    %cst_216 = arith.constant dense<0.000000e+00> : vector<12x8xf32>
    %512 = tpu.matmul %511, %499, %cst_216 {dimension_numbers = #tpu.dot_dimension_numbers<[1], [0], [0], [1], [0, 0, 1, 1], [], []>} : vector<12x16xf32>, vector<16x8xf32>, vector<12x8xf32> -> vector<12x8xf32>
    %513 = vector.extract_strided_slice %459 {offsets = [16, 0], sizes = [8, 32], strides = [1, 1]} : vector<32x32xf32> to vector<8x32xf32>
    %cst_217 = arith.constant dense<0.000000e+00> : vector<12x32xf32>
    %514 = tpu.matmul %512, %513, %cst_217 {dimension_numbers = #tpu.dot_dimension_numbers<[1], [0], [0], [1], [0, 0, 1, 1], [], []>} : vector<12x8xf32>, vector<8x32xf32>, vector<12x32xf32> -> vector<12x32xf32>
    %515 = arith.addf %496, %514 : vector<12x32xf32>
    %516 = vector.extract_strided_slice %450 {offsets = [0, 24], sizes = [12, 8], strides = [1, 1]} : vector<12x32xf32> to vector<12x8xf32>
    %517 = vector.extract_strided_slice %456 {offsets = [0, 24], sizes = [16, 8], strides = [1, 1]} : vector<16x32xf32> to vector<16x8xf32>
    %518 = vector.extract_strided_slice %457 {offsets = [0, 24], sizes = [16, 8], strides = [1, 1]} : vector<16x32xf32> to vector<16x8xf32>
    %cst_218 = arith.constant dense<0.000000e+00> : vector<12x16xf32>
    %519 = tpu.matmul %516, %517, %cst_218 {dimension_numbers = #tpu.dot_dimension_numbers<[1], [1], [0], [0], [0, 0, 1, 0], [], []>} : vector<12x8xf32>, vector<16x8xf32>, vector<12x16xf32> -> vector<12x16xf32>
    %520 = arith.addf %519, %441 : vector<12x16xf32>
    %cst_219 = arith.constant dense<0xFF800000> : vector<12xf32>
    %521 = vector.multi_reduction <maximumf>, %520, %cst_219 [1] : vector<12x16xf32> to vector<12xf32>
    %522 = vector.shape_cast %521 : vector<12xf32> to vector<12x1xf32>
    %523 = vector.broadcast %522 : vector<12x1xf32> to vector<12x16xf32>
    %524 = arith.subf %520, %523 : vector<12x16xf32>
    %525 = math.exp %524 : vector<12x16xf32>
    %cst_220 = arith.constant dense<0.000000e+00> : vector<12xf32>
    %526 = vector.multi_reduction <add>, %525, %cst_220 [1] : vector<12x16xf32> to vector<12xf32>
    %527 = vector.shape_cast %526 : vector<12xf32> to vector<12x1xf32>
    %528 = tpu.reciprocal %527 {approx = true} : vector<12x1xf32> -> vector<12x1xf32>
    %529 = vector.broadcast %528 : vector<12x1xf32> to vector<12x16xf32>
    %530 = arith.mulf %525, %529 : vector<12x16xf32>
    %cst_221 = arith.constant dense<0.000000e+00> : vector<12x8xf32>
    %531 = tpu.matmul %530, %518, %cst_221 {dimension_numbers = #tpu.dot_dimension_numbers<[1], [0], [0], [1], [0, 0, 1, 1], [], []>} : vector<12x16xf32>, vector<16x8xf32>, vector<12x8xf32> -> vector<12x8xf32>
    %532 = vector.extract_strided_slice %459 {offsets = [24, 0], sizes = [8, 32], strides = [1, 1]} : vector<32x32xf32> to vector<8x32xf32>
    %cst_222 = arith.constant dense<0.000000e+00> : vector<12x32xf32>
    %533 = tpu.matmul %531, %532, %cst_222 {dimension_numbers = #tpu.dot_dimension_numbers<[1], [0], [0], [1], [0, 0, 1, 1], [], []>} : vector<12x8xf32>, vector<8x32xf32>, vector<12x32xf32> -> vector<12x32xf32>
    %534 = arith.addf %515, %533 : vector<12x32xf32>
    %c3_223 = arith.constant 3 : index
    %c0_224 = arith.constant 0 : index
    %c0_225 = arith.constant 0 : index
    %535 = vector.load %arg9[%c3_223, %c0_224, %c0_225] : memref<4x1x32xf32, #tpu.memory_space<vmem>>, vector<1x1x32xf32>
    %536 = vector.shape_cast %535 : vector<1x1x32xf32> to vector<1x32xf32>
    %537 = vector.broadcast %536 : vector<1x32xf32> to vector<12x32xf32>
    %538 = arith.addf %534, %537 : vector<12x32xf32>
    %539 = arith.addf %317, %538 : vector<12x32xf32>
    %c3_226 = arith.constant 3 : index
    %c0_227 = arith.constant 0 : index
    %c0_228 = arith.constant 0 : index
    %540 = vector.load %arg10[%c3_226, %c0_227, %c0_228] : memref<4x1x32xf32, #tpu.memory_space<vmem>>, vector<1x1x32xf32>
    %541 = vector.shape_cast %540 : vector<1x1x32xf32> to vector<1x32xf32>
    %c3_229 = arith.constant 3 : index
    %c0_230 = arith.constant 0 : index
    %c0_231 = arith.constant 0 : index
    %542 = vector.load %arg11[%c3_229, %c0_230, %c0_231] : memref<4x1x32xf32, #tpu.memory_space<vmem>>, vector<1x1x32xf32>
    %543 = vector.shape_cast %542 : vector<1x1x32xf32> to vector<1x32xf32>
    %cst_232 = arith.constant dense<0.000000e+00> : vector<12xf32>
    %544 = vector.multi_reduction <add>, %539, %cst_232 [1] : vector<12x32xf32> to vector<12xf32>
    %545 = vector.shape_cast %544 : vector<12xf32> to vector<12x1xf32>
    %cst_233 = arith.constant 3.200000e+01 : f32
    %546 = vector.broadcast %cst_233 : f32 to vector<12x1xf32>
    %547 = arith.divf %545, %546 : vector<12x1xf32>
    %548 = vector.broadcast %547 : vector<12x1xf32> to vector<12x32xf32>
    %549 = arith.subf %539, %548 : vector<12x32xf32>
    %550 = arith.mulf %549, %549 : vector<12x32xf32>
    %cst_234 = arith.constant dense<0.000000e+00> : vector<12xf32>
    %551 = vector.multi_reduction <add>, %550, %cst_234 [1] : vector<12x32xf32> to vector<12xf32>
    %552 = vector.shape_cast %551 : vector<12xf32> to vector<12x1xf32>
    %cst_235 = arith.constant 3.200000e+01 : f32
    %553 = vector.broadcast %cst_235 : f32 to vector<12x1xf32>
    %554 = arith.divf %552, %553 : vector<12x1xf32>
    %cst_236 = arith.constant 9.99999974E-6 : f32
    %555 = vector.broadcast %cst_236 : f32 to vector<12x1xf32>
    %556 = arith.addf %554, %555 : vector<12x1xf32>
    %557 = math.rsqrt %556 : vector<12x1xf32>
    %558 = vector.broadcast %557 : vector<12x1xf32> to vector<12x32xf32>
    %559 = arith.mulf %549, %558 : vector<12x32xf32>
    %560 = vector.broadcast %541 : vector<1x32xf32> to vector<12x32xf32>
    %561 = arith.mulf %559, %560 : vector<12x32xf32>
    %562 = vector.broadcast %543 : vector<1x32xf32> to vector<12x32xf32>
    %563 = arith.addf %561, %562 : vector<12x32xf32>
    %c2_237 = arith.constant 2 : index
    %c0_238 = arith.constant 0 : index
    %c0_239 = arith.constant 0 : index
    %564 = vector.load %arg12[%c2_237, %c0_238, %c0_239] : memref<4x32x64xf32, #tpu.memory_space<vmem>>, vector<1x32x64xf32>
    %565 = vector.shape_cast %564 : vector<1x32x64xf32> to vector<32x64xf32>
    %cst_240 = arith.constant dense<0.000000e+00> : vector<16x64xf32>
    %566 = tpu.matmul %440, %565, %cst_240 {dimension_numbers = #tpu.dot_dimension_numbers<[1], [0], [0], [1], [0, 0, 1, 1], [], []>} : vector<16x32xf32>, vector<32x64xf32>, vector<16x64xf32> -> vector<16x64xf32>
    %c2_241 = arith.constant 2 : index
    %c0_242 = arith.constant 0 : index
    %c0_243 = arith.constant 0 : index
    %567 = vector.load %arg13[%c2_241, %c0_242, %c0_243] : memref<4x1x64xf32, #tpu.memory_space<vmem>>, vector<1x1x64xf32>
    %568 = vector.shape_cast %567 : vector<1x1x64xf32> to vector<1x64xf32>
    %569 = vector.broadcast %568 : vector<1x64xf32> to vector<16x64xf32>
    %570 = arith.addf %566, %569 : vector<16x64xf32>
    %cst_244 = arith.constant 0.000000e+00 : f32
    %571 = vector.broadcast %cst_244 : f32 to vector<16x64xf32>
    %572 = arith.maximumf %570, %571 : vector<16x64xf32>
    %c2_245 = arith.constant 2 : index
    %c0_246 = arith.constant 0 : index
    %c0_247 = arith.constant 0 : index
    %573 = vector.load %arg14[%c2_245, %c0_246, %c0_247] : memref<4x64x32xf32, #tpu.memory_space<vmem>>, vector<1x64x32xf32>
    %574 = vector.shape_cast %573 : vector<1x64x32xf32> to vector<64x32xf32>
    %cst_248 = arith.constant dense<0.000000e+00> : vector<16x32xf32>
    %575 = tpu.matmul %572, %574, %cst_248 {dimension_numbers = #tpu.dot_dimension_numbers<[1], [0], [0], [1], [0, 0, 1, 1], [], []>} : vector<16x64xf32>, vector<64x32xf32>, vector<16x32xf32> -> vector<16x32xf32>
    %c2_249 = arith.constant 2 : index
    %c0_250 = arith.constant 0 : index
    %c0_251 = arith.constant 0 : index
    %576 = vector.load %arg15[%c2_249, %c0_250, %c0_251] : memref<4x1x32xf32, #tpu.memory_space<vmem>>, vector<1x1x32xf32>
    %577 = vector.shape_cast %576 : vector<1x1x32xf32> to vector<1x32xf32>
    %578 = vector.broadcast %577 : vector<1x32xf32> to vector<16x32xf32>
    %579 = arith.addf %575, %578 : vector<16x32xf32>
    %580 = arith.addf %440, %579 : vector<16x32xf32>
    %c2_252 = arith.constant 2 : index
    %c0_253 = arith.constant 0 : index
    %c0_254 = arith.constant 0 : index
    %581 = vector.load %arg16[%c2_252, %c0_253, %c0_254] : memref<4x1x32xf32, #tpu.memory_space<vmem>>, vector<1x1x32xf32>
    %582 = vector.shape_cast %581 : vector<1x1x32xf32> to vector<1x32xf32>
    %c2_255 = arith.constant 2 : index
    %c0_256 = arith.constant 0 : index
    %c0_257 = arith.constant 0 : index
    %583 = vector.load %arg17[%c2_255, %c0_256, %c0_257] : memref<4x1x32xf32, #tpu.memory_space<vmem>>, vector<1x1x32xf32>
    %584 = vector.shape_cast %583 : vector<1x1x32xf32> to vector<1x32xf32>
    %cst_258 = arith.constant dense<0.000000e+00> : vector<16xf32>
    %585 = vector.multi_reduction <add>, %580, %cst_258 [1] : vector<16x32xf32> to vector<16xf32>
    %586 = vector.shape_cast %585 : vector<16xf32> to vector<16x1xf32>
    %cst_259 = arith.constant 3.200000e+01 : f32
    %587 = vector.broadcast %cst_259 : f32 to vector<16x1xf32>
    %588 = arith.divf %586, %587 : vector<16x1xf32>
    %589 = vector.broadcast %588 : vector<16x1xf32> to vector<16x32xf32>
    %590 = arith.subf %580, %589 : vector<16x32xf32>
    %591 = arith.mulf %590, %590 : vector<16x32xf32>
    %cst_260 = arith.constant dense<0.000000e+00> : vector<16xf32>
    %592 = vector.multi_reduction <add>, %591, %cst_260 [1] : vector<16x32xf32> to vector<16xf32>
    %593 = vector.shape_cast %592 : vector<16xf32> to vector<16x1xf32>
    %cst_261 = arith.constant 3.200000e+01 : f32
    %594 = vector.broadcast %cst_261 : f32 to vector<16x1xf32>
    %595 = arith.divf %593, %594 : vector<16x1xf32>
    %cst_262 = arith.constant 9.99999974E-6 : f32
    %596 = vector.broadcast %cst_262 : f32 to vector<16x1xf32>
    %597 = arith.addf %595, %596 : vector<16x1xf32>
    %598 = math.rsqrt %597 : vector<16x1xf32>
    %599 = vector.broadcast %598 : vector<16x1xf32> to vector<16x32xf32>
    %600 = arith.mulf %590, %599 : vector<16x32xf32>
    %601 = vector.broadcast %582 : vector<1x32xf32> to vector<16x32xf32>
    %602 = arith.mulf %600, %601 : vector<16x32xf32>
    %603 = vector.broadcast %584 : vector<1x32xf32> to vector<16x32xf32>
    %604 = arith.addf %602, %603 : vector<16x32xf32>
    %c3_263 = arith.constant 3 : index
    %c0_264 = arith.constant 0 : index
    %c0_265 = arith.constant 0 : index
    %605 = vector.load %arg12[%c3_263, %c0_264, %c0_265] : memref<4x32x64xf32, #tpu.memory_space<vmem>>, vector<1x32x64xf32>
    %606 = vector.shape_cast %605 : vector<1x32x64xf32> to vector<32x64xf32>
    %cst_266 = arith.constant dense<0.000000e+00> : vector<12x64xf32>
    %607 = tpu.matmul %563, %606, %cst_266 {dimension_numbers = #tpu.dot_dimension_numbers<[1], [0], [0], [1], [0, 0, 1, 1], [], []>} : vector<12x32xf32>, vector<32x64xf32>, vector<12x64xf32> -> vector<12x64xf32>
    %c3_267 = arith.constant 3 : index
    %c0_268 = arith.constant 0 : index
    %c0_269 = arith.constant 0 : index
    %608 = vector.load %arg13[%c3_267, %c0_268, %c0_269] : memref<4x1x64xf32, #tpu.memory_space<vmem>>, vector<1x1x64xf32>
    %609 = vector.shape_cast %608 : vector<1x1x64xf32> to vector<1x64xf32>
    %610 = vector.broadcast %609 : vector<1x64xf32> to vector<12x64xf32>
    %611 = arith.addf %607, %610 : vector<12x64xf32>
    %cst_270 = arith.constant 0.000000e+00 : f32
    %612 = vector.broadcast %cst_270 : f32 to vector<12x64xf32>
    %613 = arith.maximumf %611, %612 : vector<12x64xf32>
    %c3_271 = arith.constant 3 : index
    %c0_272 = arith.constant 0 : index
    %c0_273 = arith.constant 0 : index
    %614 = vector.load %arg14[%c3_271, %c0_272, %c0_273] : memref<4x64x32xf32, #tpu.memory_space<vmem>>, vector<1x64x32xf32>
    %615 = vector.shape_cast %614 : vector<1x64x32xf32> to vector<64x32xf32>
    %cst_274 = arith.constant dense<0.000000e+00> : vector<12x32xf32>
    %616 = tpu.matmul %613, %615, %cst_274 {dimension_numbers = #tpu.dot_dimension_numbers<[1], [0], [0], [1], [0, 0, 1, 1], [], []>} : vector<12x64xf32>, vector<64x32xf32>, vector<12x32xf32> -> vector<12x32xf32>
    %c3_275 = arith.constant 3 : index
    %c0_276 = arith.constant 0 : index
    %c0_277 = arith.constant 0 : index
    %617 = vector.load %arg15[%c3_275, %c0_276, %c0_277] : memref<4x1x32xf32, #tpu.memory_space<vmem>>, vector<1x1x32xf32>
    %618 = vector.shape_cast %617 : vector<1x1x32xf32> to vector<1x32xf32>
    %619 = vector.broadcast %618 : vector<1x32xf32> to vector<12x32xf32>
    %620 = arith.addf %616, %619 : vector<12x32xf32>
    %621 = arith.addf %563, %620 : vector<12x32xf32>
    %c3_278 = arith.constant 3 : index
    %c0_279 = arith.constant 0 : index
    %c0_280 = arith.constant 0 : index
    %622 = vector.load %arg16[%c3_278, %c0_279, %c0_280] : memref<4x1x32xf32, #tpu.memory_space<vmem>>, vector<1x1x32xf32>
    %623 = vector.shape_cast %622 : vector<1x1x32xf32> to vector<1x32xf32>
    %c3_281 = arith.constant 3 : index
    %c0_282 = arith.constant 0 : index
    %c0_283 = arith.constant 0 : index
    %624 = vector.load %arg17[%c3_281, %c0_282, %c0_283] : memref<4x1x32xf32, #tpu.memory_space<vmem>>, vector<1x1x32xf32>
    %625 = vector.shape_cast %624 : vector<1x1x32xf32> to vector<1x32xf32>
    %cst_284 = arith.constant dense<0.000000e+00> : vector<12xf32>
    %626 = vector.multi_reduction <add>, %621, %cst_284 [1] : vector<12x32xf32> to vector<12xf32>
    %627 = vector.shape_cast %626 : vector<12xf32> to vector<12x1xf32>
    %cst_285 = arith.constant 3.200000e+01 : f32
    %628 = vector.broadcast %cst_285 : f32 to vector<12x1xf32>
    %629 = arith.divf %627, %628 : vector<12x1xf32>
    %630 = vector.broadcast %629 : vector<12x1xf32> to vector<12x32xf32>
    %631 = arith.subf %621, %630 : vector<12x32xf32>
    %632 = arith.mulf %631, %631 : vector<12x32xf32>
    %cst_286 = arith.constant dense<0.000000e+00> : vector<12xf32>
    %633 = vector.multi_reduction <add>, %632, %cst_286 [1] : vector<12x32xf32> to vector<12xf32>
    %634 = vector.shape_cast %633 : vector<12xf32> to vector<12x1xf32>
    %cst_287 = arith.constant 3.200000e+01 : f32
    %635 = vector.broadcast %cst_287 : f32 to vector<12x1xf32>
    %636 = arith.divf %634, %635 : vector<12x1xf32>
    %cst_288 = arith.constant 9.99999974E-6 : f32
    %637 = vector.broadcast %cst_288 : f32 to vector<12x1xf32>
    %638 = arith.addf %636, %637 : vector<12x1xf32>
    %639 = math.rsqrt %638 : vector<12x1xf32>
    %640 = vector.broadcast %639 : vector<12x1xf32> to vector<12x32xf32>
    %641 = arith.mulf %631, %640 : vector<12x32xf32>
    %642 = vector.broadcast %623 : vector<1x32xf32> to vector<12x32xf32>
    %643 = arith.mulf %641, %642 : vector<12x32xf32>
    %644 = vector.broadcast %625 : vector<1x32xf32> to vector<12x32xf32>
    %645 = arith.addf %643, %644 : vector<12x32xf32>
    %c0_289 = arith.constant 0 : index
    %c0_290 = arith.constant 0 : index
    %646 = vector.load %arg18[%c0_289, %c0_290] : memref<16x32xf32, #tpu.memory_space<vmem>>, vector<16x32xf32>
    tpu.vector_store %arg18[%c0_289, %c0_290], %604 {strides = array<i32>} : memref<16x32xf32, #tpu.memory_space<vmem>>, vector<16x32xf32>,
    %c0_291 = arith.constant 0 : index
    %c0_292 = arith.constant 0 : index
    %647 = vector.load %arg19[%c0_291, %c0_292] : memref<12x32xf32, #tpu.memory_space<vmem>>, vector<12x32xf32>
    tpu.vector_store %arg19[%c0_291, %c0_292], %645 {strides = array<i32>} : memref<12x32xf32, #tpu.memory_space<vmem>>, vector<12x32xf32>,
    return
  }
}

</mosaic_0001>

<bundles_post_ra>
// kernel: eq.36
= control target key start
LH: loop header
LB: loop body
LE: loop exit
PB: predicated region body
PF: predicated region fallthrough
CT: control target
= control target key end

     0   :  { %vm7_vm0 = vcmask 48128   ;;  %vm13_vm1 = vcmask 97328   ;;  %s39_s0 = inlined_call_operand.vmem [shape: s32[2,6], index: 0, kind: input, shape index: {}]   ;;  %s40_s1 = inlined_call_operand.vmem [shape: s32[12], index: 1, kind: output, shape index: {}]  }
   0x1   :  { %v4_v0 = vld [vmem:[%s39_s0] sm:$0x3]  ;;  %s22_s0 = smov 6  }
   0x2   :  { %5 = vst [vmem:[#allocation1] sm:$0x3] %v4_v0 }
   0x9   :  { %v10_v1 = vld [vmem:[#allocation1 + $0x1] sm:$0x1]   ;;  %v6_v2 = vld [vmem:[#allocation1] sm:$0x1]  }
   0xa   :  { %11 = vrot.lane.b32.xlu0 %v10_v1, %s22_s0  ;;  %8 = vst.msk [vmem:[#allocation0] sm:$0x1] %vm7_vm0, %v6_v2  }
  0x7c   :  { %v12_v3 = vpop.permute.xlu0 %11  }
  0x7d   :  { %14 = vst.msk [vmem:[#allocation0] sm:$0x1] %vm13_vm1, %v12_v3  }
  0x84   :  { %v18_v4 = vld [vmem:[#allocation0] sm:$0x1] }
  0x85   :  { %20 = vst [vmem:[%s40_s1] sm:$0x1] %v18_v4 }

// kernel: eq.29
= control target key start
LH: loop header
LB: loop body
LE: loop exit
PB: predicated region body
PF: predicated region fallthrough
CT: control target
= control target key end

     0   :  { %vm7_vm0 = vcmask 64512   ;;  %vm13_vm1 = vcmask 130112   ;;  %s39_s0 = inlined_call_operand.vmem [shape: s32[2,8], index: 0, kind: input, shape index: {}]   ;;  %s40_s1 = inlined_call_operand.vmem [shape: s32[16], index: 1, kind: output, shape index: {}]  }
   0x1   :  { %v4_v0 = vld [vmem:[%s39_s0] sm:$0x3]  ;;  %s22_s0 = smov 8  }
   0x2   :  { %5 = vst [vmem:[#allocation1] sm:$0x3] %v4_v0 }
   0x9   :  { %v10_v1 = vld [vmem:[#allocation1 + $0x1] sm:$0x1]   ;;  %v6_v2 = vld [vmem:[#allocation1] sm:$0x1]  }
   0xa   :  { %11 = vrot.lane.b32.xlu0 %v10_v1, %s22_s0  ;;  %8 = vst.msk [vmem:[#allocation0] sm:$0x1] %vm7_vm0, %v6_v2  }
  0x7c   :  { %v12_v3 = vpop.permute.xlu0 %11  }
  0x7d   :  { %14 = vst.msk [vmem:[#allocation0] sm:$0x1] %vm13_vm1, %v12_v3  }
  0x84   :  { %v18_v4 = vld [vmem:[#allocation0] sm:$0x1] }
  0x85   :  { %20 = vst [vmem:[%s40_s1] sm:$0x1] %v18_v4 }

// kernel: _lambda_.1
= control target key start
LH: loop header
LB: loop body
LE: loop exit
PB: predicated region body
PF: predicated region fallthrough
CT: control target
= control target key end

     0   :  { %s9177_s0 = inlined_call_operand.vmem [shape: f32[16,32], index: 0, kind: input, shape index: {}]   ;;  %s9178_s1 = inlined_call_operand.vmem [shape: f32[12,32], index: 1, kind: input, shape index: {}]   ;;  %s9179_s2 = inlined_call_operand.vmem [shape: f32[16,16], index: 2, kind: input, shape index: {}]   ;;  %s9180_s3 = inlined_call_operand.vmem [shape: f32[12,12], index: 3, kind: input, shape index: {}]   ;;  %s9181_s4 = inlined_call_operand.vmem [shape: f32[16,12], index: 4, kind: input, shape index: {}]   ;;  %s9182_s5 = inlined_call_operand.vmem [shape: f32[12,16], index: 5, kind: input, shape index: {}]   ;;  %s9183_s6 = inlined_call_operand.hbm [shape: f32[4,32,96], index: 6, kind: input, shape index: {}]   ;;  %s9184_s7 = inlined_call_operand.vmem [shape: f32[4,1,96], index: 7, kind: input, shape index: {}]   ;;  %s9185_s8 = inlined_call_operand.hbm [shape: f32[4,32,32], index: 8, kind: input, shape index: {}]   ;;  %s9186_s9 = inlined_call_operand.vmem [shape: f32[4,1,32], index: 9, kind: input, shape index: {}]   ;;  %s9187_s10 = inlined_call_operand.vmem [shape: f32[4,1,32], index: 10, kind: input, shape index: {}, may-alias: {10,16}]   ;;  %s9188_s11 = inlined_call_operand.vmem [shape: f32[4,1,32], index: 11, kind: input, shape index: {}, may-alias: {11,17}]   ;;  %s9189_s12 = inlined_call_operand.vmem [shape: f32[4,32,64], index: 12, kind: input, shape index: {}]   ;;  %s9190_s13 = inlined_call_operand.vmem [shape: f32[4,1,64], index: 13, kind: input, shape index: {}]   ;;  %s9191_s14 = inlined_call_operand.hbm [shape: f32[4,64,32], index: 14, kind: input, shape index: {}]   ;;  %s9192_s15 = inlined_call_operand.vmem [shape: f32[4,1,32], index: 15, kind: input, shape index: {}]   ;;  %s9193_s16 = inlined_call_operand.vmem [shape: f32[4,1,32], index: 16, kind: input, shape index: {}, may-alias: {10,16}]   ;;  %s9194_s17 = inlined_call_operand.vmem [shape: f32[4,1,32], index: 17, kind: input, shape index: {}, may-alias: {11,17}]   ;;  %s9195_s18 = inlined_call_operand.vmem [shape: f32[16,32], index: 18, kind: output, shape index: {0}]   ;;  %s9196_s19 = inlined_call_operand.vmem [shape: f32[12,32], index: 19, kind: output, shape index: {1}]  }
   0x1   :  { %9202 = sst [smem:[#allocation9_spill]] %s9177_s0 }
   0x2   :  { %9203 = sst [smem:[#allocation10_spill]] %s9178_s1 }
   0x3   :  { %9204 = sst [smem:[#allocation11_spill]] %s9179_s2 }
   0x4   :  { %9205 = sst [smem:[#allocation12_spill]] %s9180_s3 }
   0x5   :  { %25 = vsyncpa [#allocation3], 0 }
   0x6   :  { %26 = vsyncpa [#allocation5], 0  ;;  %s8177_s0 = smov [#allocation4]   ;;  %s8178_s20 = smov [#allocation2]  }
   0x7   :  { %s58_s30 = sshll.u32 %s8177_s0, 4  ;;  %s44_s21 = sshll.u32 %s8178_s20, 4  ;;  %s59_s30 = int_to_ptr.vmem [resolvable:$true] %s58_s30  ;;  %s8294_s21 = int_to_ptr.vmem [resolvable:$true] %s44_s21 }
   0x8   :  { %s8107_s2 = scalar_lea.hbm %s9185_s8, 2048 }
   0x9   :  { %p8108_p0 = scmp.ne.s32.totalorder %s9185_s8, %s8107_s2  ;;  %p8111_p1 = scmp.lt.u32.totalorder %s8107_s2, %s9185_s8 }
   0xb   :  { %p8113_p2 = pnand %p8111_p1, %p8108_p0 }
   0xd   :  { %8116 = shalt.err (!%p8113_p2)
}
   0xe   :  { %s8117_s26 = scalar_lea.vmem %s59_s30, 2048  ;;  %p8122_p4 = scmp.lt.s32.totalorder %s59_s30, %s59_s30 }
   0xf   :  { %p8118_p3 = scmp.ne.s32.totalorder %s59_s30, %s8117_s26  ;;  %p8123_p5 = scmp.lt.s32.totalorder %s8117_s26, %s8117_s26 }
  0x11   :  { %p8124_p6 = por %p8123_p5, %p8122_p4 }
  0x13   :  { %p8125_p7 = pnand %p8124_p6, %p8118_p3 }
  0x15   :  { %8128 = shalt.err (!%p8125_p7)
}
  0x16   :  { %s8179_s27 = smov 128   ;;  %s8180_s28 = smov 8  }
  0x17   :  { %64 = dma.hbm_to_vmem [thread:$0]  %s9185_s8, 2048, %s59_s30, [#allocation5], %s8179_s27, %s8179_s27, %s8180_s28  }
  0x18   :  { %s8129_s22 = scalar_lea.hbm %s9183_s6, 2048 }
  0x19   :  { %p8130_p8 = scmp.ne.s32.totalorder %s9183_s6, %s8129_s22  ;;  %p8133_p9 = scmp.lt.u32.totalorder %s8129_s22, %s9183_s6 }
  0x1b   :  { %p8135_p10 = pnand %p8133_p9, %p8130_p8 }
  0x1d   :  { %8138 = shalt.err (!%p8135_p10)
}
  0x1e   :  { %s8139_s3 = scalar_lea.vmem %s8294_s21, 2048  ;;  %p8144_p12 = scmp.lt.s32.totalorder %s8294_s21, %s8294_s21 }
  0x1f   :  { %p8140_p11 = scmp.ne.s32.totalorder %s8294_s21, %s8139_s3  ;;  %p8145_p13 = scmp.lt.s32.totalorder %s8139_s3, %s8139_s3 }
  0x21   :  { %p8146_p0 = por %p8145_p13, %p8144_p12 }
  0x23   :  { %p8147_p1 = pnand %p8146_p0, %p8140_p11 }
  0x25   :  { %8150 = shalt.err (!%p8147_p1)
}
  0x26   :  { %50 = dma.hbm_to_vmem [thread:$0]  %s9183_s6, 2048, %s8294_s21, [#allocation3], %s8179_s27, %s8179_s27, %s8180_s28  }
  0x27   :  { %s8181_s26 = smov [#allocation6]   ;;  %s8151_s1 = scalar_lea.hbm %s9191_s14, 4096 }
  0x28   :  { %s80_s29 = sshll.u32 %s8181_s26, 4  ;;  %p8152_p2 = scmp.ne.s32.totalorder %s9191_s14, %s8151_s1  ;;  %s81_s29 = int_to_ptr.vmem [resolvable:$true] %s80_s29 }
  0x29   :  { %p8155_p3 = scmp.lt.u32.totalorder %s8151_s1, %s9191_s14 }
  0x2b   :  { %p8157_p4 = pnand %p8155_p3, %p8152_p2 }
  0x2d   :  { %8160 = shalt.err (!%p8157_p4)
}
  0x2e   :  { %s8161_s25 = scalar_lea.vmem %s81_s29, 4096  ;;  %p8166_p6 = scmp.lt.s32.totalorder %s81_s29, %s81_s29 }
  0x2f   :  { %p8162_p5 = scmp.ne.s32.totalorder %s81_s29, %s8161_s25  ;;  %p8167_p7 = scmp.lt.s32.totalorder %s8161_s25, %s8161_s25 }
  0x31   :  { %p8168_p8 = por %p8167_p7, %p8166_p6 }
  0x33   :  { %p8169_p9 = pnand %p8168_p8, %p8162_p5 }
  0x35   :  { %8172 = shalt.err (!%p8169_p9)
}
  0x36   :  { %86 = dma.hbm_to_vmem [thread:$0]  %s9191_s14, 4096, %s81_s29, [#allocation5], %s8179_s27, %s8179_s27, %s8180_s28  }
  0x37   :  { %8173 = dma.done.wait [#allocation3], 2048  }
  0x38   :  { %8174 = vsyncadd [#allocation3], 4294965248 }
  0x39   :  { %8175 = dma.done.wait [#allocation5], 6144  }
  0x3a   :  { %8176 = vsyncadd [#allocation5], 4294961152  ;;  %vm119_vm0 = vcmask 261120   ;;  %v108_v0 = vld [vmem:[#allocation2] sm:$0xff]  ;;  %v109_v1 = vld [vmem:[#allocation2 + $0x8] sm:$0xff]  ;;  %s9206_s30 = sld [smem:[#allocation9_spill]] }
  0x3b   :  { %v110_v2 = vld [vmem:[#allocation2 + $0x10] sm:$0xff]  ;;  %v7416_v3 = vpack.c.bf16 %v109_v1, %v108_v0  ;;  %v111_v4 = vld [vmem:[#allocation2 + $0x18] sm:$0xff]  ;;  %v6418_v8 = vld [vmem:[%s9184_s7] ss:$0 sm:$0xff]  ;;  %vm211_vm1 = vcmask 64512   ;;  %s8182_s29 = smov 120  }
  0x3c   :  { %v7420_v6 = vpack.c.bf16 %v111_v4, %v110_v2  ;;  %s8183_s0 = smov 96   ;;  %s8184_s20 = smov 88   ;;  %vm8389_vm2 = vmpackc.low %vm211_vm1, %vm211_vm1  ;;  %vm295_vm3 = vcmask 130048   ;;  %vm1498_vm4 = vcmask 523264   ;;  %vm1820_vm5 = vcmask 93184  }
  0x3d   :  { %7417 = vmatprep.subr.bf16.mxu0 %v7416_v3  ;;  %s8185_s1 = smov 112   ;;  %s8186_s22 = smov 80   ;;  %vm1816_vm6 = vcmask 97280   ;;  %vm1851_vm7 = vcmask 1043456   ;;  %vm8193_vm8 = vmmov 1   ;;  %vm2879_vm10 = vcmask 257024  }
  0x3e   :  { %7419 = vmatpush3.bf16.msra.mxu0 %v7416_v3  ;;  %s9209_s24 = sld [smem:[#allocation11_spill]]  ;;  %s8187_s21 = smov 56   ;;  %vm8625_vm9 = vmpackc.low %vm1851_vm7, %vm8193_vm8  ;;  %vm4833_vm11 = vcmask 125952  }
  0x3f   :  { %7421 = vmatprep.subr.bf16.mxu0 %v7420_v6  ;;  %s8188_s3 = smov 72   ;;  %s8189_s8 = smov 64  }
  0x40   :  { %v8349_v5 = vld [vmem:[%s9206_s30] sm:$0xff]  ;;  %v8356_v7 = vld [vmem:[%s9206_s30 + $0x8] sm:$0xff]  ;;  %s8190_s30 = smov 104   ;;  %s8191_s14 = smov 48  }
  0x41   :  { %6934 = vmatprep.mubr.msk.f32.mxu0 %vm119_vm0, %v8349_v5  ;;  %s9201_s27 = smov 40   ;;  %s9210_s28 = sld [smem:[#allocation10_spill]] }
  0x42   :  { %7423 = vmatpush3.bf16.msra.mxu0 %v7420_v6  ;;  %s9211_s26 = sld [smem:[#allocation12_spill]] }
  0x44   :  { %v8414_v31 = vld [vmem:[%s9209_s24 + $0x8] sm:$0xff]  ;;  %v8419_v32 = vld [vmem:[%s9209_s24] sm:$0xff] }
  0x45   :  { %6935 = vmatmul.mubr.msk.f32.vlgmr.msra.gmra.mrb[0].mxu0 %vm119_vm0, %v8356_v7 }
 0x118   :  { %v6936_v9 = vpop.f32.mrb[0].mxu0 }
 0x119   :  { %v8363_v10 = vadd.f32 %v6936_v9, %v6418_v8  ;;  %v192_v11 = vpop.f32.mrb[1].mxu0 }
 0x11a   :  { %v8365_v12 = vadd.f32 %v6418_v8, %v192_v11 }
 0x11c   :  { %405 = vrot.lane.b32.xlu1 %v8365_v12, %s8182_s29  ;;  %6941 = vmatprep.mubr.msk.f32.mxu1 %vm211_vm1, %v8365_v12  ;;  %v8373_v13 = vpack.i.bf16 %v8363_v10, %v8365_v12 }
 0x11e   :  { %7778 = vrot.lane.b32.xlu0 %v8373_v13, %s8183_s0 }
 0x120   :  { %407 = vrot.lane.b32.xlu1 %v8363_v10, %s8182_s29 }
 0x122   :  { %7783 = vrot.lane.b32.xlu0 %v8373_v13, %s8184_s20 }
 0x124   :  { %767 = vrot.lane.b32.xlu1 %v8365_v12, %s8185_s1 }
 0x126   :  { %7788 = vrot.lane.b32.xlu0 %v8373_v13, %s8186_s22 }
 0x12a   :  { %769 = vrot.lane.b32.xlu0 %v8363_v10, %s8185_s1 }
 0x18e   :  { %v406_v24 = vpop.permute.xlu1 %405 }
 0x190   :  { %v7779_v14 = vpop.permute.xlu0 %7778 }
 0x191   :  { %v7781_v15 = vunpack.i.h.bf16 %v7779_v14  ;;  %v7780_v16 = vunpack.i.l.bf16 %v7779_v14 }
 0x192   :  { %v408_v28 = vpop.permute.xlu1 %407 }
 0x193   :  { %v7424_v18 = vpack.c.bf16 %v7781_v15, %v7780_v16 }
 0x194   :  { %v7784_v19 = vpop.permute.xlu0 %7783 }
 0x195   :  { %v7786_v20 = vunpack.i.h.bf16 %v7784_v19  ;;  %v7785_v21 = vunpack.i.l.bf16 %v7784_v19  ;;  %7426 = vmatprep.subr.msk.bf16.mxu1 %vm8389_vm2, %v7424_v18 }
 0x196   :  { %7429 = vmatpush3.bf16.xpose.msk.msra.mxu1 %vm8389_vm2, %v7424_v18  ;;  %v768_v29 = vpop.permute.xlu1 %767 }
 0x197   :  { %v7434_v22 = vpack.c.bf16 %v7786_v20, %v7785_v21 }
 0x198   :  { %v7789_v23 = vpop.permute.xlu0 %7788 }
 0x199   :  { %v7791_v25 = vunpack.i.h.bf16 %v7789_v23  ;;  %v7790_v26 = vunpack.i.l.bf16 %v7789_v23  ;;  %7436 = vmatprep.subr.msk.bf16.mxu1 %vm8389_vm2, %v7434_v22 }
 0x19b   :  { %v7444_v27 = vpack.c.bf16 %v7791_v25, %v7790_v26 }
 0x19c   :  { %v770_v30 = vpop.permute.xlu0 %769 }
 0x19d   :  { %6942 = vmatmul.mubr.msk.f32.vlgmr.msra.gmra.mrb[0].mxu1 %vm211_vm1, %v8363_v10 }
 0x19e   :  { %7439 = vmatpush3.bf16.xpose.msk.msra.mxu1 %vm8389_vm2, %v7434_v22  ;;  %6955 = vmatprep.mubr.msk.f32.mxu1 %vm211_vm1, %v406_v24 }
 0x19f   :  { %7446 = vmatprep.subr.msk.bf16.mxu1 %vm8389_vm2, %v7444_v27 }
 0x1a5   :  { %6956 = vmatmul.mubr.msk.f32.vlgmr.msra.gmra.mrb[2].mxu1 %vm211_vm1, %v408_v28 }
 0x1a6   :  { %7449 = vmatpush3.bf16.xpose.msk.msra.mxu1 %vm8389_vm2, %v7444_v27  ;;  %6979 = vmatprep.mubr.msk.f32.mxu1 %vm211_vm1, %v768_v29 }
 0x1ad   :  { %6980 = vmatmul.mubr.msk.f32.vlgmr.msra.gmra.mrb[4].mxu1 %vm211_vm1, %v770_v30 }
 0x270   :  { %v6943_v33 = vpop.f32.mrb[0].mxu1 }
 0x271   :  { %v292_v34 = vadd.f32 %v6943_v33, %v8414_v31  ;;  %v286_v35 = vpop.f32.mrb[1].mxu1 }
 0x272   :  { %v287_v36 = vadd.f32 %v286_v35, %v8419_v32 }
 0x273   :  { %v299_v37 = vsel %vm295_vm3, %v292_v34, -inf }
 0x274   :  { %300 = vmax.xlane.f32.xlu0 %v299_v37  ;;  %v296_v38 = vsel %vm295_vm3, %v287_v36, -inf }
 0x275   :  { %297 = vmax.xlane.f32.xlu1 %v296_v38 }
 0x278   :  { %v6957_v39 = vpop.f32.mrb[2].mxu1 }
 0x279   :  { %v493_v40 = vadd.f32 %v6957_v39, %v8414_v31  ;;  %v487_v41 = vpop.f32.mrb[3].mxu1 }
 0x27a   :  { %v488_v42 = vadd.f32 %v487_v41, %v8419_v32 }
 0x27b   :  { %v499_v43 = vsel %vm295_vm3, %v493_v40, -inf }
 0x27c   :  { %500 = vmax.xlane.f32.xlu1 %v499_v43  ;;  %v496_v44 = vsel %vm295_vm3, %v488_v42, -inf }
 0x27d   :  { %497 = vmax.xlane.f32.xlu0 %v496_v44 }
 0x280   :  { %v6981_v45 = vpop.f32.mrb[4].mxu1 }
 0x281   :  { %v849_v46 = vpop.f32.mrb[5].mxu1  ;;  %v855_v4 = vadd.f32 %v6981_v45, %v8414_v31 }
 0x282   :  { %v850_v3 = vadd.f32 %v849_v46, %v8419_v32 }
 0x283   :  { %v861_v8 = vsel %vm295_vm3, %v855_v4, -inf }
 0x284   :  { %v858_v6 = vsel %vm295_vm3, %v850_v3, -inf }
 0x301   :  { %v301_v47 = vpop.xlane.xlu0 %300 }
 0x302   :  { %v303_v48 = vsub.f32 %v292_v34, %v301_v47  ;;  %v298_v49 = vpop.xlane.xlu1 %297 }
 0x303   :  { %v302_v50 = vsub.f32 %v287_v36, %v298_v49  ;;  %v201_v49 = vld [vmem:[#allocation4] sm:$0xff] }
 0x304   :  { %v306_v51 = vmul.f32 1.442695, %v303_v48  ;;  %v202_v48 = vld [vmem:[#allocation4 + $0x8] sm:$0xff] }
 0x305   :  { %v304_v52 = vmul.f32 1.442695, %v302_v50 }
 0x306   :  { %7947 = vpow2.f32 %v306_v51 }
 0x307   :  { %7949 = vpow2.f32 %v304_v52 }
 0x309   :  { %v501_v53 = vpop.xlane.xlu1 %500 }
 0x30a   :  { %v503_v54 = vsub.f32 %v493_v40, %v501_v53  ;;  %v498_v55 = vpop.xlane.xlu0 %497 }
 0x30b   :  { %v502_v56 = vsub.f32 %v488_v42, %v498_v55 }
 0x30c   :  { %v506_v57 = vmul.f32 1.442695, %v503_v54 }
 0x30d   :  { %v504_v58 = vmul.f32 1.442695, %v502_v56 }
 0x30e   :  { %7951 = vpow2.f32 %v506_v57 }
 0x30f   :  { %7953 = vpow2.f32 %v504_v58 }
 0x310   :  { %v7948_v59 = vpop.eup %7947 }
 0x311   :  { %v7950_v60 = vpop.eup %7949  ;;  %v311_v61 = vsel %vm295_vm3, %v7948_v59, 0.0 }
 0x312   :  { %312 = vadd.xlane.f32.xlu1 %v311_v61  ;;  %v308_v62 = vsel %vm295_vm3, %v7950_v60, 0.0 }
 0x313   :  { %309 = vadd.xlane.f32.xlu0 %v308_v62 }
 0x318   :  { %v8431_v63 = vpop.eup %7951 }
 0x319   :  { %v7954_v0 = vpop.eup %7953  ;;  %v511_v1 = vsel %vm295_vm3, %v8431_v63, 0.0 }
 0x31a   :  { %512 = vadd.xlane.f32.xlu1 %v511_v1  ;;  %v508_v2 = vsel %vm295_vm3, %v7954_v0, 0.0 }
 0x31b   :  { %509 = vadd.xlane.f32.xlu0 %v508_v2 }
 0x32b   :  { %7798 = vrot.lane.b32.xlu1 %v8373_v13, %s8187_s21 }
 0x32f   :  { %7803 = vrot.lane.b32.xlu1 %v8373_v13, %s8188_s3 }
 0x331   :  { %7793 = vrot.lane.b32.xlu0 %v8373_v13, %s8189_s8 }
 0x333   :  { %1052 = vrot.lane.b32.xlu1 %v8363_v10, %s8190_s30 }
 0x335   :  { %1050 = vrot.lane.b32.xlu0 %v8365_v12, %s8190_s30 }
 0x354   :  { %859 = vmax.xlane.f32.xlu0 %v858_v6 }
 0x357   :  { %862 = vmax.xlane.f32.xlu1 %v861_v8 }
 0x368   :  { %7808 = vrot.lane.b32.xlu1 %v8373_v13, %s8191_s14 }
 0x36c   :  { %7813 = vrot.lane.b32.xlu1 %v8373_v13, %s9201_s27 }
 0x39f   :  { %v313_v10 = vpop.xlane.xlu1 %312 }
 0x3a0   :  { %v310_v9 = vpop.xlane.xlu0 %309 }
 0x3a1   :  { %7955 = vrcp.f32 %v310_v9 }
 0x3a2   :  { %7957 = vrcp.f32 %v313_v10 }
 0x3a7   :  { %v513_v11 = vpop.xlane.xlu1 %512 }
 0x3a8   :  { %v510_v12 = vpop.xlane.xlu0 %509 }
 0x3a9   :  { %7959 = vrcp.f32 %v510_v12 }
 0x3aa   :  { %7961 = vrcp.f32 %v513_v11 }
 0x3ab   :  { %v7956_v14 = vpop.eup %7955  ;;  %v7799_v15 = vpop.permute.xlu1 %7798 }
 0x3ac   :  { %v7794_v16 = vpop.permute.xlu0 %7793  ;;  %v316_v18 = vmul.f32 %v7956_v14, %v7950_v60  ;;  %v7801_v19 = vunpack.i.h.bf16 %v7799_v15  ;;  %v7800_v20 = vunpack.i.l.bf16 %v7799_v15  ;;  %v7958_v24 = vpop.eup %7957 }
 0x3ad   :  { %v7796_v21 = vunpack.i.h.bf16 %v7794_v16  ;;  %v7795_v22 = vunpack.i.l.bf16 %v7794_v16  ;;  %v317_v33 = vmul.f32 %v7958_v24, %v7948_v59  ;;  %v204_v24 = vld [vmem:[#allocation4 + $0x18] sm:$0xff] }
 0x3ae   :  { %6948 = vmatprep.mubr.msk.f32.mxu0 %vm295_vm3, %v316_v18  ;;  %v7440_v28 = vpack.c.bf16 %v7801_v19, %v7800_v20 }
 0x3af   :  { %v7804_v23 = vpop.permute.xlu1 %7803  ;;  %v7430_v13 = vpack.c.bf16 %v7796_v21, %v7795_v22 }
 0x3b0   :  { %v7806_v25 = vunpack.i.h.bf16 %v7804_v23  ;;  %v7805_v26 = vunpack.i.l.bf16 %v7804_v23  ;;  %v1051_v27 = vpop.permute.xlu0 %1050 }
 0x3b1   :  { %7431 = vmatprep.subr.bf16.mxu0 %v7430_v13  ;;  %6998 = vmatprep.mubr.msk.f32.mxu1 %vm211_vm1, %v1051_v27 }
 0x3b2   :  { %v7454_v29 = vpack.c.bf16 %v7806_v25, %v7805_v26  ;;  %7433 = vmatpush3.bf16.msra.mxu0 %v7430_v13 }
 0x3b3   :  { %v7960_v30 = vpop.eup %7959  ;;  %7441 = vmatprep.subr.bf16.mxu0 %v7440_v28  ;;  %v1053_v37 = vpop.permute.xlu1 %1052 }
 0x3b4   :  { %v7962_v34 = vpop.eup %7961  ;;  %7456 = vmatprep.subr.msk.bf16.mxu1 %vm8389_vm2, %v7454_v29  ;;  %v516_v35 = vmul.f32 %v7960_v30, %v7954_v0 }
 0x3b5   :  { %6949 = vmatmul.mubr.msk.f32.vlgmr.msra.gmra.mrb[2].mxu0 %vm295_vm3, %v317_v33  ;;  %7459 = vmatpush3.bf16.xpose.msk.msra.mxu1 %vm8389_vm2, %v7454_v29  ;;  %v517_v36 = vmul.f32 %v7962_v34, %v8431_v63 }
 0x3b6   :  { %7443 = vmatpush3.bf16.msra.mxu0 %v7440_v28  ;;  %6962 = vmatprep.mubr.msk.f32.mxu0 %vm295_vm3, %v516_v35  ;;  %v6453_v35 = vld [vmem:[%s9186_s9] ss:$0 sm:$0xff] }
 0x3b7   :  { %6965 = vmatprep.subr.mxu0 %v202_v48 }
 0x3b9   :  { %6963 = vmatmul.mubr.msk.f32.vlgmr.msra.gmra.mrb[4].mxu0 %vm295_vm3, %v517_v36 }
 0x3ba   :  { %6966 = vmatpush3.msra.mxu0 %v202_v48 }
 0x3bb   :  { %6970 = vmatprep.subr.mxu0 %v201_v49 }
 0x3bc   :  { %6999 = vmatmul.mubr.msk.f32.vlgmr.msra.gmra.mrb[6].mxu1 %vm211_vm1, %v1053_v37 }
 0x3e1   :  { %v860_v38 = vpop.xlane.xlu0 %859 }
 0x3e2   :  { %v864_v39 = vsub.f32 %v850_v3, %v860_v38 }
 0x3e4   :  { %v866_v40 = vmul.f32 1.442695, %v864_v39  ;;  %v863_v41 = vpop.xlane.xlu1 %862 }
 0x3e5   :  { %v865_v42 = vsub.f32 %v855_v4, %v863_v41  ;;  %v203_v4 = vld [vmem:[#allocation4 + $0x10] sm:$0xff] }
 0x3e6   :  { %7963 = vpow2.f32 %v866_v40 }
 0x3e7   :  { %v868_v43 = vmul.f32 1.442695, %v865_v42 }
 0x3e8   :  { %v7809_v51 = vpop.permute.xlu1 %7808 }
 0x3e9   :  { %7965 = vpow2.f32 %v868_v43  ;;  %v7811_v55 = vunpack.i.h.bf16 %v7809_v51  ;;  %v7810_v56 = vunpack.i.l.bf16 %v7809_v51 }
 0x3eb   :  { %v7450_v60 = vpack.c.bf16 %v7811_v55, %v7810_v56  ;;  %v1392_v56 = vld [vmem:[%s9189_s12 + $0x18] sm:$0xff] }
 0x3ec   :  { %v7814_v2 = vpop.permute.xlu1 %7813 }
 0x3ed   :  { %v7816_v6 = vunpack.i.h.bf16 %v7814_v2  ;;  %v7815_v8 = vunpack.i.l.bf16 %v7814_v2 }
 0x3f0   :  { %v7964_v44 = vpop.eup %7963 }
 0x3f1   :  { %v870_v45 = vsel %vm295_vm3, %v7964_v44, 0.0 }
 0x3f2   :  { %871 = vadd.xlane.f32.xlu0 %v870_v45 }
 0x3f3   :  { %v7966_v46 = vpop.eup %7965 }
 0x3f4   :  { %v873_v47 = vsel %vm295_vm3, %v7966_v46, 0.0 }
 0x3f6   :  { %874 = vadd.xlane.f32.xlu0 %v873_v47 }
 0x47f   :  { %v872_v50 = vpop.xlane.xlu0 %871 }
 0x480   :  { %7967 = vrcp.f32 %v872_v50 }
 0x483   :  { %v875_v53 = vpop.xlane.xlu0 %874 }
 0x484   :  { %7969 = vrcp.f32 %v875_v53  ;;  %v1390_v53 = vld [vmem:[%s9189_s12 + $0x8] sm:$0xff] }
 0x488   :  { %v6950_v52 = vpop.f32.mrb[2].mxu0 }
 0x489   :  { %v396_v54 = vpop.f32.mrb[3].mxu0 }
 0x48a   :  { %v7968_v1 = vpop.eup %7967 }
 0x48b   :  { %v878_v10 = vmul.f32 %v7968_v1, %v7964_v44  ;;  %v1486_v1 = vld [vmem:[#allocation6 + $0x18] sm:$0xff] }
 0x48c   :  { %v6964_v57 = vpop.f32.mrb[4].mxu0 }
 0x48d   :  { %v596_v58 = vpop.f32.mrb[5].mxu0 }
 0x48e   :  { %6967 = vmatprep.mubr.msk.f32.mxu0 %vm211_vm1, %v596_v58  ;;  %v7970_v3 = vpop.eup %7969  ;;  %v1629_v58 = vld [vmem:[#allocation2 + $0x20] sm:$0xff] }
 0x48f   :  { %6968 = vmatmul.mubr.msk.f32.vlgmr.msra.gmra.mrb[6].mxu0 %vm211_vm1, %v6964_v57  ;;  %v7000_v59 = vpop.f32.mrb[6].mxu1 }
 0x490   :  { %6971 = vmatpush3.msra.mxu0 %v201_v49  ;;  %6972 = vmatprep.mubr.msk.f32.mxu0 %vm211_vm1, %v396_v54  ;;  %v1132_v61 = vpop.f32.mrb[7].mxu1  ;;  %v1138_v63 = vadd.f32 %v7000_v59, %v8414_v31  ;;  %v879_v31 = vmul.f32 %v7970_v3, %v7966_v46  ;;  %v1391_v54 = vld [vmem:[%s9189_s12 + $0x10] sm:$0xff]  ;;  %v1630_v59 = vld [vmem:[#allocation2 + $0x28] sm:$0xff]  ;;  %v1487_v3 = vld [vmem:[#allocation6 + $0x20] sm:$0xff] }
 0x491   :  { %7451 = vmatprep.subr.bf16.mxu0 %v7450_v60  ;;  %v1133_v62 = vadd.f32 %v1132_v61, %v8419_v32  ;;  %v7460_v32 = vpack.c.bf16 %v7816_v6, %v7815_v8  ;;  %v7468_v57 = vpack.c.bf16 %v1392_v56, %v1391_v54  ;;  %v1483_v61 = vld [vmem:[#allocation6] sm:$0xff] }
 0x492   :  { %v1144_v9 = vsel %vm295_vm3, %v1138_v63, -inf }
 0x493   :  { %v1141_v0 = vsel %vm295_vm3, %v1133_v62, -inf }
 0x494   :  { %1142 = vmax.xlane.f32.xlu0 %v1141_v0 }
 0x497   :  { %6973 = vmatmul.mubr.msk.f32.vlgmr.msra.gmra.mrb[6].mxu0 %vm211_vm1, %v6950_v52 }
 0x498   :  { %7453 = vmatpush3.bf16.msra.mxu0 %v7450_v60  ;;  %1145 = vmax.xlane.f32.xlu0 %v1144_v9  ;;  %v7488_v60 = vpack.c.bf16 %v1630_v59, %v1629_v58 }
 0x499   :  { %6986 = vmatprep.mubr.msk.f32.mxu0 %vm295_vm3, %v878_v10  ;;  %6989 = vmatprep.subr.mxu0 %v203_v4 }
 0x49b   :  { %6987 = vmatmul.mubr.msk.f32.vlgmr.msra.gmra.mrb[8].mxu0 %vm295_vm3, %v879_v31 }
 0x49c   :  { %6990 = vmatpush3.msra.mxu0 %v203_v4  ;;  %v1488_v4 = vld [vmem:[#allocation6 + $0x28] sm:$0xff] }
 0x49d   :  { %7461 = vmatprep.subr.bf16.mxu0 %v7460_v32  ;;  %v7480_v6 = vpack.c.bf16 %v1488_v4, %v1487_v3 }
 0x521   :  { %v1143_v11 = vpop.xlane.xlu0 %1142 }
 0x522   :  { %v1147_v12 = vsub.f32 %v1133_v62, %v1143_v11  ;;  %v1484_v62 = vld [vmem:[#allocation6 + $0x8] sm:$0xff] }
 0x523   :  { %v7472_v0 = vpack.c.bf16 %v1484_v62, %v1483_v61  ;;  %v8591_v62 = vld [vmem:[%s9211_s26 + $0x8] sm:$0xf] }
 0x524   :  { %v1149_v14 = vmul.f32 1.442695, %v1147_v12 }
 0x525   :  { %v1146_v15 = vpop.xlane.xlu0 %1145 }
 0x526   :  { %7971 = vpow2.f32 %v1149_v14  ;;  %v1148_v16 = vsub.f32 %v1138_v63, %v1146_v15  ;;  %v1485_v63 = vld [vmem:[#allocation6 + $0x10] sm:$0xff]  ;;  %v6454_v14 = vld [vmem:[%s9187_s10] ss:$0 sm:$0xff] }
 0x527   :  { %v7476_v2 = vpack.c.bf16 %v1486_v1, %v1485_v63  ;;  %v8596_v63 = vld [vmem:[%s9211_s26] sm:$0xff] }
 0x528   :  { %v1151_v18 = vmul.f32 1.442695, %v1148_v16  ;;  %v6455_v16 = vld [vmem:[%s9188_s11] ss:$0 sm:$0xff] }
 0x52a   :  { %7973 = vpow2.f32 %v1151_v18 }
 0x530   :  { %v7972_v19 = vpop.eup %7971 }
 0x531   :  { %v1153_v20 = vsel %vm295_vm3, %v7972_v19, 0.0 }
 0x532   :  { %1154 = vadd.xlane.f32.xlu0 %v1153_v20 }
 0x534   :  { %v7974_v21 = vpop.eup %7973 }
 0x535   :  { %v1156_v22 = vsel %vm295_vm3, %v7974_v21, 0.0 }
 0x536   :  { %1157 = vadd.xlane.f32.xlu0 %v1156_v22  ;;  %v1631_v22 = vld [vmem:[#allocation2 + $0x30] sm:$0xff] }
 0x56e   :  { %v6988_v23 = vpop.f32.mrb[8].mxu0 }
 0x56f   :  { %v958_v13 = vpop.f32.mrb[9].mxu0 }
 0x570   :  { %6991 = vmatprep.mubr.msk.f32.mxu0 %vm211_vm1, %v958_v13 }
 0x571   :  { %6992 = vmatmul.mubr.msk.f32.vlgmr.msra.gmra.mrb[6].mxu0 %vm211_vm1, %v6988_v23  ;;  %v1632_v23 = vld [vmem:[#allocation2 + $0x38] sm:$0xff] }
 0x572   :  { %7463 = vmatpush3.bf16.msra.mxu0 %v7460_v32 }
 0x573   :  { %7008 = vmatprep.subr.mxu0 %v204_v24 }
 0x5bf   :  { %v1155_v25 = vpop.xlane.xlu0 %1154 }
 0x5c0   :  { %7975 = vrcp.f32 %v1155_v25  ;;  %v7492_v25 = vpack.c.bf16 %v1632_v23, %v1631_v22 }
 0x5c3   :  { %v1158_v26 = vpop.xlane.xlu0 %1157 }
 0x5c4   :  { %7977 = vrcp.f32 %v1158_v26  ;;  %v8521_v26 = vld [vmem:[%s9210_s28] sm:$0xff] }
 0x5ca   :  { %v7976_v27 = vpop.eup %7975 }
 0x5cb   :  { %v1161_v28 = vmul.f32 %v7976_v27, %v7972_v19  ;;  %v8530_v27 = vld [vmem:[%s9210_s28 + $0x8] sm:$0xf] }
 0x5cd   :  { %7005 = vmatprep.mubr.msk.f32.mxu0 %vm295_vm3, %v1161_v28  ;;  %v1489_v28 = vld [vmem:[#allocation6 + $0x30] sm:$0xff] }
 0x5ce   :  { %v7978_v29 = vpop.eup %7977 }
 0x5cf   :  { %v1162_v30 = vmul.f32 %v7978_v29, %v7974_v21  ;;  %v1490_v29 = vld [vmem:[#allocation6 + $0x38] sm:$0xff] }
 0x5d1   :  { %7006 = vmatmul.mubr.msk.f32.vlgmr.msra.gmra.mrb[10].mxu0 %vm295_vm3, %v1162_v30  ;;  %v7484_v30 = vpack.c.bf16 %v1490_v29, %v1489_v28 }
 0x5d2   :  { %7009 = vmatpush3.msra.mxu0 %v204_v24 }
 0x5d3   :  { %7473 = vmatprep.subr.bf16.mxu0 %v7472_v0 }
 0x6a4   :  { %v7007_v33 = vpop.f32.mrb[10].mxu0 }
 0x6a5   :  { %v1241_v34 = vpop.f32.mrb[11].mxu0 }
 0x6a6   :  { %7010 = vmatprep.mubr.msk.f32.mxu0 %vm211_vm1, %v1241_v34 }
 0x6a7   :  { %7011 = vmatmul.mubr.msk.f32.vlgmr.msra.gmra.mrb[6].mxu0 %vm211_vm1, %v7007_v33  ;;  %v6456_v33 = vld [vmem:[%s9190_s13] ss:$0 sm:$0xff] }
 0x6a8   :  { %7475 = vmatpush3.bf16.msra.mxu0 %v7472_v0 }
 0x6a9   :  { %7477 = vmatprep.subr.bf16.mxu0 %v7476_v2 }
 0x6ac   :  { %7479 = vmatpush3.bf16.msra.mxu0 %v7476_v2 }
 0x6ad   :  { %7481 = vmatprep.subr.bf16.mxu0 %v7480_v6 }
 0x6b0   :  { %7483 = vmatpush3.bf16.msra.mxu0 %v7480_v6 }
 0x6b1   :  { %7485 = vmatprep.subr.bf16.mxu0 %v7484_v30 }
 0x6b4   :  { %7487 = vmatpush3.bf16.msra.mxu0 %v7484_v30 }
 0x77a   :  { %v7012_v36 = vpop.f32.mrb[6].mxu0 }
 0x77b   :  { %v1341_v37 = vadd.f32 %v7012_v36, %v6453_v35  ;;  %v1322_v38 = vpop.f32.mrb[7].mxu0 }
 0x77c   :  { %v1340_v39 = vadd.f32 %v6453_v35, %v1322_v38 }
 0x77d   :  { %v1343_v40 = vadd.f32 %v1341_v37, %v8356_v7 }
 0x77e   :  { %v1342_v41 = vadd.f32 %v1340_v39, %v8349_v5  ;;  %v1389_v5 = vld [vmem:[%s9189_s12] sm:$0xff] }
 0x77f   :  { %v1349_v42 = vsel %vm119_vm0, %v1343_v40, 0.0  ;;  %v7464_v55 = vpack.c.bf16 %v1390_v53, %v1389_v5 }
 0x780   :  { %1350 = vadd.xlane.f32.xlu1 %v1349_v42  ;;  %v1346_v43 = vsel %vm119_vm0, %v1342_v41, 0.0 }
 0x781   :  { %1347 = vadd.xlane.f32.xlu0 %v1346_v43  ;;  %7465 = vmatprep.subr.bf16.mxu1 %v7464_v55 }
 0x782   :  { %7467 = vmatpush3.bf16.msra.mxu1 %v7464_v55 }
 0x783   :  { %7469 = vmatprep.subr.bf16.mxu1 %v7468_v57 }
 0x786   :  { %7471 = vmatpush3.bf16.msra.mxu1 %v7468_v57 }
 0x787   :  { %7489 = vmatprep.subr.bf16.mxu1 %v7488_v60 }
 0x80d   :  { %v1351_v44 = vpop.xlane.xlu1 %1350 }
 0x80e   :  { %v1354_v45 = vmul.f32 0.03125, %v1351_v44  ;;  %v1348_v46 = vpop.xlane.xlu0 %1347 }
 0x80f   :  { %v1353_v47 = vmul.f32 0.03125, %v1348_v46 }
 0x810   :  { %v1356_v48 = vsub.f32 %v1343_v40, %v1354_v45  ;;  %v6465_v40 = vld [vmem:[%s9184_s7 + $0x1] ss:$0 sm:$0xff] }
 0x811   :  { %v1355_v49 = vsub.f32 %v1342_v41, %v1353_v47 }
 0x812   :  { %v1358_v52 = vmul.f32 %v1356_v48, %v1356_v48 }
 0x813   :  { %v1357_v50 = vmul.f32 %v1355_v49, %v1355_v49 }
 0x814   :  { %v1362_v7 = vsel %vm119_vm0, %v1358_v52, 0.0 }
 0x815   :  { %v1359_v51 = vsel %vm119_vm0, %v1357_v50, 0.0 }
 0x816   :  { %1360 = vadd.xlane.f32.xlu0 %v1359_v51 }
 0x81a   :  { %1363 = vadd.xlane.f32.xlu0 %v1362_v7 }
 0x8a3   :  { %v1361_v8 = vpop.xlane.xlu0 %1360 }
 0x8a4   :  { %v1365_v9 = vmul.f32 0.03125, %v1361_v8 }
 0x8a6   :  { %v1367_v10 = vadd.f32 1e-05, %v1365_v9 }
 0x8a7   :  { %v1364_v31 = vpop.xlane.xlu0 %1363 }
 0x8a8   :  { %7979 = vrsqrt.f32 %v1367_v10  ;;  %v1366_v32 = vmul.f32 0.03125, %v1364_v31 }
 0x8aa   :  { %v1368_v11 = vadd.f32 1e-05, %v1366_v32 }
 0x8ac   :  { %7981 = vrsqrt.f32 %v1368_v11 }
 0x8b2   :  { %v7980_v12 = vpop.eup %7979 }
 0x8b3   :  { %v1371_v15 = vmul.f32 %v7980_v12, %v1355_v49 }
 0x8b5   :  { %v1379_v18 = vmul.f32 %v6454_v14, %v1371_v15 }
 0x8b6   :  { %v7982_v19 = vpop.eup %7981 }
 0x8b7   :  { %v1372_v20 = vmul.f32 %v7982_v19, %v1356_v48  ;;  %v8512_v21 = vadd.f32 %v6455_v16, %v1379_v18 }
 0x8b9   :  { %v1380_v13 = vmul.f32 %v6454_v14, %v1372_v20  ;;  %7021 = vmatprep.mubr.msk.f32.mxu1 %vm119_vm0, %v8512_v21 }
 0x8bb   :  { %v8516_v24 = vadd.f32 %v6455_v16, %v1380_v13 }
 0x8bd   :  { %7022 = vmatmul.mubr.msk.f32.vlgmr.msra.gmra.mrb[8].mxu1 %vm119_vm0, %v8516_v24 }
 0x8be   :  { %7491 = vmatpush3.bf16.msra.mxu1 %v7488_v60  ;;  %7051 = vmatprep.mubr.msk.f32.mxu1 %vm119_vm0, %v8521_v26 }
 0x8bf   :  { %7493 = vmatprep.subr.bf16.mxu1 %v7492_v25 }
 0x8c2   :  { %7495 = vmatpush3.bf16.msra.mxu1 %v7492_v25 }
 0x8c5   :  { %7052 = vmatmul.mubr.msk.f32.vlgmr.msra.gmra.mrb[10].mxu1 %vm119_vm0, %v8530_v27 }
 0x990   :  { %v7023_v34 = vpop.f32.mrb[8].mxu1 }
 0x991   :  { %v1478_v35 = vadd.f32 %v7023_v34, %v6456_v33  ;;  %v1472_v36 = vpop.f32.mrb[9].mxu1 }
 0x992   :  { %v1473_v37 = vadd.f32 %v6456_v33, %v1472_v36 }
 0x993   :  { %v1482_v39 = vmax.f32 %v1478_v35, 0.0 }
 0x994   :  { %v1481_v38 = vmax.f32 %v1473_v37, 0.0 }
 0x996   :  { %7040 = vmatprep.mubr.msk.f32.mxu0 %vm1498_vm4, %v1481_v38 }
 0x997   :  { %7041 = vmatmul.mubr.msk.f32.vlgmr.msra.gmra.mrb[12].mxu0 %vm1498_vm4, %v1482_v39 }
 0x998   :  { %v7053_v41 = vpop.f32.mrb[10].mxu1 }
 0x999   :  { %v8542_v42 = vadd.f32 %v7053_v41, %v6465_v40  ;;  %v1713_v43 = vpop.f32.mrb[11].mxu1 }
 0x99a   :  { %v8544_v44 = vadd.f32 %v6465_v40, %v1713_v43 }
 0x99b   :  { %1931 = vrot.lane.b32.xlu1 %v8542_v42, %s8182_s29 }
 0x99c   :  { %7058 = vmatprep.mubr.msk.f32.mxu1 %vm211_vm1, %v8544_v44  ;;  %v8552_v45 = vpack.i.bf16 %v8542_v42, %v8544_v44 }
 0x99e   :  { %7818 = vrot.lane.b32.xlu0 %v8552_v45, %s8183_s0 }
 0x9a2   :  { %7823 = vrot.lane.b32.xlu0 %v8552_v45, %s8184_s20 }
 0x9a6   :  { %1929 = vrot.lane.b32.xlu0 %v8544_v44, %s8182_s29 }
 0x9aa   :  { %7828 = vrot.lane.b32.xlu0 %v8552_v45, %s8186_s22 }
 0x9ae   :  { %2292 = vrot.lane.b32.xlu0 %v8544_v44, %s8185_s1 }
 0x9b2   :  { %2294 = vrot.lane.b32.xlu0 %v8542_v42, %s8185_s1 }
 0xa0d   :  { %v1932_v57 = vpop.permute.xlu1 %1931 }
 0xa10   :  { %v7819_v46 = vpop.permute.xlu0 %7818 }
 0xa11   :  { %v7821_v47 = vunpack.i.h.bf16 %v7819_v46  ;;  %v7820_v48 = vunpack.i.l.bf16 %v7819_v46 }
 0xa13   :  { %v7496_v49 = vpack.c.bf16 %v7821_v47, %v7820_v48 }
 0xa14   :  { %v7824_v50 = vpop.permute.xlu0 %7823 }
 0xa15   :  { %v7826_v51 = vunpack.i.h.bf16 %v7824_v50  ;;  %v7825_v52 = vunpack.i.l.bf16 %v7824_v50  ;;  %7498 = vmatprep.subr.msk.bf16.mxu1 %vm8389_vm2, %v7496_v49 }
 0xa16   :  { %7501 = vmatpush3.bf16.xpose.msk.msra.mxu1 %vm8389_vm2, %v7496_v49 }
 0xa17   :  { %v7508_v7 = vpack.c.bf16 %v7826_v51, %v7825_v52 }
 0xa18   :  { %v1930_v5 = vpop.permute.xlu0 %1929 }
 0xa19   :  { %7510 = vmatprep.subr.msk.bf16.mxu1 %vm8389_vm2, %v7508_v7 }
 0xa1c   :  { %v7829_v53 = vpop.permute.xlu0 %7828 }
 0xa1d   :  { %v7831_v54 = vunpack.i.h.bf16 %v7829_v53  ;;  %v7830_v55 = vunpack.i.l.bf16 %v7829_v53  ;;  %7059 = vmatmul.mubr.msk.f32.vlgmr.msra.gmra.mrb[12].mxu1 %vm211_vm1, %v8542_v42  ;;  %v6569_v53 = vld [vmem:[%s9186_s9 + $0x2] ss:$0 sm:$0xff] }
 0xa1e   :  { %7513 = vmatpush3.bf16.xpose.msk.msra.mxu1 %vm8389_vm2, %v7508_v7  ;;  %7072 = vmatprep.mubr.msk.f32.mxu1 %vm211_vm1, %v1930_v5 }
 0xa1f   :  { %v7520_v56 = vpack.c.bf16 %v7831_v54, %v7830_v55 }
 0xa20   :  { %v2293_v58 = vpop.permute.xlu0 %2292 }
 0xa21   :  { %7522 = vmatprep.subr.msk.bf16.mxu1 %vm8389_vm2, %v7520_v56 }
 0xa24   :  { %v2295_v59 = vpop.permute.xlu0 %2294 }
 0xa25   :  { %7073 = vmatmul.mubr.msk.f32.vlgmr.msra.gmra.mrb[14].mxu1 %vm211_vm1, %v1932_v57 }
 0xa26   :  { %7525 = vmatpush3.bf16.xpose.msk.msra.mxu1 %vm8389_vm2, %v7520_v56  ;;  %7096 = vmatprep.mubr.msk.f32.mxu1 %vm211_vm1, %v2293_v58 }
 0xa2d   :  { %7097 = vmatmul.mubr.msk.f32.vlgmr.msra.gmra.mrb[16].mxu1 %vm211_vm1, %v2295_v59 }
 0xa6a   :  { %v8584_v60 = vpop.f32.mrb[12].mxu0 }
 0xa6b   :  { %v8586_v61 = vpop.f32.mrb[13].mxu0 }
 0xaf0   :  { %v7060_v0 = vpop.f32.mrb[12].mxu1 }
 0xaf1   :  { %v1813_v1 = vadd.f32 %v7060_v0, %v8591_v62  ;;  %v1807_v2 = vpop.f32.mrb[13].mxu1 }
 0xaf2   :  { %v1808_v3 = vadd.f32 %v1807_v2, %v8596_v63 }
 0xaf3   :  { %v1821_v4 = vsel %vm1820_vm5, %v1813_v1, -inf }
 0xaf4   :  { %1822 = vmax.xlane.f32.xlu1 %v1821_v4  ;;  %v1817_v6 = vsel %vm1816_vm6, %v1808_v3, -inf }
 0xaf5   :  { %1818 = vmax.xlane.f32.xlu0 %v1817_v6 }
 0xaf8   :  { %v7074_v8 = vpop.f32.mrb[14].mxu1 }
 0xaf9   :  { %v2011_v9 = vpop.f32.mrb[15].mxu1  ;;  %v2017_v31 = vadd.f32 %v7074_v8, %v8591_v62 }
 0xafa   :  { %v2012_v10 = vadd.f32 %v2011_v9, %v8596_v63 }
 0xafb   :  { %v2023_v12 = vsel %vm1820_vm5, %v2017_v31, -inf }
 0xafc   :  { %v2020_v32 = vsel %vm1816_vm6, %v2012_v10, -inf }
 0xafd   :  { %2021 = vmax.xlane.f32.xlu0 %v2020_v32 }
 0xb00   :  { %v7098_v11 = vpop.f32.mrb[16].mxu1 }
 0xb01   :  { %v2374_v14 = vpop.f32.mrb[17].mxu1  ;;  %2024 = vmax.xlane.f32.xlu0 %v2023_v12  ;;  %v2380_v41 = vadd.f32 %v7098_v11, %v8591_v62 }
 0xb02   :  { %v2375_v43 = vadd.f32 %v2374_v14, %v8596_v63 }
 0xb03   :  { %v2386_v47 = vsel %vm1820_vm5, %v2380_v41, -inf }
 0xb04   :  { %v2383_v46 = vsel %vm1816_vm6, %v2375_v43, -inf }
 0xb81   :  { %v1823_v15 = vpop.xlane.xlu1 %1822 }
 0xb82   :  { %v1825_v16 = vsub.f32 %v1813_v1, %v1823_v15  ;;  %v1819_v18 = vpop.xlane.xlu0 %1818 }
 0xb83   :  { %v1824_v19 = vsub.f32 %v1808_v3, %v1819_v18 }
 0xb84   :  { %v1828_v20 = vmul.f32 1.442695, %v1825_v16 }
 0xb85   :  { %v1826_v22 = vmul.f32 1.442695, %v1824_v19 }
 0xb86   :  { %7983 = vpow2.f32 %v1828_v20 }
 0xb87   :  { %7985 = vpow2.f32 %v1826_v22 }
 0xb8a   :  { %v2022_v23 = vpop.xlane.xlu0 %2021 }
 0xb8b   :  { %v2026_v13 = vsub.f32 %v2012_v10, %v2022_v23 }
 0xb8d   :  { %v2028_v25 = vmul.f32 1.442695, %v2026_v13  ;;  %v1724_v13 = vld [vmem:[#allocation4 + $0x28] sm:$0xff] }
 0xb8e   :  { %v2025_v28 = vpop.xlane.xlu0 %2024 }
 0xb8f   :  { %7987 = vpow2.f32 %v2028_v25  ;;  %v2027_v29 = vsub.f32 %v2017_v31, %v2025_v28  ;;  %v1723_v25 = vld [vmem:[#allocation4 + $0x20] sm:$0xff] }
 0xb90   :  { %v7984_v30 = vpop.eup %7983 }
 0xb91   :  { %v7986_v33 = vpop.eup %7985  ;;  %v2030_v34 = vmul.f32 1.442695, %v2027_v29  ;;  %v1833_v35 = vsel %vm1820_vm5, %v7984_v30, 0.0 }
 0xb92   :  { %1834 = vadd.xlane.f32.xlu0 %v1833_v35  ;;  %v1830_v36 = vsel %vm1816_vm6, %v7986_v33, 0.0 }
 0xb93   :  { %7989 = vpow2.f32 %v2030_v34  ;;  %1831 = vadd.xlane.f32.xlu1 %v1830_v36 }
 0xb99   :  { %v7988_v37 = vpop.eup %7987 }
 0xb9a   :  { %v2032_v38 = vsel %vm1816_vm6, %v7988_v37, 0.0 }
 0xb9b   :  { %2033 = vadd.xlane.f32.xlu1 %v2032_v38 }
 0xb9d   :  { %v7990_v39 = vpop.eup %7989 }
 0xb9e   :  { %v2035_v40 = vsel %vm1820_vm5, %v7990_v39, 0.0 }
 0xb9f   :  { %2036 = vadd.xlane.f32.xlu0 %v2035_v40 }
 0xbac   :  { %7833 = vrot.lane.b32.xlu1 %v8552_v45, %s8189_s8 }
 0xbb0   :  { %7843 = vrot.lane.b32.xlu1 %v8552_v45, %s8188_s3 }
 0xbb4   :  { %2576 = vrot.lane.b32.xlu1 %v8544_v44, %s8190_s30 }
 0xbb5   :  { %7838 = vrot.lane.b32.xlu0 %v8552_v45, %s8187_s21  ;;  %s9214_s21 = smov 40  }
 0xbb9   :  { %2578 = vrot.lane.b32.xlu0 %v8542_v42, %s8190_s30 }
 0xbd8   :  { %2384 = vmax.xlane.f32.xlu1 %v2383_v46  ;;  %2387 = vmax.xlane.f32.xlu0 %v2386_v47 }
 0xc1f   :  { %v1835_v49 = vpop.xlane.xlu0 %1834 }
 0xc20   :  { %v1832_v48 = vpop.xlane.xlu1 %1831 }
 0xc21   :  { %7991 = vrcp.f32 %v1832_v48 }
 0xc22   :  { %7993 = vrcp.f32 %v1835_v49 }
 0xc28   :  { %v2034_v44 = vpop.xlane.xlu1 %2033 }
 0xc29   :  { %7995 = vrcp.f32 %v2034_v44 }
 0xc2b   :  { %v7992_v50 = vpop.eup %7991 }
 0xc2c   :  { %v7834_v51 = vpop.permute.xlu1 %7833  ;;  %v2037_v42 = vpop.xlane.xlu0 %2036  ;;  %v1838_v52 = vmul.f32 %v7992_v50, %v7986_v33 }
 0xc2d   :  { %v7836_v7 = vunpack.i.h.bf16 %v7834_v51  ;;  %v7835_v5 = vunpack.i.l.bf16 %v7834_v51  ;;  %7997 = vrcp.f32 %v2037_v42  ;;  %v7994_v55 = vpop.eup %7993 }
 0xc2e   :  { %7065 = vmatprep.mubr.msk.f32.mxu0 %vm1816_vm6, %v1838_v52  ;;  %v1839_v6 = vmul.f32 %v7994_v55, %v7984_v30 }
 0xc2f   :  { %v7502_v54 = vpack.c.bf16 %v7836_v7, %v7835_v5 }
 0xc30   :  { %v7844_v56 = vpop.permute.xlu1 %7843  ;;  %v7839_v57 = vpop.permute.xlu0 %7838 }
 0xc31   :  { %v7846_v58 = vunpack.i.h.bf16 %v7844_v56  ;;  %v7845_v59 = vunpack.i.l.bf16 %v7844_v56  ;;  %v7841_v0 = vunpack.i.h.bf16 %v7839_v57  ;;  %v7840_v1 = vunpack.i.l.bf16 %v7839_v57  ;;  %7504 = vmatprep.subr.msk.bf16.mxu0 %vm8625_vm9, %v7502_v54 }
 0xc32   :  { %7507 = vmatpush3.bf16.msk.msra.mxu0 %vm8625_vm9, %v7502_v54 }
 0xc33   :  { %v7996_v2 = vpop.eup %7995  ;;  %v7532_v3 = vpack.c.bf16 %v7846_v58, %v7845_v59  ;;  %v7514_v4 = vpack.c.bf16 %v7841_v0, %v7840_v1 }
 0xc34   :  { %v2577_v8 = vpop.permute.xlu1 %2576  ;;  %v2040_v9 = vmul.f32 %v7996_v2, %v7988_v37  ;;  %v2579_v32 = vpop.permute.xlu0 %2578 }
 0xc35   :  { %7066 = vmatmul.mubr.msk.f32.vlgmr.msra.gmra.mrb[14].mxu0 %vm1816_vm6, %v1839_v6  ;;  %7516 = vmatprep.subr.msk.bf16.mxu0 %vm8625_vm9, %v7514_v4 }
 0xc36   :  { %7534 = vmatprep.subr.msk.bf16.mxu1 %vm8389_vm2, %v7532_v3  ;;  %7115 = vmatprep.mubr.msk.f32.mxu1 %vm211_vm1, %v2577_v8 }
 0xc37   :  { %v7998_v10 = vpop.eup %7997  ;;  %7519 = vmatpush3.bf16.msk.msra.mxu0 %vm8625_vm9, %v7514_v4  ;;  %7079 = vmatprep.mubr.msk.f32.mxu0 %vm1816_vm6, %v2040_v9  ;;  %v1726_v9 = vld [vmem:[#allocation4 + $0x38] sm:$0xff] }
 0xc38   :  { %7537 = vmatpush3.bf16.xpose.msk.msra.mxu1 %vm8389_vm2, %v7532_v3  ;;  %v2041_v31 = vmul.f32 %v7998_v10, %v7990_v39  ;;  %7082 = vmatprep.subr.mxu0 %v1724_v13 }
 0xc3a   :  { %7080 = vmatmul.mubr.msk.f32.vlgmr.msra.gmra.mrb[16].mxu0 %vm1816_vm6, %v2041_v31 }
 0xc3b   :  { %7083 = vmatpush3.msra.mxu0 %v1724_v13 }
 0xc3c   :  { %7087 = vmatprep.subr.mxu0 %v1723_v25 }
 0xc3f   :  { %7116 = vmatmul.mubr.msk.f32.vlgmr.msra.gmra.mrb[18].mxu1 %vm211_vm1, %v2579_v32 }
 0xc65   :  { %v2385_v11 = vpop.xlane.xlu1 %2384  ;;  %v2388_v12 = vpop.xlane.xlu0 %2387 }
 0xc66   :  { %v2389_v14 = vsub.f32 %v2375_v43, %v2385_v11  ;;  %v2390_v15 = vsub.f32 %v2380_v41, %v2388_v12 }
 0xc68   :  { %v2391_v16 = vmul.f32 1.442695, %v2389_v14  ;;  %v2393_v18 = vmul.f32 1.442695, %v2390_v15  ;;  %v6505_v14 = vld [vmem:[%s9186_s9 + $0x1] ss:$0 sm:$0xff] }
 0xc6a   :  { %7999 = vpow2.f32 %v2391_v16 }
 0xc6b   :  { %8001 = vpow2.f32 %v2393_v18 }
 0xc74   :  { %v8000_v19 = vpop.eup %7999 }
 0xc75   :  { %v8002_v20 = vpop.eup %8001  ;;  %v2395_v22 = vsel %vm1816_vm6, %v8000_v19, 0.0 }
 0xc76   :  { %2396 = vadd.xlane.f32.xlu0 %v2395_v22  ;;  %v2398_v23 = vsel %vm1820_vm5, %v8002_v20, 0.0 }
 0xc77   :  { %2399 = vadd.xlane.f32.xlu1 %v2398_v23 }
 0xc8c   :  { %7848 = vrot.lane.b32.xlu0 %v8552_v45, %s8191_s14 }
 0xd03   :  { %v2397_v28 = vpop.xlane.xlu0 %2396 }
 0xd04   :  { %v2400_v34 = vpop.xlane.xlu1 %2399  ;;  %8003 = vrcp.f32 %v2397_v28 }
 0xd05   :  { %8005 = vrcp.f32 %v2400_v34 }
 0xd07   :  { %v7849_v30 = vpop.permute.xlu0 %7848 }
 0xd08   :  { %v7067_v29 = vpop.f32.mrb[14].mxu0  ;;  %v7851_v35 = vunpack.i.h.bf16 %v7849_v30  ;;  %v7850_v36 = vunpack.i.l.bf16 %v7849_v30 }
 0xd09   :  { %v1920_v33 = vpop.f32.mrb[15].mxu0 }
 0xd0a   :  { %v7526_v39 = vpack.c.bf16 %v7851_v35, %v7850_v36  ;;  %v6459_v35 = vld [vmem:[%s9192_s15] ss:$0 sm:$0xff] }
 0xd0d   :  { %v7081_v37 = vpop.f32.mrb[16].mxu0 }
 0xd0e   :  { %v2121_v38 = vpop.f32.mrb[17].mxu0  ;;  %v8004_v43 = vpop.eup %8003 }
 0xd0f   :  { %7084 = vmatprep.mubr.msk.f32.mxu0 %vm211_vm1, %v2121_v38  ;;  %v8006_v49 = vpop.eup %8005  ;;  %v2403_v44 = vmul.f32 %v8004_v43, %v8000_v19  ;;  %v1577_v38 = vadd.f32 %v8584_v60, %v6459_v35  ;;  %v6510_v60 = vld [vmem:[%s9189_s12 + $0x20] sm:$0xff] }
 0xd10   :  { %7085 = vmatmul.mubr.msk.f32.vlgmr.msra.gmra.mrb[18].mxu0 %vm211_vm1, %v7081_v37  ;;  %v2404_v51 = vmul.f32 %v8006_v49, %v8002_v20  ;;  %v3016_v49 = vld [vmem:[#allocation6 + $0x40] sm:$0xff] }
 0xd11   :  { %7088 = vmatpush3.msra.mxu0 %v1723_v25  ;;  %7089 = vmatprep.mubr.msk.f32.mxu0 %vm211_vm1, %v1920_v33  ;;  %v8698_v43 = vadd.f32 %v1577_v38, %v8516_v24  ;;  %v6512_v24 = vld [vmem:[%s9189_s12 + $0x30] sm:$0xff] }
 0xd12   :  { %v7117_v40 = vpop.f32.mrb[18].mxu1  ;;  %7528 = vmatprep.subr.msk.bf16.mxu0 %vm8625_vm9, %v7526_v39 }
 0xd13   :  { %v2658_v41 = vpop.f32.mrb[19].mxu1  ;;  %v2664_v47 = vadd.f32 %v7117_v40, %v8591_v62 }
 0xd14   :  { %v2659_v46 = vadd.f32 %v2658_v41, %v8596_v63  ;;  %v1725_v63 = vld [vmem:[#allocation4 + $0x30] sm:$0xff] }
 0xd15   :  { %v2670_v50 = vsel %vm1820_vm5, %v2664_v47, -inf }
 0xd16   :  { %v2667_v48 = vsel %vm1816_vm6, %v2659_v46, -inf }
 0xd17   :  { %2668 = vmax.xlane.f32.xlu1 %v2667_v48 }
 0xd18   :  { %7090 = vmatmul.mubr.msk.f32.vlgmr.msra.gmra.mrb[18].mxu0 %vm211_vm1, %v7067_v29 }
 0xd19   :  { %7531 = vmatpush3.bf16.msk.msra.mxu0 %vm8625_vm9, %v7526_v39  ;;  %7103 = vmatprep.mubr.msk.f32.mxu0 %vm1816_vm6, %v2403_v44  ;;  %v3017_v44 = vld [vmem:[#allocation6 + $0x48] sm:$0xff] }
 0xd1a   :  { %7106 = vmatprep.subr.mxu0 %v1725_v63 }
 0xd1b   :  { %2671 = vmax.xlane.f32.xlu1 %v2670_v50  ;;  %v3018_v50 = vld [vmem:[#allocation6 + $0x50] sm:$0xff] }
 0xd1c   :  { %7104 = vmatmul.mubr.msk.f32.vlgmr.msra.gmra.mrb[20].mxu0 %vm1816_vm6, %v2404_v51  ;;  %v7552_v51 = vpack.c.bf16 %v3017_v44, %v3016_v49 }
 0xd1d   :  { %7107 = vmatpush3.msra.mxu0 %v1725_v63  ;;  %v3019_v63 = vld [vmem:[#allocation6 + $0x58] sm:$0xff] }
 0xda4   :  { %v2669_v62 = vpop.xlane.xlu1 %2668 }
 0xda5   :  { %v2673_v42 = vsub.f32 %v2659_v46, %v2669_v62  ;;  %v7556_v62 = vpack.c.bf16 %v3019_v63, %v3018_v50 }
 0xda7   :  { %v2675_v5 = vmul.f32 1.442695, %v2673_v42  ;;  %v3020_v42 = vld [vmem:[#allocation6 + $0x60] sm:$0xff] }
 0xda8   :  { %v2672_v52 = vpop.xlane.xlu1 %2671 }
 0xda9   :  { %v2674_v7 = vsub.f32 %v2664_v47, %v2672_v52  ;;  %v6513_v47 = vld [vmem:[%s9189_s12 + $0x38] sm:$0xff]  ;;  %v3021_v52 = vld [vmem:[#allocation6 + $0x68] sm:$0xff] }
 0xdaa   :  { %v7548_v48 = vpack.c.bf16 %v6513_v47, %v6512_v24 }
 0xdab   :  { %v2677_v54 = vmul.f32 1.442695, %v2674_v7  ;;  %v7560_v7 = vpack.c.bf16 %v3021_v52, %v3020_v42 }
 0xdad   :  { %8007 = vpow2.f32 %v2677_v54 }
 0xdae   :  { %8009 = vpow2.f32 %v2675_v5 }
 0xdb7   :  { %v8008_v55 = vpop.eup %8007 }
 0xdb8   :  { %v2682_v56 = vsel %vm1820_vm5, %v8008_v55, 0.0  ;;  %v8010_v57 = vpop.eup %8009 }
 0xdb9   :  { %2683 = vadd.xlane.f32.xlu1 %v2682_v56  ;;  %v2679_v58 = vsel %vm1816_vm6, %v8010_v57, 0.0 }
 0xdbd   :  { %2680 = vadd.xlane.f32.xlu1 %v2679_v58 }
 0xdce   :  { %7853 = vrot.lane.b32.xlu1 %v8552_v45, %s9214_s21 }
 0xdef   :  { %v7105_v59 = vpop.f32.mrb[20].mxu0 }
 0xdf0   :  { %v2484_v0 = vpop.f32.mrb[21].mxu0 }
 0xdf1   :  { %7108 = vmatprep.mubr.msk.f32.mxu0 %vm211_vm1, %v2484_v0  ;;  %v6508_v0 = vld [vmem:[%s9187_s10 + $0x1] ss:$0 sm:$0xff] }
 0xdf2   :  { %7109 = vmatmul.mubr.msk.f32.vlgmr.msra.gmra.mrb[18].mxu0 %vm211_vm1, %v7105_v59 }
 0xe46   :  { %v2684_v1 = vpop.xlane.xlu1 %2683 }
 0xe47   :  { %8011 = vrcp.f32 %v2684_v1 }
 0xe4a   :  { %v2681_v2 = vpop.xlane.xlu1 %2680 }
 0xe4b   :  { %8013 = vrcp.f32 %v2681_v2  ;;  %v6509_v2 = vld [vmem:[%s9188_s11 + $0x1] ss:$0 sm:$0xff] }
 0xe4e   :  { %v7854_v3 = vpop.permute.xlu1 %7853 }
 0xe4f   :  { %v7856_v4 = vunpack.i.h.bf16 %v7854_v3  ;;  %v7855_v6 = vunpack.i.l.bf16 %v7854_v3 }
 0xe51   :  { %v7538_v8 = vpack.c.bf16 %v7856_v4, %v7855_v6  ;;  %v8012_v10 = vpop.eup %8011 }
 0xe52   :  { %v2688_v32 = vmul.f32 %v8012_v10, %v8008_v55 }
 0xe53   :  { %7540 = vmatprep.subr.msk.bf16.mxu0 %vm8625_vm9, %v7538_v8 }
 0xe54   :  { %7543 = vmatpush3.bf16.msk.msra.mxu0 %vm8625_vm9, %v7538_v8 }
 0xe55   :  { %v8014_v45 = vpop.eup %8013  ;;  %7125 = vmatprep.subr.mxu0 %v1726_v9 }
 0xe56   :  { %v2687_v31 = vmul.f32 %v8014_v45, %v8010_v57  ;;  %v3022_v45 = vld [vmem:[#allocation6 + $0x70] sm:$0xff] }
 0xe58   :  { %7122 = vmatprep.mubr.msk.f32.mxu0 %vm1816_vm6, %v2687_v31  ;;  %v3023_v31 = vld [vmem:[#allocation6 + $0x78] sm:$0xff] }
 0xe59   :  { %7123 = vmatmul.mubr.msk.f32.vlgmr.msra.gmra.mrb[22].mxu0 %vm1816_vm6, %v2688_v32  ;;  %v7564_v32 = vpack.c.bf16 %v3023_v31, %v3022_v45  ;;  %v6527_v31 = vld [vmem:[%s9184_s7 + $0x2] ss:$0 sm:$0xff] }
 0xe5a   :  { %7126 = vmatpush3.msra.mxu0 %v1726_v9 }
 0xe5b   :  { %7553 = vmatprep.subr.bf16.mxu0 %v7552_v51 }
 0xf2c   :  { %v7124_v11 = vpop.f32.mrb[22].mxu0 }
 0xf2d   :  { %v2768_v12 = vpop.f32.mrb[23].mxu0 }
 0xf2e   :  { %7127 = vmatprep.mubr.msk.f32.mxu0 %vm211_vm1, %v2768_v12 }
 0xf2f   :  { %7128 = vmatmul.mubr.msk.f32.vlgmr.msra.gmra.mrb[18].mxu0 %vm211_vm1, %v7124_v11  ;;  %v6515_v11 = vld [vmem:[%s9190_s13 + $0x1] ss:$0 sm:$0xff] }
 0xf30   :  { %7555 = vmatpush3.bf16.msra.mxu0 %v7552_v51 }
 0xf31   :  { %7557 = vmatprep.subr.bf16.mxu0 %v7556_v62 }
 0xf34   :  { %7559 = vmatpush3.bf16.msra.mxu0 %v7556_v62 }
 0xf35   :  { %7561 = vmatprep.subr.bf16.mxu0 %v7560_v7 }
 0xf38   :  { %7563 = vmatpush3.bf16.msra.mxu0 %v7560_v7 }
 0xf39   :  { %7565 = vmatprep.subr.bf16.mxu0 %v7564_v32 }
 0xf3c   :  { %7567 = vmatpush3.bf16.msra.mxu0 %v7564_v32 }
0x1002   :  { %v7129_v15 = vpop.f32.mrb[18].mxu0 }
0x1003   :  { %v2869_v16 = vadd.f32 %v7129_v15, %v6505_v14  ;;  %v2849_v18 = vpop.f32.mrb[19].mxu0 }
0x1004   :  { %v2868_v19 = vadd.f32 %v6505_v14, %v2849_v18 }
0x1005   :  { %v2871_v20 = vadd.f32 %v2869_v16, %v8530_v27  ;;  %v1572_v27 = vadd.f32 %v6459_v35, %v8586_v61  ;;  %v1587_v61 = vsel %vm119_vm0, %v8698_v43, 0.0 }
0x1006   :  { %v2870_v22 = vadd.f32 %v2868_v19, %v8521_v26 }
0x1007   :  { %v2880_v23 = vsel %vm2879_vm10, %v2871_v20, 0.0  ;;  %v8693_v40 = vadd.f32 %v1572_v27, %v8512_v21  ;;  %v6511_v21 = vld [vmem:[%s9189_s12 + $0x28] sm:$0xff] }
0x1008   :  { %2881 = vadd.xlane.f32.xlu1 %v2880_v23  ;;  %v2876_v13 = vsel %vm119_vm0, %v2870_v22, 0.0  ;;  %v7544_v46 = vpack.c.bf16 %v6511_v21, %v6510_v60  ;;  %v3165_v60 = vld [vmem:[#allocation2 + $0x48] sm:$0xff]  ;;  %v3166_v21 = vld [vmem:[#allocation2 + $0x50] sm:$0xff] }
0x1009   :  { %2877 = vadd.xlane.f32.xlu0 %v2876_v13  ;;  %v1584_v41 = vsel %vm119_vm0, %v8693_v40, 0.0 }
0x100a   :  { %7545 = vmatprep.subr.bf16.mxu1 %v7544_v46 }
0x100b   :  { %7547 = vmatpush3.bf16.msra.mxu1 %v7544_v46  ;;  %v3167_v46 = vld [vmem:[#allocation2 + $0x58] sm:$0xff] }
0x100c   :  { %7549 = vmatprep.subr.bf16.mxu1 %v7548_v48  ;;  %v7572_v24 = vpack.c.bf16 %v3167_v46, %v3166_v21 }
0x100f   :  { %7551 = vmatpush3.bf16.msra.mxu1 %v7548_v48  ;;  %v7862_v48 = vpack.i.bf16 %v3167_v46, %v3166_v21 }
0x1095   :  { %v2882_v25 = vpop.xlane.xlu1 %2881 }
0x1096   :  { %v2884_v28 = vmul.f32 0.03125, %v2882_v25  ;;  %v2878_v29 = vpop.xlane.xlu0 %2877  ;;  %v6519_v25 = vld [vmem:[%s9192_s15 + $0x1] ss:$0 sm:$0xff] }
0x1097   :  { %v2883_v30 = vmul.f32 0.03125, %v2878_v29 }
0x1098   :  { %v2886_v33 = vsub.f32 %v2871_v20, %v2884_v28 }
0x1099   :  { %v2885_v34 = vsub.f32 %v2870_v22, %v2883_v30 }
0x109a   :  { %v2888_v37 = vmul.f32 %v2886_v33, %v2886_v33 }
0x109b   :  { %v2887_v36 = vmul.f32 %v2885_v34, %v2885_v34 }
0x109c   :  { %v2892_v39 = vsel %vm2879_vm10, %v2888_v37, 0.0 }
0x109d   :  { %v2889_v26 = vsel %vm119_vm0, %v2887_v36, 0.0 }
0x109e   :  { %2890 = vadd.xlane.f32.xlu0 %v2889_v26 }
0x10a2   :  { %2893 = vadd.xlane.f32.xlu0 %v2892_v39 }
0x10a6   :  { %1585 = vadd.xlane.f32.xlu0 %v1584_v41 }
0x10aa   :  { %1588 = vadd.xlane.f32.xlu0 %v1587_v61  ;;  %v3164_v61 = vld [vmem:[#allocation2 + $0x40] sm:$0xff] }
0x10ab   :  { %v7857_v47 = vpack.i.bf16 %v3165_v60, %v3164_v61 }
0x112b   :  { %v2891_v5 = vpop.xlane.xlu0 %2890 }
0x112c   :  { %v2895_v54 = vmul.f32 0.03125, %v2891_v5 }
0x112e   :  { %v2897_v55 = vadd.f32 1e-05, %v2895_v54 }
0x112f   :  { %v2894_v56 = vpop.xlane.xlu0 %2893 }
0x1130   :  { %8015 = vrsqrt.f32 %v2897_v55  ;;  %v2896_v57 = vmul.f32 0.03125, %v2894_v56 }
0x1132   :  { %v2898_v58 = vadd.f32 1e-05, %v2896_v57 }
0x1133   :  { %v1586_v20 = vpop.xlane.xlu0 %1585 }
0x1134   :  { %8017 = vrsqrt.f32 %v2898_v58  ;;  %v1590_v13 = vmul.f32 0.03125, %v1586_v20 }
0x1137   :  { %v1589_v22 = vpop.xlane.xlu0 %1588 }
0x1138   :  { %v1591_v23 = vmul.f32 0.03125, %v1589_v22 }
0x113a   :  { %v8016_v59 = vpop.eup %8015  ;;  %v1593_v29 = vsub.f32 %v8698_v43, %v1591_v23 }
0x113b   :  { %v2901_v1 = vmul.f32 %v8016_v59, %v2885_v34  ;;  %v1592_v34 = vsub.f32 %v8693_v40, %v1590_v13  ;;  %v7568_v40 = vpack.c.bf16 %v3165_v60, %v3164_v61 }
0x113c   :  { %v1595_v37 = vmul.f32 %v1593_v29, %v1593_v29 }
0x113d   :  { %v2909_v3 = vmul.f32 %v6508_v0, %v2901_v1  ;;  %v1594_v39 = vmul.f32 %v1592_v34, %v1592_v34  ;;  %7569 = vmatprep.subr.bf16.mxu1 %v7568_v40  ;;  %v6462_v1 = vld [vmem:[%s9193_s16] ss:$0 sm:$0xff] }
0x113e   :  { %v8018_v4 = vpop.eup %8017  ;;  %v1599_v41 = vsel %vm119_vm0, %v1595_v37, 0.0 }
0x113f   :  { %v2902_v6 = vmul.f32 %v8018_v4, %v2886_v33  ;;  %v2917_v8 = vadd.f32 %v6509_v2, %v2909_v3  ;;  %v1596_v43 = vsel %vm119_vm0, %v1594_v39, 0.0 }
0x1141   :  { %v2910_v9 = vmul.f32 %v6508_v0, %v2902_v6  ;;  %7138 = vmatprep.mubr.msk.f32.mxu1 %vm119_vm0, %v2917_v8  ;;  %v6463_v6 = vld [vmem:[%s9194_s17] ss:$0 sm:$0xff] }
0x1143   :  { %v2918_v10 = vadd.f32 %v6509_v2, %v2910_v9 }
0x1145   :  { %7139 = vmatmul.mubr.msk.f32.vlgmr.msra.gmra.mrb[20].mxu1 %vm119_vm0, %v2918_v10 }
0x1146   :  { %7571 = vmatpush3.bf16.msra.mxu1 %v7568_v40 }
0x1147   :  { %7573 = vmatprep.subr.bf16.mxu1 %v7572_v24 }
0x114a   :  { %7575 = vmatpush3.bf16.msra.mxu1 %v7572_v24 }
0x1218   :  { %v7140_v12 = vpop.f32.mrb[20].mxu1 }
0x1219   :  { %v3010_v14 = vadd.f32 %v7140_v12, %v6515_v11  ;;  %v3004_v15 = vpop.f32.mrb[21].mxu1 }
0x121a   :  { %v3005_v16 = vadd.f32 %v6515_v11, %v3004_v15 }
0x121b   :  { %v3014_v19 = vmax.f32 %v3010_v14, 0.0 }
0x121c   :  { %v3013_v18 = vmax.f32 %v3005_v16, 0.0 }
0x121e   :  { %7157 = vmatprep.mubr.msk.f32.mxu0 %vm1498_vm4, %v3013_v18 }
0x121f   :  { %7158 = vmatmul.mubr.msk.f32.vlgmr.msra.gmra.mrb[24].mxu0 %vm1498_vm4, %v3014_v19 }
0x12f2   :  { %v7159_v28 = vpop.f32.mrb[24].mxu0 }
0x12f3   :  { %v3110_v30 = vadd.f32 %v7159_v28, %v6519_v25  ;;  %v3104_v33 = vpop.f32.mrb[25].mxu0 }
0x12f4   :  { %v3105_v35 = vadd.f32 %v6519_v25, %v3104_v33 }
0x12f5   :  { %v3114_v36 = vadd.f32 %v3110_v30, %v2918_v10  ;;  %v6524_v30 = vld [vmem:[%s9193_s16 + $0x1] ss:$0 sm:$0xff] }
0x12f6   :  { %v3113_v27 = vadd.f32 %v3105_v35, %v2917_v8 }
0x12f7   :  { %v3122_v26 = vsel %vm2879_vm10, %v3114_v36, 0.0 }
0x12f8   :  { %3123 = vadd.xlane.f32.xlu1 %v3122_v26  ;;  %v3119_v38 = vsel %vm119_vm0, %v3113_v27, 0.0 }
0x12f9   :  { %3120 = vadd.xlane.f32.xlu0 %v3119_v38 }
0x12fc   :  { %1600 = vadd.xlane.f32.xlu1 %v1599_v41 }
0x12fd   :  { %1597 = vadd.xlane.f32.xlu0 %v1596_v43 }
0x1385   :  { %v3124_v49 = vpop.xlane.xlu1 %3123 }
0x1386   :  { %v3126_v44 = vmul.f32 0.03125, %v3124_v49  ;;  %v3121_v50 = vpop.xlane.xlu0 %3120 }
0x1387   :  { %v3125_v51 = vmul.f32 0.03125, %v3121_v50 }
0x1388   :  { %v3128_v63 = vsub.f32 %v3114_v36, %v3126_v44  ;;  %v6525_v36 = vld [vmem:[%s9194_s17 + $0x1] ss:$0 sm:$0xff] }
0x1389   :  { %v3127_v62 = vsub.f32 %v3113_v27, %v3125_v51  ;;  %v1601_v42 = vpop.xlane.xlu1 %1600 }
0x138a   :  { %v1603_v52 = vmul.f32 0.03125, %v1601_v42  ;;  %v1598_v7 = vpop.xlane.xlu0 %1597  ;;  %v3130_v5 = vmul.f32 %v3128_v63, %v3128_v63 }
0x138b   :  { %v1602_v54 = vmul.f32 0.03125, %v1598_v7  ;;  %v3129_v55 = vmul.f32 %v3127_v62, %v3127_v62 }
0x138c   :  { %v1605_v56 = vadd.f32 1e-05, %v1603_v52  ;;  %v3134_v57 = vsel %vm2879_vm10, %v3130_v5, 0.0 }
0x138d   :  { %v1604_v58 = vadd.f32 1e-05, %v1602_v54  ;;  %3135 = vadd.xlane.f32.xlu1 %v3134_v57  ;;  %v3131_v59 = vsel %vm119_vm0, %v3129_v55, 0.0  ;;  %v8818_v57 = vld [vmem:[%s9181_s4] sm:$0xff] }
0x138e   :  { %8019 = vrsqrt.f32 %v1605_v56  ;;  %3132 = vadd.xlane.f32.xlu0 %v3131_v59  ;;  %v8813_v56 = vld [vmem:[%s9181_s4 + $0x8] sm:$0xff] }
0x138f   :  { %8021 = vrsqrt.f32 %v1604_v58 }
0x1398   :  { %v8020_v0 = vpop.eup %8019 }
0x1399   :  { %v8022_v2 = vpop.eup %8021  ;;  %v1609_v3 = vmul.f32 %v8020_v0, %v1593_v29 }
0x139a   :  { %v1608_v4 = vmul.f32 %v8022_v2, %v1592_v34 }
0x139b   :  { %v1617_v8 = vmul.f32 %v6462_v1, %v1609_v3 }
0x139c   :  { %v1616_v9 = vmul.f32 %v6462_v1, %v1608_v4 }
0x139d   :  { %v8747_v45 = vadd.f32 %v6463_v6, %v1617_v8 }
0x139e   :  { %v8744_v10 = vadd.f32 %v6463_v6, %v1616_v9  ;;  %7863 = vrot.lane.b32.xlu1 %v7862_v48, %s8183_s0 }
0x13a0   :  { %7168 = vmatprep.mubr.msk.f32.mxu1 %vm119_vm0, %v8744_v10 }
0x13a1   :  { %7169 = vmatmul.mubr.msk.f32.vlgmr.msra.gmra.mrb[22].mxu1 %vm119_vm0, %v8747_v45 }
0x13a2   :  { %3273 = vrot.lane.b32.xlu1 %v6527_v31, %s8183_s0 }
0x13a4   :  { %7858 = vrot.lane.b32.xlu0 %v7857_v47, %s8183_s0 }
0x141a   :  { %v3136_v32 = vpop.xlane.xlu1 %3135 }
0x141b   :  { %v3138_v11 = vmul.f32 0.03125, %v3136_v32  ;;  %v3133_v12 = vpop.xlane.xlu0 %3132 }
0x141c   :  { %v3137_v14 = vmul.f32 0.03125, %v3133_v12 }
0x141d   :  { %v3140_v15 = vadd.f32 1e-05, %v3138_v11 }
0x141e   :  { %v3139_v16 = vadd.f32 1e-05, %v3137_v14  ;;  %v7864_v18 = vpop.permute.xlu1 %7863 }
0x141f   :  { %8023 = vrsqrt.f32 %v3140_v15  ;;  %v7859_v19 = vpop.permute.xlu0 %7858  ;;  %v7866_v20 = vunpack.i.h.bf16 %v7864_v18  ;;  %v7865_v22 = vunpack.i.l.bf16 %v7864_v18 }
0x1420   :  { %8025 = vrsqrt.f32 %v3139_v16  ;;  %v7861_v23 = vunpack.i.h.bf16 %v7859_v19  ;;  %v7860_v13 = vunpack.i.l.bf16 %v7859_v19 }
0x1421   :  { %v7580_v28 = vpack.c.bf16 %v7866_v20, %v7865_v22 }
0x1422   :  { %v7576_v25 = vpack.c.bf16 %v7861_v23, %v7860_v13  ;;  %v3274_v61 = vpop.permute.xlu1 %3273 }
0x1424   :  { %7577 = vmatprep.subr.bf16.mxu1 %v7576_v25 }
0x1425   :  { %7579 = vmatpush3.bf16.msra.mxu1 %v7576_v25 }
0x1426   :  { %7581 = vmatprep.subr.bf16.mxu1 %v7580_v28 }
0x1429   :  { %v8024_v29 = vpop.eup %8023  ;;  %7583 = vmatpush3.bf16.msra.mxu1 %v7580_v28 }
0x142a   :  { %v8026_v33 = vpop.eup %8025  ;;  %v3144_v34 = vmul.f32 %v8024_v29, %v3128_v63 }
0x142b   :  { %v3143_v35 = vmul.f32 %v8026_v33, %v3127_v62 }
0x142c   :  { %v3152_v27 = vmul.f32 %v6524_v30, %v3144_v34 }
0x142d   :  { %v3151_v26 = vmul.f32 %v6524_v30, %v3143_v35 }
0x142e   :  { %v8766_v38 = vadd.f32 %v6525_v36, %v3152_v27 }
0x142f   :  { %v8764_v37 = vadd.f32 %v6525_v36, %v3151_v26 }
0x1431   :  { %7179 = vmatprep.mubr.msk.f32.mxu1 %vm119_vm0, %v8764_v37 }
0x1432   :  { %7180 = vmatmul.mubr.msk.f32.vlgmr.msra.gmra.mrb[24].mxu1 %vm119_vm0, %v8766_v38 }
0x1474   :  { %v7170_v39 = vpop.f32.mrb[22].mxu1 }
0x1475   :  { %v3248_v41 = vpop.f32.mrb[23].mxu1  ;;  %v8787_v49 = vadd.f32 %v7170_v39, %v6527_v31 }
0x1476   :  { %v8772_v43 = vadd.f32 %v6527_v31, %v3248_v41 }
0x1478   :  { %3559 = vrot.lane.b32.xlu1 %v8772_v43, %s8182_s29  ;;  %7186 = vmatprep.mubr.msk.f32.mxu0 %vm211_vm1, %v8772_v43 }
0x14ea   :  { %v3560_v60 = vpop.permute.xlu1 %3559 }
0x14eb   :  { %7200 = vmatprep.mubr.msk.f32.mxu1 %vm211_vm1, %v3560_v60 }
0x1505   :  { %v7181_v40 = vpop.f32.mrb[24].mxu1 }
0x1506   :  { %v3354_v21 = vadd.f32 %v7181_v40, %v3274_v61  ;;  %v3348_v46 = vpop.f32.mrb[25].mxu1  ;;  %v8842_v40 = vld [vmem:[#allocation2 + $0x60] sm:$0xff] }
0x1507   :  { %v3349_v24 = vadd.f32 %v3348_v46, %v3274_v61 }
0x1509   :  { %v8779_v47 = vpack.i.bf16 %v3354_v21, %v3349_v24  ;;  %v7584_v48 = vpack.c.bf16 %v3354_v21, %v3349_v24  ;;  %v8844_v21 = vld [vmem:[#allocation2 + $0x68] sm:$0xff]  ;;  %v8849_v24 = vld [vmem:[#allocation2 + $0x70] sm:$0xff] }
0x150a   :  { %v7902_v46 = vpack.i.bf16 %v8844_v21, %v8842_v40 }
0x150b   :  { %7873 = vrot.lane.b32.xlu1 %v8779_v47, %s8185_s1  ;;  %7868 = vrot.lane.b32.xlu0 %v8779_v47, %s8182_s29 }
0x150c   :  { %7586 = vmatprep.subr.msk.bf16.mxu0 %vm8389_vm2, %v7584_v48 }
0x150d   :  { %7589 = vmatpush3.bf16.xpose.msk.msra.mxu0 %vm8389_vm2, %v7584_v48 }
0x150f   :  { %3924 = vrot.lane.b32.xlu1 %v8787_v49, %s8185_s1  ;;  %3561 = vrot.lane.b32.xlu0 %v8787_v49, %s8182_s29 }
0x1513   :  { %3922 = vrot.lane.b32.xlu0 %v8772_v43, %s8185_s1 }
0x1514   :  { %7187 = vmatmul.mubr.msk.f32.vlgmr.msra.gmra.mrb[26].mxu0 %vm211_vm1, %v8787_v49 }
0x157d   :  { %v7874_v44 = vpop.permute.xlu1 %7873  ;;  %v7869_v50 = vpop.permute.xlu0 %7868 }
0x157e   :  { %v7876_v51 = vunpack.i.h.bf16 %v7874_v44  ;;  %v7875_v63 = vunpack.i.l.bf16 %v7874_v44  ;;  %v7871_v62 = vunpack.i.h.bf16 %v7869_v50  ;;  %v7870_v42 = vunpack.i.l.bf16 %v7869_v50 }
0x1580   :  { %v7596_v52 = vpack.c.bf16 %v7871_v62, %v7870_v42  ;;  %v7608_v7 = vpack.c.bf16 %v7876_v51, %v7875_v63 }
0x1581   :  { %v3562_v5 = vpop.permute.xlu0 %3561  ;;  %v3925_v55 = vpop.permute.xlu1 %3924 }
0x1582   :  { %7598 = vmatprep.subr.msk.bf16.mxu1 %vm8389_vm2, %v7596_v52 }
0x1583   :  { %7601 = vmatpush3.bf16.xpose.msk.msra.mxu1 %vm8389_vm2, %v7596_v52 }
0x1584   :  { %7610 = vmatprep.subr.msk.bf16.mxu1 %vm8389_vm2, %v7608_v7 }
0x1585   :  { %v3923_v54 = vpop.permute.xlu0 %3922 }
0x158a   :  { %7201 = vmatmul.mubr.msk.f32.vlgmr.msra.gmra.mrb[26].mxu1 %vm211_vm1, %v3562_v5 }
0x158b   :  { %7613 = vmatpush3.bf16.xpose.msk.msra.mxu1 %vm8389_vm2, %v7608_v7  ;;  %7224 = vmatprep.mubr.msk.f32.mxu1 %vm211_vm1, %v3923_v54 }
0x1592   :  { %7225 = vmatmul.mubr.msk.f32.vlgmr.msra.gmra.mrb[28].mxu1 %vm211_vm1, %v3925_v55 }
0x15e7   :  { %v7188_v58 = vpop.f32.mrb[26].mxu0 }
0x15e8   :  { %v3446_v59 = vadd.f32 %v7188_v58, %v8813_v56  ;;  %v3440_v0 = vpop.f32.mrb[27].mxu0 }
0x15e9   :  { %v3441_v1 = vadd.f32 %v3440_v0, %v8818_v57 }
0x15ea   :  { %v3452_v2 = vsel %vm1816_vm6, %v3446_v59, -inf }
0x15eb   :  { %3453 = vmax.xlane.f32.xlu1 %v3452_v2  ;;  %v3449_v3 = vsel %vm1816_vm6, %v3441_v1, -inf }
0x15ec   :  { %3450 = vmax.xlane.f32.xlu0 %v3449_v3 }
0x165d   :  { %v7202_v4 = vpop.f32.mrb[26].mxu1 }
0x165e   :  { %v3641_v6 = vpop.f32.mrb[27].mxu1  ;;  %v3647_v9 = vadd.f32 %v7202_v4, %v8813_v56 }
0x165f   :  { %v3642_v8 = vadd.f32 %v3641_v6, %v8818_v57 }
0x1660   :  { %v3653_v11 = vsel %vm1816_vm6, %v3647_v9, -inf }
0x1661   :  { %v3650_v31 = vsel %vm1816_vm6, %v3642_v8, -inf }
0x1662   :  { %3651 = vmax.xlane.f32.xlu0 %v3650_v31 }
0x1665   :  { %v7226_v32 = vpop.f32.mrb[28].mxu1 }
0x1666   :  { %v4004_v12 = vpop.f32.mrb[29].mxu1  ;;  %3654 = vmax.xlane.f32.xlu0 %v3653_v11  ;;  %v7632_v11 = vpack.c.bf16 %v8844_v21, %v8842_v40 }
0x1667   :  { %v4005_v44 = vadd.f32 %v4004_v12, %v8818_v57 }
0x1669   :  { %v4013_v50 = vsel %vm1816_vm6, %v4005_v44, -inf }
0x1678   :  { %v3454_v14 = vpop.xlane.xlu1 %3453 }
0x1679   :  { %v3456_v15 = vsub.f32 %v3446_v59, %v3454_v14  ;;  %v3451_v16 = vpop.xlane.xlu0 %3450 }
0x167a   :  { %v3455_v18 = vsub.f32 %v3441_v1, %v3451_v16 }
0x167b   :  { %v3459_v19 = vmul.f32 1.442695, %v3456_v15 }
0x167c   :  { %v3457_v20 = vmul.f32 1.442695, %v3455_v18 }
0x167d   :  { %8027 = vpow2.f32 %v3459_v19 }
0x167e   :  { %8029 = vpow2.f32 %v3457_v20 }
0x1687   :  { %v8028_v22 = vpop.eup %8027 }
0x1688   :  { %v8030_v23 = vpop.eup %8029  ;;  %v3464_v13 = vsel %vm1816_vm6, %v8028_v22, 0.0 }
0x1689   :  { %3465 = vadd.xlane.f32.xlu0 %v3464_v13  ;;  %v3461_v25 = vsel %vm1816_vm6, %v8030_v23, 0.0 }
0x168a   :  { %3462 = vadd.xlane.f32.xlu1 %v3461_v25 }
0x16ef   :  { %v3652_v28 = vpop.xlane.xlu0 %3651 }
0x16f0   :  { %v3656_v29 = vsub.f32 %v3642_v8, %v3652_v28 }
0x16f2   :  { %v3658_v30 = vmul.f32 1.442695, %v3656_v29 }
0x16f3   :  { %v3655_v33 = vpop.xlane.xlu0 %3654 }
0x16f4   :  { %8031 = vpow2.f32 %v3658_v30  ;;  %v3657_v34 = vsub.f32 %v3647_v9, %v3655_v33  ;;  %v3359_v33 = vld [vmem:[#allocation4 + $0x48] sm:$0xff] }
0x16f6   :  { %v3660_v35 = vmul.f32 1.442695, %v3657_v34  ;;  %v3358_v34 = vld [vmem:[#allocation4 + $0x40] sm:$0xff] }
0x16f8   :  { %8033 = vpow2.f32 %v3660_v35 }
0x16fe   :  { %v8032_v36 = vpop.eup %8031 }
0x16ff   :  { %v3662_v27 = vsel %vm1816_vm6, %v8032_v36, 0.0 }
0x1700   :  { %3663 = vadd.xlane.f32.xlu1 %v3662_v27 }
0x1702   :  { %v8034_v26 = vpop.eup %8033 }
0x1703   :  { %v3665_v39 = vsel %vm1816_vm6, %v8034_v26, 0.0 }
0x1704   :  { %3666 = vadd.xlane.f32.xlu0 %v3665_v39 }
0x1711   :  { %7878 = vrot.lane.b32.xlu1 %v8779_v47, %s8183_s0 }
0x1715   :  { %7888 = vrot.lane.b32.xlu1 %v8779_v47, %s8190_s30 }
0x1716   :  { %v3466_v63 = vpop.xlane.xlu0 %3465 }
0x1717   :  { %v3463_v41 = vpop.xlane.xlu1 %3462 }
0x1718   :  { %8035 = vrcp.f32 %v3463_v41 }
0x1719   :  { %4206 = vrot.lane.b32.xlu1 %v8772_v43, %s8190_s30  ;;  %v8851_v43 = vld [vmem:[#allocation2 + $0x78] sm:$0xff]  ;;  %8037 = vrcp.f32 %v3466_v63 }
0x171a   :  { %7883 = vrot.lane.b32.xlu0 %v8779_v47, %s8184_s20  ;;  %v7907_v48 = vpack.i.bf16 %v8851_v43, %v8849_v24  ;;  %v7636_v15 = vpack.c.bf16 %v8851_v43, %v8849_v24 }
0x171e   :  { %4208 = vrot.lane.b32.xlu0 %v8787_v49, %s8190_s30  ;;  %v4010_v49 = vadd.f32 %v7226_v32, %v8813_v56 }
0x1720   :  { %v4016_v51 = vsel %vm1816_vm6, %v4010_v49, -inf }
0x1722   :  { %v8036_v61 = vpop.eup %8035 }
0x1723   :  { %v3469_v60 = vmul.f32 %v8036_v61, %v8030_v23  ;;  %v8038_v55 = vpop.eup %8037 }
0x1724   :  { %v3470_v6 = vmul.f32 %v8038_v55, %v8028_v22 }
0x1725   :  { %7193 = vmatprep.mubr.msk.f32.mxu0 %vm1816_vm6, %v3469_v60 }
0x173d   :  { %4014 = vmax.xlane.f32.xlu1 %v4013_v50  ;;  %4017 = vmax.xlane.f32.xlu0 %v4016_v51 }
0x178d   :  { %v3664_v62 = vpop.xlane.xlu1 %3663 }
0x178e   :  { %8039 = vrcp.f32 %v3664_v62 }
0x1791   :  { %v7879_v42 = vpop.permute.xlu1 %7878  ;;  %v3667_v52 = vpop.xlane.xlu0 %3666 }
0x1792   :  { %v7881_v7 = vunpack.i.h.bf16 %v7879_v42  ;;  %v7880_v5 = vunpack.i.l.bf16 %v7879_v42  ;;  %8041 = vrcp.f32 %v3667_v52 }
0x1794   :  { %v7590_v54 = vpack.c.bf16 %v7881_v7, %v7880_v5 }
0x1795   :  { %v7889_v58 = vpop.permute.xlu1 %7888  ;;  %v7884_v59 = vpop.permute.xlu0 %7883 }
0x1796   :  { %v7891_v0 = vunpack.i.h.bf16 %v7889_v58  ;;  %v7890_v1 = vunpack.i.l.bf16 %v7889_v58  ;;  %v7886_v2 = vunpack.i.h.bf16 %v7884_v59  ;;  %v7885_v3 = vunpack.i.l.bf16 %v7884_v59  ;;  %7592 = vmatprep.subr.msk.bf16.mxu0 %vm8625_vm9, %v7590_v54 }
0x1797   :  { %7595 = vmatpush3.bf16.msk.msra.mxu0 %vm8625_vm9, %v7590_v54  ;;  %v8902_v54 = vld [vmem:[%s9184_s7 + $0x3] ss:$0 sm:$0xff] }
0x1798   :  { %v8040_v4 = vpop.eup %8039  ;;  %v7620_v8 = vpack.c.bf16 %v7891_v0, %v7890_v1  ;;  %v7602_v9 = vpack.c.bf16 %v7886_v2, %v7885_v3  ;;  %v3360_v0 = vld [vmem:[#allocation4 + $0x50] sm:$0xff] }
0x1799   :  { %v4207_v31 = vpop.permute.xlu1 %4206  ;;  %v3670_v32 = vmul.f32 %v8040_v4, %v8032_v36  ;;  %v4209_v16 = vpop.permute.xlu0 %4208 }
0x179a   :  { %7194 = vmatmul.mubr.msk.f32.vlgmr.msra.gmra.mrb[28].mxu0 %vm1816_vm6, %v3470_v6  ;;  %7604 = vmatprep.subr.msk.bf16.mxu0 %vm8625_vm9, %v7602_v9 }
0x179b   :  { %7622 = vmatprep.subr.msk.bf16.mxu1 %vm8389_vm2, %v7620_v8  ;;  %7243 = vmatprep.mubr.msk.f32.mxu1 %vm211_vm1, %v4207_v31 }
0x179c   :  { %v8042_v12 = vpop.eup %8041  ;;  %7607 = vmatpush3.bf16.msk.msra.mxu0 %vm8625_vm9, %v7602_v9  ;;  %7207 = vmatprep.mubr.msk.f32.mxu0 %vm1816_vm6, %v3670_v32 }
0x179d   :  { %v3671_v14 = vmul.f32 %v8042_v12, %v8034_v26  ;;  %7625 = vmatpush3.bf16.xpose.msk.msra.mxu1 %vm8389_vm2, %v7620_v8  ;;  %7210 = vmatprep.subr.mxu0 %v3359_v33 }
0x179e   :  { %7633 = vmatprep.subr.bf16.mxu1 %v7632_v11 }
0x179f   :  { %7208 = vmatmul.mubr.msk.f32.vlgmr.msra.gmra.mrb[30].mxu0 %vm1816_vm6, %v3671_v14 }
0x17a0   :  { %7211 = vmatpush3.msra.mxu0 %v3359_v33 }
0x17a1   :  { %7215 = vmatprep.subr.mxu0 %v3358_v34 }
0x17a4   :  { %7244 = vmatmul.mubr.msk.f32.vlgmr.msra.gmra.mrb[30].mxu1 %vm211_vm1, %v4209_v16 }
0x17a5   :  { %7635 = vmatpush3.bf16.msra.mxu1 %v7632_v11  ;;  %7266 = vmatprep.mubr.msk.f32.mxu1 %vm119_vm0, %v8764_v37 }
0x17a6   :  { %7637 = vmatprep.subr.bf16.mxu1 %v7636_v15 }
0x17a9   :  { %7639 = vmatpush3.bf16.msra.mxu1 %v7636_v15 }
0x17ac   :  { %7267 = vmatmul.mubr.msk.f32.vlgmr.msra.gmra.mrb[32].mxu1 %vm119_vm0, %v8766_v38 }
0x17ca   :  { %v4015_v18 = vpop.xlane.xlu1 %4014  ;;  %v4018_v19 = vpop.xlane.xlu0 %4017 }
0x17cb   :  { %v4019_v20 = vsub.f32 %v4005_v44, %v4015_v18  ;;  %v4020_v22 = vsub.f32 %v4010_v49, %v4018_v19 }
0x17cd   :  { %v4021_v23 = vmul.f32 1.442695, %v4019_v20  ;;  %v4023_v13 = vmul.f32 1.442695, %v4020_v22 }
0x17cf   :  { %8043 = vpow2.f32 %v4021_v23  ;;  %v3361_v23 = vld [vmem:[#allocation4 + $0x58] sm:$0xff] }
0x17d0   :  { %8045 = vpow2.f32 %v4023_v13 }
0x17d9   :  { %v8044_v25 = vpop.eup %8043 }
0x17da   :  { %v8046_v28 = vpop.eup %8045  ;;  %v4025_v29 = vsel %vm1816_vm6, %v8044_v25, 0.0 }
0x17db   :  { %4026 = vadd.xlane.f32.xlu0 %v4025_v29  ;;  %v4028_v30 = vsel %vm1816_vm6, %v8046_v28, 0.0 }
0x17dc   :  { %4029 = vadd.xlane.f32.xlu1 %v4028_v30 }
0x17f1   :  { %7893 = vrot.lane.b32.xlu0 %v8779_v47, %s8186_s22 }
0x1868   :  { %v4027_v35 = vpop.xlane.xlu0 %4026 }
0x1869   :  { %v4030_v39 = vpop.xlane.xlu1 %4029  ;;  %8047 = vrcp.f32 %v4027_v35 }
0x186a   :  { %8049 = vrcp.f32 %v4030_v39 }
0x186c   :  { %v7894_v27 = vpop.permute.xlu0 %7893 }
0x186d   :  { %v7195_v36 = vpop.f32.mrb[28].mxu0  ;;  %v7896_v41 = vunpack.i.h.bf16 %v7894_v27  ;;  %v7895_v61 = vunpack.i.l.bf16 %v7894_v27 }
0x186e   :  { %v3550_v26 = vpop.f32.mrb[29].mxu0 }
0x186f   :  { %v7614_v44 = vpack.c.bf16 %v7896_v41, %v7895_v61 }
0x1872   :  { %v7209_v60 = vpop.f32.mrb[30].mxu0 }
0x1873   :  { %v3751_v49 = vpop.f32.mrb[31].mxu0  ;;  %v8048_v63 = vpop.eup %8047 }
0x1874   :  { %7212 = vmatprep.mubr.msk.f32.mxu0 %vm211_vm1, %v3751_v49  ;;  %v8050_v7 = vpop.eup %8049  ;;  %v4033_v5 = vmul.f32 %v8048_v63, %v8044_v25 }
0x1875   :  { %7213 = vmatmul.mubr.msk.f32.vlgmr.msra.gmra.mrb[32].mxu0 %vm211_vm1, %v7209_v60 }
0x1876   :  { %7216 = vmatpush3.msra.mxu0 %v3358_v34  ;;  %7217 = vmatprep.mubr.msk.f32.mxu0 %vm211_vm1, %v3550_v26 }
0x1877   :  { %v7245_v50 = vpop.f32.mrb[30].mxu1  ;;  %7616 = vmatprep.subr.msk.bf16.mxu0 %vm8625_vm9, %v7614_v44 }
0x1878   :  { %v4288_v51 = vpop.f32.mrb[31].mxu1  ;;  %v4294_v42 = vadd.f32 %v7245_v50, %v8813_v56 }
0x1879   :  { %v4289_v62 = vadd.f32 %v4288_v51, %v8818_v57  ;;  %v4034_v57 = vmul.f32 %v8050_v7, %v8046_v28 }
0x187a   :  { %v4300_v56 = vsel %vm1816_vm6, %v4294_v42, -inf }
0x187b   :  { %v4297_v52 = vsel %vm1816_vm6, %v4289_v62, -inf }
0x187c   :  { %4298 = vmax.xlane.f32.xlu1 %v4297_v52 }
0x187d   :  { %7218 = vmatmul.mubr.msk.f32.vlgmr.msra.gmra.mrb[32].mxu0 %vm211_vm1, %v7195_v36 }
0x187e   :  { %7619 = vmatpush3.bf16.msk.msra.mxu0 %vm8625_vm9, %v7614_v44  ;;  %7231 = vmatprep.mubr.msk.f32.mxu0 %vm1816_vm6, %v4033_v5 }
0x187f   :  { %v8905_v55 = vpop.f32.mrb[32].mxu1  ;;  %7234 = vmatprep.subr.mxu0 %v3360_v0 }
0x1880   :  { %v4629_v58 = vpop.f32.mrb[33].mxu1  ;;  %4301 = vmax.xlane.f32.xlu1 %v4300_v56 }
0x1881   :  { %v8909_v59 = vadd.f32 %v8902_v54, %v4629_v58  ;;  %7232 = vmatmul.mubr.msk.f32.vlgmr.msra.gmra.mrb[34].mxu0 %vm1816_vm6, %v4034_v57 }
0x1882   :  { %7235 = vmatpush3.msra.mxu0 %v3360_v0 }
0x1883   :  { %7284 = vmatprep.mubr.msk.f32.mxu1 %vm211_vm1, %v8909_v59 }
0x1909   :  { %v4299_v1 = vpop.xlane.xlu1 %4298 }
0x190a   :  { %v4303_v2 = vsub.f32 %v4289_v62, %v4299_v1 }
0x190c   :  { %v4305_v6 = vmul.f32 1.442695, %v4303_v2 }
0x190d   :  { %v4302_v3 = vpop.xlane.xlu1 %4301 }
0x190e   :  { %v4304_v4 = vsub.f32 %v4294_v42, %v4302_v3  ;;  %v6572_v3 = vld [vmem:[%s9187_s10 + $0x2] ss:$0 sm:$0xff] }
0x1910   :  { %v4307_v8 = vmul.f32 1.442695, %v4304_v4 }
0x1912   :  { %8051 = vpow2.f32 %v4307_v8 }
0x1913   :  { %8053 = vpow2.f32 %v4305_v6 }
0x191c   :  { %v8052_v9 = vpop.eup %8051 }
0x191d   :  { %v4312_v31 = vsel %vm1816_vm6, %v8052_v9, 0.0  ;;  %v8054_v32 = vpop.eup %8053 }
0x191e   :  { %4313 = vadd.xlane.f32.xlu1 %v4312_v31  ;;  %v4309_v11 = vsel %vm1816_vm6, %v8054_v32, 0.0 }
0x1922   :  { %4310 = vadd.xlane.f32.xlu1 %v4309_v11 }
0x1933   :  { %7898 = vrot.lane.b32.xlu1 %v8779_v47, %s8188_s3 }
0x1954   :  { %v7233_v12 = vpop.f32.mrb[34].mxu0 }
0x1955   :  { %v4114_v14 = vpop.f32.mrb[35].mxu0 }
0x1956   :  { %7236 = vmatprep.mubr.msk.f32.mxu0 %vm211_vm1, %v4114_v14 }
0x1957   :  { %7237 = vmatmul.mubr.msk.f32.vlgmr.msra.gmra.mrb[32].mxu0 %vm211_vm1, %v7233_v12 }
0x19ab   :  { %v4314_v15 = vpop.xlane.xlu1 %4313 }
0x19ac   :  { %8055 = vrcp.f32 %v4314_v15 }
0x19af   :  { %v4311_v16 = vpop.xlane.xlu1 %4310 }
0x19b0   :  { %8057 = vrcp.f32 %v4311_v16 }
0x19b3   :  { %v7899_v18 = vpop.permute.xlu1 %7898 }
0x19b4   :  { %v7901_v19 = vunpack.i.h.bf16 %v7899_v18  ;;  %v7900_v20 = vunpack.i.l.bf16 %v7899_v18 }
0x19b6   :  { %v7626_v22 = vpack.c.bf16 %v7901_v19, %v7900_v20  ;;  %v8056_v13 = vpop.eup %8055 }
0x19b7   :  { %v4318_v28 = vmul.f32 %v8056_v13, %v8052_v9  ;;  %v6573_v9 = vld [vmem:[%s9188_s11 + $0x2] ss:$0 sm:$0xff] }
0x19b8   :  { %7628 = vmatprep.subr.msk.bf16.mxu0 %vm8625_vm9, %v7626_v22 }
0x19b9   :  { %7631 = vmatpush3.bf16.msk.msra.mxu0 %vm8625_vm9, %v7626_v22  ;;  %v8973_v22 = vadd.f32 %v8905_v55, %v8902_v54 }
0x19ba   :  { %v8058_v47 = vpop.eup %8057  ;;  %7253 = vmatprep.subr.mxu0 %v3361_v23 }
0x19bb   :  { %v4317_v25 = vmul.f32 %v8058_v47, %v8054_v32 }
0x19bd   :  { %7250 = vmatprep.mubr.msk.f32.mxu0 %vm1816_vm6, %v4317_v25 }
0x19be   :  { %7251 = vmatmul.mubr.msk.f32.vlgmr.msra.gmra.mrb[36].mxu0 %vm1816_vm6, %v4318_v28 }
0x19bf   :  { %7254 = vmatpush3.msra.mxu0 %v3361_v23 }
0x1a91   :  { %v7252_v29 = vpop.f32.mrb[36].mxu0 }
0x1a92   :  { %v4398_v30 = vpop.f32.mrb[37].mxu0 }
0x1a93   :  { %7255 = vmatprep.mubr.msk.f32.mxu0 %vm211_vm1, %v4398_v30 }
0x1a94   :  { %7256 = vmatmul.mubr.msk.f32.vlgmr.msra.gmra.mrb[32].mxu0 %vm211_vm1, %v7252_v29 }
0x1b67   :  { %v7257_v33 = vpop.f32.mrb[32].mxu0 }
0x1b68   :  { %v4499_v34 = vadd.f32 %v7257_v33, %v6569_v53  ;;  %v4479_v35 = vpop.f32.mrb[33].mxu0 }
0x1b69   :  { %v4498_v36 = vadd.f32 %v6569_v53, %v4479_v35  ;;  %v9000_v35 = vld [vmem:[%s9182_s5 + $0x8] sm:$0xf] }
0x1b6a   :  { %v4501_v27 = vadd.f32 %v4499_v34, %v8747_v45 }
0x1b6b   :  { %v4500_v26 = vadd.f32 %v4498_v36, %v8744_v10  ;;  %v9005_v36 = vld [vmem:[%s9182_s5] sm:$0xff] }
0x1b6c   :  { %v4509_v39 = vsel %vm119_vm0, %v4501_v27, 0.0 }
0x1b6d   :  { %4510 = vadd.xlane.f32.xlu1 %v4509_v39  ;;  %v4506_v41 = vsel %vm119_vm0, %v4500_v26, 0.0 }
0x1b6e   :  { %4507 = vadd.xlane.f32.xlu0 %v4506_v41 }
0x1b7e   :  { %7908 = vrot.lane.b32.xlu1 %v7907_v48, %s8183_s0 }
0x1b82   :  { %4940 = vrot.lane.b32.xlu1 %v8909_v59, %s8182_s29 }
0x1bfa   :  { %v4511_v61 = vpop.xlane.xlu1 %4510 }
0x1bfb   :  { %v4513_v60 = vmul.f32 0.03125, %v4511_v61  ;;  %v4508_v49 = vpop.xlane.xlu0 %4507 }
0x1bfc   :  { %v4512_v45 = vmul.f32 0.03125, %v4508_v49 }
0x1bfd   :  { %v4515_v44 = vsub.f32 %v4501_v27, %v4513_v60 }
0x1bfe   :  { %v4514_v10 = vsub.f32 %v4500_v26, %v4512_v45  ;;  %v7909_v7 = vpop.permute.xlu1 %7908 }
0x1bff   :  { %v4517_v50 = vmul.f32 %v4515_v44, %v4515_v44  ;;  %v7911_v5 = vunpack.i.h.bf16 %v7909_v7  ;;  %v7910_v57 = vunpack.i.l.bf16 %v7909_v7 }
0x1c00   :  { %v4516_v63 = vmul.f32 %v4514_v10, %v4514_v10 }
0x1c01   :  { %v4521_v51 = vsel %vm119_vm0, %v4517_v50, 0.0  ;;  %v7644_v2 = vpack.c.bf16 %v7911_v5, %v7910_v57 }
0x1c02   :  { %4522 = vadd.xlane.f32.xlu0 %v4521_v51  ;;  %v4518_v62 = vsel %vm119_vm0, %v4516_v63, 0.0  ;;  %v4941_v23 = vpop.permute.xlu1 %4940 }
0x1c06   :  { %4519 = vadd.xlane.f32.xlu0 %v4518_v62 }
0x1c1c   :  { %7903 = vrot.lane.b32.xlu0 %v7902_v46, %s8183_s0 }
0x1c20   :  { %4654 = vrot.lane.b32.xlu0 %v8902_v54, %s8183_s0 }
0x1c8f   :  { %v4523_v24 = vpop.xlane.xlu0 %4522 }
0x1c90   :  { %v4525_v43 = vmul.f32 0.03125, %v4523_v24 }
0x1c92   :  { %v4527_v48 = vadd.f32 1e-05, %v4525_v43 }
0x1c93   :  { %v4520_v42 = vpop.xlane.xlu0 %4519 }
0x1c94   :  { %8059 = vrsqrt.f32 %v4527_v48  ;;  %v4524_v52 = vmul.f32 0.03125, %v4520_v42 }
0x1c96   :  { %v4526_v56 = vadd.f32 1e-05, %v4524_v52 }
0x1c97   :  { %v7904_v58 = vpop.permute.xlu0 %7903 }
0x1c98   :  { %8061 = vrsqrt.f32 %v4526_v56  ;;  %v7906_v0 = vunpack.i.h.bf16 %v7904_v58  ;;  %v7905_v1 = vunpack.i.l.bf16 %v7904_v58 }
0x1c9a   :  { %v7640_v40 = vpack.c.bf16 %v7906_v0, %v7905_v1 }
0x1c9b   :  { %v4655_v12 = vpop.permute.xlu0 %4654 }
0x1c9c   :  { %7641 = vmatprep.subr.bf16.mxu0 %v7640_v40 }
0x1c9d   :  { %7643 = vmatpush3.bf16.msra.mxu0 %v7640_v40 }
0x1c9e   :  { %v8060_v21 = vpop.eup %8059  ;;  %7645 = vmatprep.subr.bf16.mxu0 %v7644_v2 }
0x1c9f   :  { %v4531_v46 = vmul.f32 %v8060_v21, %v4515_v44 }
0x1ca1   :  { %7647 = vmatpush3.bf16.msra.mxu0 %v7644_v2  ;;  %v4539_v8 = vmul.f32 %v6572_v3, %v4531_v46 }
0x1ca2   :  { %v8062_v4 = vpop.eup %8061 }
0x1ca3   :  { %v4530_v6 = vmul.f32 %v8062_v4, %v4514_v10  ;;  %v8957_v11 = vadd.f32 %v6573_v9, %v4539_v8 }
0x1ca5   :  { %v4538_v31 = vmul.f32 %v6572_v3, %v4530_v6 }
0x1ca7   :  { %v8955_v32 = vadd.f32 %v6573_v9, %v4538_v31 }
0x1ca9   :  { %7277 = vmatprep.mubr.msk.f32.mxu0 %vm119_vm0, %v8955_v32 }
0x1caa   :  { %7278 = vmatmul.mubr.msk.f32.vlgmr.msra.gmra.mrb[38].mxu0 %vm119_vm0, %v8957_v11 }
0x1d7d   :  { %v7279_v14 = vpop.f32.mrb[38].mxu0 }
0x1d7e   :  { %v4735_v15 = vadd.f32 %v7279_v14, %v4655_v12  ;;  %v4729_v16 = vpop.f32.mrb[39].mxu0 }
0x1d7f   :  { %v4730_v18 = vadd.f32 %v4729_v16, %v4655_v12 }
0x1d81   :  { %v8963_v19 = vpack.i.bf16 %v4735_v15, %v4730_v18  ;;  %v7648_v20 = vpack.c.bf16 %v4735_v15, %v4730_v18 }
0x1d83   :  { %7918 = vrot.lane.b32.xlu1 %v8963_v19, %s8185_s1  ;;  %7913 = vrot.lane.b32.xlu0 %v8963_v19, %s8182_s29 }
0x1d84   :  { %7650 = vmatprep.subr.msk.bf16.mxu1 %vm8389_vm2, %v7648_v20 }
0x1d85   :  { %7653 = vmatpush3.bf16.xpose.msk.msra.mxu1 %vm8389_vm2, %v7648_v20 }
0x1d87   :  { %5304 = vrot.lane.b32.xlu1 %v8973_v22, %s8185_s1  ;;  %4942 = vrot.lane.b32.xlu0 %v8973_v22, %s8182_s29 }
0x1d8b   :  { %5302 = vrot.lane.b32.xlu0 %v8909_v59, %s8185_s1 }
0x1d8c   :  { %7285 = vmatmul.mubr.msk.f32.vlgmr.msra.gmra.mrb[34].mxu1 %vm211_vm1, %v8973_v22 }
0x1d8d   :  { %7298 = vmatprep.mubr.msk.f32.mxu1 %vm211_vm1, %v4941_v23 }
0x1df5   :  { %v7919_v54 = vpop.permute.xlu1 %7918  ;;  %v7914_v55 = vpop.permute.xlu0 %7913 }
0x1df6   :  { %v7921_v13 = vunpack.i.h.bf16 %v7919_v54  ;;  %v7920_v47 = vunpack.i.l.bf16 %v7919_v54  ;;  %v7916_v25 = vunpack.i.h.bf16 %v7914_v55  ;;  %v7915_v28 = vunpack.i.l.bf16 %v7914_v55 }
0x1df8   :  { %v7658_v29 = vpack.c.bf16 %v7916_v25, %v7915_v28  ;;  %v7668_v30 = vpack.c.bf16 %v7921_v13, %v7920_v47 }
0x1df9   :  { %v4943_v53 = vpop.permute.xlu0 %4942  ;;  %v5305_v34 = vpop.permute.xlu1 %5304 }
0x1dfa   :  { %7660 = vmatprep.subr.msk.bf16.mxu1 %vm8389_vm2, %v7658_v29 }
0x1dfb   :  { %7663 = vmatpush3.bf16.xpose.msk.msra.mxu1 %vm8389_vm2, %v7658_v29 }
0x1dfc   :  { %7670 = vmatprep.subr.msk.bf16.mxu1 %vm8389_vm2, %v7668_v30 }
0x1dfd   :  { %v5303_v33 = vpop.permute.xlu0 %5302 }
0x1e02   :  { %7299 = vmatmul.mubr.msk.f32.vlgmr.msra.gmra.mrb[36].mxu1 %vm211_vm1, %v4943_v53 }
0x1e03   :  { %7673 = vmatpush3.bf16.xpose.msk.msra.mxu1 %vm8389_vm2, %v7668_v30  ;;  %7322 = vmatprep.mubr.msk.f32.mxu1 %vm211_vm1, %v5303_v33 }
0x1e0a   :  { %7323 = vmatmul.mubr.msk.f32.vlgmr.msra.gmra.mrb[38].mxu1 %vm211_vm1, %v5305_v34  ;;  %v6618_v34 = vld [vmem:[%s9189_s12 + $0x40] sm:$0xff] }
0x1e5f   :  { %v7286_v27 = vpop.f32.mrb[34].mxu1 }
0x1e60   :  { %v4827_v26 = vadd.f32 %v7286_v27, %v9000_v35  ;;  %v4821_v39 = vpop.f32.mrb[35].mxu1  ;;  %v6619_v27 = vld [vmem:[%s9189_s12 + $0x48] sm:$0xff] }
0x1e61   :  { %v4822_v41 = vadd.f32 %v4821_v39, %v9005_v36 }
0x1e62   :  { %v4834_v61 = vsel %vm4833_vm11, %v4827_v26, -inf }
0x1e63   :  { %4835 = vmax.xlane.f32.xlu1 %v4834_v61  ;;  %v4830_v60 = vsel %vm295_vm3, %v4822_v41, -inf }
0x1e64   :  { %4831 = vmax.xlane.f32.xlu0 %v4830_v60 }
0x1ed5   :  { %v7300_v49 = vpop.f32.mrb[36].mxu1 }
0x1ed6   :  { %v5022_v45 = vpop.f32.mrb[37].mxu1  ;;  %v5028_v10 = vadd.f32 %v7300_v49, %v9000_v35 }
0x1ed7   :  { %v5023_v44 = vadd.f32 %v5022_v45, %v9005_v36  ;;  %v7688_v45 = vpack.c.bf16 %v6619_v27, %v6618_v34 }
0x1ed8   :  { %v5034_v63 = vsel %vm4833_vm11, %v5028_v10, -inf }
0x1ed9   :  { %v5031_v50 = vsel %vm295_vm3, %v5023_v44, -inf }
0x1eda   :  { %5032 = vmax.xlane.f32.xlu0 %v5031_v50  ;;  %v6620_v50 = vld [vmem:[%s9189_s12 + $0x50] sm:$0xff] }
0x1edd   :  { %v7324_v51 = vpop.f32.mrb[38].mxu1 }
0x1ede   :  { %v5384_v62 = vpop.f32.mrb[39].mxu1  ;;  %5035 = vmax.xlane.f32.xlu0 %v5034_v63  ;;  %v5390_v14 = vadd.f32 %v7324_v51, %v9000_v35  ;;  %v6621_v51 = vld [vmem:[%s9189_s12 + $0x58] sm:$0xff] }
0x1edf   :  { %v5385_v15 = vadd.f32 %v5384_v62, %v9005_v36  ;;  %v7692_v63 = vpack.c.bf16 %v6621_v51, %v6620_v50 }
0x1ee0   :  { %v5396_v18 = vsel %vm4833_vm11, %v5390_v14, -inf }
0x1ee1   :  { %v5393_v16 = vsel %vm295_vm3, %v5385_v15, -inf }
0x1ef0   :  { %v4836_v24 = vpop.xlane.xlu1 %4835 }
0x1ef1   :  { %v4838_v43 = vsub.f32 %v4827_v26, %v4836_v24  ;;  %v4832_v48 = vpop.xlane.xlu0 %4831 }
0x1ef2   :  { %v4837_v42 = vsub.f32 %v4822_v41, %v4832_v48 }
0x1ef3   :  { %v4841_v52 = vmul.f32 1.442695, %v4838_v43 }
0x1ef4   :  { %v4839_v7 = vmul.f32 1.442695, %v4837_v42 }
0x1ef5   :  { %8063 = vpow2.f32 %v4841_v52 }
0x1ef6   :  { %8065 = vpow2.f32 %v4839_v7 }
0x1eff   :  { %v8064_v5 = vpop.eup %8063 }
0x1f00   :  { %v8066_v57 = vpop.eup %8065  ;;  %v4846_v56 = vsel %vm4833_vm11, %v8064_v5, 0.0 }
0x1f01   :  { %4847 = vadd.xlane.f32.xlu0 %v4846_v56  ;;  %v4843_v58 = vsel %vm295_vm3, %v8066_v57, 0.0 }
0x1f02   :  { %4844 = vadd.xlane.f32.xlu1 %v4843_v58  ;;  %v4740_v58 = vld [vmem:[#allocation4 + $0x68] sm:$0xff] }
0x1f67   :  { %v5033_v0 = vpop.xlane.xlu0 %5032 }
0x1f68   :  { %v5037_v1 = vsub.f32 %v5023_v44, %v5033_v0  ;;  %v4739_v0 = vld [vmem:[#allocation4 + $0x60] sm:$0xff] }
0x1f6a   :  { %v5039_v2 = vmul.f32 1.442695, %v5037_v1 }
0x1f6b   :  { %v5036_v40 = vpop.xlane.xlu0 %5035 }
0x1f6c   :  { %8067 = vpow2.f32 %v5039_v2  ;;  %v5038_v21 = vsub.f32 %v5028_v10, %v5036_v40 }
0x1f6e   :  { %v5041_v46 = vmul.f32 1.442695, %v5038_v21 }
0x1f70   :  { %8069 = vpow2.f32 %v5041_v46 }
0x1f76   :  { %v8068_v3 = vpop.eup %8067 }
0x1f77   :  { %v5043_v4 = vsel %vm295_vm3, %v8068_v3, 0.0 }
0x1f78   :  { %5044 = vadd.xlane.f32.xlu1 %v5043_v4 }
0x1f7a   :  { %v8070_v6 = vpop.eup %8069 }
0x1f7b   :  { %v5046_v8 = vsel %vm4833_vm11, %v8070_v6, 0.0 }
0x1f7c   :  { %5047 = vadd.xlane.f32.xlu0 %v5046_v8 }
0x1f89   :  { %7923 = vrot.lane.b32.xlu1 %v8963_v19, %s8183_s0 }
0x1f8d   :  { %7933 = vrot.lane.b32.xlu1 %v8963_v19, %s8190_s30 }
0x1f8f   :  { %v4845_v9 = vpop.xlane.xlu1 %4844 }
0x1f90   :  { %8071 = vrcp.f32 %v4845_v9 }
0x1f91   :  { %5585 = vrot.lane.b32.xlu1 %v8909_v59, %s8190_s30  ;;  %v4848_v59 = vpop.xlane.xlu0 %4847 }
0x1f92   :  { %7928 = vrot.lane.b32.xlu0 %v8963_v19, %s8184_s20  ;;  %8073 = vrcp.f32 %v4848_v59 }
0x1f96   :  { %5587 = vrot.lane.b32.xlu0 %v8973_v22, %s8190_s30 }
0x1f9a   :  { %v8072_v31 = vpop.eup %8071 }
0x1f9b   :  { %v4851_v12 = vmul.f32 %v8072_v31, %v8066_v57 }
0x1f9c   :  { %v8074_v47 = vpop.eup %8073 }
0x1f9d   :  { %7291 = vmatprep.mubr.msk.f32.mxu0 %vm295_vm3, %v4851_v12  ;;  %v4852_v39 = vmul.f32 %v8074_v47, %v8064_v5 }
0x1fb5   :  { %5394 = vmax.xlane.f32.xlu1 %v5393_v16  ;;  %5397 = vmax.xlane.f32.xlu0 %v5396_v18 }
0x2005   :  { %v5045_v20 = vpop.xlane.xlu1 %5044 }
0x2006   :  { %8075 = vrcp.f32 %v5045_v20 }
0x2009   :  { %v7924_v23 = vpop.permute.xlu1 %7923  ;;  %v5048_v22 = vpop.xlane.xlu0 %5047 }
0x200a   :  { %v7926_v54 = vunpack.i.h.bf16 %v7924_v23  ;;  %v7925_v55 = vunpack.i.l.bf16 %v7924_v23  ;;  %8077 = vrcp.f32 %v5048_v22 }
0x200c   :  { %v7654_v13 = vpack.c.bf16 %v7926_v54, %v7925_v55 }
0x200d   :  { %v7934_v25 = vpop.permute.xlu1 %7933  ;;  %v7929_v28 = vpop.permute.xlu0 %7928 }
0x200e   :  { %v7936_v29 = vunpack.i.h.bf16 %v7934_v25  ;;  %v7935_v30 = vunpack.i.l.bf16 %v7934_v25  ;;  %v7931_v53 = vunpack.i.h.bf16 %v7929_v28  ;;  %v7930_v33 = vunpack.i.l.bf16 %v7929_v28  ;;  %7655 = vmatprep.subr.bf16.mxu0 %v7654_v13 }
0x200f   :  { %7657 = vmatpush3.bf16.msra.mxu0 %v7654_v13 }
0x2010   :  { %v8076_v26 = vpop.eup %8075  ;;  %v7678_v41 = vpack.c.bf16 %v7936_v29, %v7935_v30  ;;  %v7664_v61 = vpack.c.bf16 %v7931_v53, %v7930_v33 }
0x2011   :  { %v5586_v60 = vpop.permute.xlu1 %5585  ;;  %v5051_v49 = vmul.f32 %v8076_v26, %v8068_v3  ;;  %v5588_v62 = vpop.permute.xlu0 %5587 }
0x2012   :  { %7292 = vmatmul.mubr.msk.f32.vlgmr.msra.gmra.mrb[40].mxu0 %vm295_vm3, %v4852_v39  ;;  %7665 = vmatprep.subr.bf16.mxu0 %v7664_v61 }
0x2013   :  { %7680 = vmatprep.subr.msk.bf16.mxu1 %vm8389_vm2, %v7678_v41  ;;  %7341 = vmatprep.mubr.msk.f32.mxu1 %vm211_vm1, %v5586_v60 }
0x2014   :  { %v8078_v44 = vpop.eup %8077  ;;  %7667 = vmatpush3.bf16.msra.mxu0 %v7664_v61  ;;  %7305 = vmatprep.mubr.msk.f32.mxu0 %vm295_vm3, %v5051_v49 }
0x2015   :  { %v5052_v10 = vmul.f32 %v8078_v44, %v8070_v6  ;;  %7683 = vmatpush3.bf16.xpose.msk.msra.mxu1 %vm8389_vm2, %v7678_v41  ;;  %7308 = vmatprep.subr.mxu0 %v4740_v58  ;;  %v4742_v44 = vld [vmem:[#allocation4 + $0x78] sm:$0xff] }
0x2016   :  { %7689 = vmatprep.subr.bf16.mxu1 %v7688_v45 }
0x2017   :  { %7306 = vmatmul.mubr.msk.f32.vlgmr.msra.gmra.mrb[42].mxu0 %vm295_vm3, %v5052_v10 }
0x2018   :  { %7309 = vmatpush3.msra.mxu0 %v4740_v58  ;;  %v6022_v58 = vld [vmem:[#allocation6 + $0xa8] sm:$0xff] }
0x2019   :  { %7313 = vmatprep.subr.mxu0 %v4739_v0 }
0x201c   :  { %7342 = vmatmul.mubr.msk.f32.vlgmr.msra.gmra.mrb[40].mxu1 %vm211_vm1, %v5588_v62  ;;  %v6018_v62 = vld [vmem:[#allocation6 + $0x88] sm:$0xff] }
0x201d   :  { %7691 = vmatpush3.bf16.msra.mxu1 %v7688_v45  ;;  %7364 = vmatprep.mubr.msk.f32.mxu1 %vm119_vm0, %v8955_v32 }
0x201e   :  { %7693 = vmatprep.subr.bf16.mxu1 %v7692_v63 }
0x2021   :  { %7695 = vmatpush3.bf16.msra.mxu1 %v7692_v63  ;;  %v6017_v63 = vld [vmem:[#allocation6 + $0x80] sm:$0xff] }
0x2024   :  { %7365 = vmatmul.mubr.msk.f32.vlgmr.msra.gmra.mrb[42].mxu1 %vm119_vm0, %v8957_v11 }
0x2042   :  { %v5395_v17 = vpop.xlane.xlu1 %5394  ;;  %v5398_v24 = vpop.xlane.xlu0 %5397 }
0x2043   :  { %v5399_v43 = vsub.f32 %v5385_v15, %v5395_v17  ;;  %v5400_v48 = vsub.f32 %v5390_v14, %v5398_v24  ;;  %v7696_v17 = vpack.c.bf16 %v6018_v62, %v6017_v63  ;;  %v6623_v24 = vld [vmem:[%s9190_s13 + $0x2] ss:$0 sm:$0xff]  ;;  %v6617_v62 = vld [vmem:[%s9188_s11 + $0x3] ss:$0 sm:$0xff] }
0x2045   :  { %v5401_v42 = vmul.f32 1.442695, %v5399_v43  ;;  %v5403_v52 = vmul.f32 1.442695, %v5400_v48  ;;  %v6019_v48 = vld [vmem:[#allocation6 + $0x90] sm:$0xff] }
0x2047   :  { %8079 = vpow2.f32 %v5401_v42  ;;  %v6020_v42 = vld [vmem:[#allocation6 + $0x98] sm:$0xff] }
0x2048   :  { %8081 = vpow2.f32 %v5403_v52 }
0x2051   :  { %v8080_v7 = vpop.eup %8079 }
0x2052   :  { %v8082_v5 = vpop.eup %8081  ;;  %v5405_v57 = vsel %vm295_vm3, %v8080_v7, 0.0 }
0x2053   :  { %5406 = vadd.xlane.f32.xlu0 %v5405_v57  ;;  %v5408_v56 = vsel %vm4833_vm11, %v8082_v5, 0.0 }
0x2054   :  { %5409 = vadd.xlane.f32.xlu1 %v5408_v56  ;;  %v6021_v56 = vld [vmem:[#allocation6 + $0xa0] sm:$0xff] }
0x2069   :  { %7938 = vrot.lane.b32.xlu0 %v8963_v19, %s8186_s22 }
0x20e0   :  { %v5407_v1 = vpop.xlane.xlu0 %5406 }
0x20e1   :  { %v5410_v46 = vpop.xlane.xlu1 %5409  ;;  %8083 = vrcp.f32 %v5407_v1  ;;  %v6023_v1 = vld [vmem:[#allocation6 + $0xb0] sm:$0xff] }
0x20e2   :  { %8085 = vrcp.f32 %v5410_v46 }
0x20e4   :  { %v7939_v40 = vpop.permute.xlu0 %7938 }
0x20e5   :  { %v7293_v2 = vpop.f32.mrb[40].mxu0  ;;  %v7941_v3 = vunpack.i.h.bf16 %v7939_v40  ;;  %v7940_v4 = vunpack.i.l.bf16 %v7939_v40 }
0x20e6   :  { %v4931_v21 = vpop.f32.mrb[41].mxu0 }
0x20e7   :  { %v7674_v9 = vpack.c.bf16 %v7941_v3, %v7940_v4  ;;  %v6613_v3 = vld [vmem:[%s9186_s9 + $0x3] ss:$0 sm:$0xff] }
0x20ea   :  { %v7307_v6 = vpop.f32.mrb[42].mxu0 }
0x20eb   :  { %v5131_v8 = vpop.f32.mrb[43].mxu0  ;;  %v8084_v14 = vpop.eup %8083 }
0x20ec   :  { %7310 = vmatprep.mubr.msk.f32.mxu0 %vm211_vm1, %v5131_v8  ;;  %v8086_v59 = vpop.eup %8085  ;;  %v5413_v20 = vmul.f32 %v8084_v14, %v8080_v7 }
0x20ed   :  { %7311 = vmatmul.mubr.msk.f32.vlgmr.msra.gmra.mrb[44].mxu0 %vm211_vm1, %v7307_v6  ;;  %v5414_v23 = vmul.f32 %v8086_v59, %v8082_v5  ;;  %v7700_v5 = vpack.c.bf16 %v6020_v42, %v6019_v48  ;;  %v6261_v42 = vld [vmem:[#allocation6 + $0xd0] sm:$0xff] }
0x20ee   :  { %7314 = vmatpush3.msra.mxu0 %v4739_v0  ;;  %7315 = vmatprep.mubr.msk.f32.mxu0 %vm211_vm1, %v4931_v21  ;;  %v7704_v0 = vpack.c.bf16 %v6022_v58, %v6021_v56  ;;  %v6263_v56 = vld [vmem:[#allocation6 + $0xe0] sm:$0xff]  ;;  %v6264_v58 = vld [vmem:[#allocation6 + $0xe8] sm:$0xff] }
0x20ef   :  { %v7343_v31 = vpop.f32.mrb[40].mxu1  ;;  %7675 = vmatprep.subr.bf16.mxu0 %v7674_v9 }
0x20f0   :  { %v5667_v12 = vpop.f32.mrb[41].mxu1  ;;  %v5673_v16 = vadd.f32 %v7343_v31, %v9000_v35  ;;  %v4741_v35 = vld [vmem:[#allocation4 + $0x70] sm:$0xff] }
0x20f1   :  { %v5668_v15 = vadd.f32 %v5667_v12, %v9005_v36 }
0x20f2   :  { %v5679_v54 = vsel %vm4833_vm11, %v5673_v16, -inf }
0x20f3   :  { %v5676_v18 = vsel %vm295_vm3, %v5668_v15, -inf }
0x20f4   :  { %5677 = vmax.xlane.f32.xlu1 %v5676_v18 }
0x20f5   :  { %7316 = vmatmul.mubr.msk.f32.vlgmr.msra.gmra.mrb[44].mxu0 %vm211_vm1, %v7293_v2  ;;  %v6024_v2 = vld [vmem:[#allocation6 + $0xb8] sm:$0xff] }
0x20f6   :  { %7677 = vmatpush3.bf16.msra.mxu0 %v7674_v9  ;;  %7329 = vmatprep.mubr.msk.f32.mxu0 %vm295_vm3, %v5413_v20  ;;  %v7708_v40 = vpack.c.bf16 %v6024_v2, %v6023_v1  ;;  %v6265_v1 = vld [vmem:[#allocation6 + $0xf0] sm:$0xff]  ;;  %v6266_v2 = vld [vmem:[#allocation6 + $0xf8] sm:$0xff] }
0x20f7   :  { %v9071_v22 = vpop.f32.mrb[42].mxu1  ;;  %7332 = vmatprep.subr.mxu0 %v4741_v35 }
0x20f8   :  { %v6005_v55 = vpop.f32.mrb[43].mxu1  ;;  %5680 = vmax.xlane.f32.xlu1 %v5679_v54  ;;  %v6011_v21 = vadd.f32 %v9071_v22, %v6623_v24 }
0x20f9   :  { %7330 = vmatmul.mubr.msk.f32.vlgmr.msra.gmra.mrb[46].mxu0 %vm295_vm3, %v5414_v23  ;;  %v6006_v43 = vadd.f32 %v6623_v24, %v6005_v55 }
0x20fa   :  { %7333 = vmatpush3.msra.mxu0 %v4741_v35  ;;  %v6015_v46 = vmax.f32 %v6011_v21, 0.0  ;;  %v6639_v21 = vld [vmem:[%s9190_s13 + $0x3] ss:$0 sm:$0xff] }
0x20fb   :  { %v6014_v57 = vmax.f32 %v6006_v43, 0.0 }
0x2181   :  { %v5678_v36 = vpop.xlane.xlu1 %5677 }
0x2182   :  { %v5682_v13 = vsub.f32 %v5668_v15, %v5678_v36 }
0x2184   :  { %v5684_v28 = vmul.f32 1.442695, %v5682_v13 }
0x2185   :  { %v5681_v47 = vpop.xlane.xlu1 %5680 }
0x2186   :  { %v5683_v25 = vsub.f32 %v5673_v16, %v5681_v47 }
0x2188   :  { %v5686_v29 = vmul.f32 1.442695, %v5683_v25 }
0x218a   :  { %8087 = vpow2.f32 %v5686_v29 }
0x218b   :  { %8089 = vpow2.f32 %v5684_v28 }
0x2194   :  { %v8088_v30 = vpop.eup %8087 }
0x2195   :  { %v5691_v53 = vsel %vm4833_vm11, %v8088_v30, 0.0  ;;  %v8090_v33 = vpop.eup %8089 }
0x2196   :  { %5692 = vadd.xlane.f32.xlu1 %v5691_v53  ;;  %v5688_v34 = vsel %vm295_vm3, %v8090_v33, 0.0 }
0x219a   :  { %5689 = vadd.xlane.f32.xlu1 %v5688_v34 }
0x21ab   :  { %7943 = vrot.lane.b32.xlu1 %v8963_v19, %s8188_s3 }
0x21cc   :  { %v7331_v27 = vpop.f32.mrb[46].mxu0 }
0x21cd   :  { %v5493_v26 = vpop.f32.mrb[47].mxu0 }
0x21ce   :  { %7334 = vmatprep.mubr.msk.f32.mxu0 %vm211_vm1, %v5493_v26 }
0x21cf   :  { %7335 = vmatmul.mubr.msk.f32.vlgmr.msra.gmra.mrb[44].mxu0 %vm211_vm1, %v7331_v27  ;;  %v6637_v27 = vld [vmem:[%s9189_s12 + $0x78] sm:$0xff] }
0x2223   :  { %v5693_v39 = vpop.xlane.xlu1 %5692 }
0x2224   :  { %8091 = vrcp.f32 %v5693_v39  ;;  %v6259_v39 = vld [vmem:[#allocation6 + $0xc0] sm:$0xff] }
0x2227   :  { %v5690_v41 = vpop.xlane.xlu1 %5689 }
0x2228   :  { %8093 = vrcp.f32 %v5690_v41  ;;  %v6260_v41 = vld [vmem:[#allocation6 + $0xc8] sm:$0xff] }
0x222b   :  { %v7944_v61 = vpop.permute.xlu1 %7943 }
0x222c   :  { %v7946_v60 = vunpack.i.h.bf16 %v7944_v61  ;;  %v7945_v49 = vunpack.i.l.bf16 %v7944_v61  ;;  %v7720_v61 = vpack.c.bf16 %v6260_v41, %v6259_v39 }
0x222e   :  { %v7684_v45 = vpack.c.bf16 %v7946_v60, %v7945_v49  ;;  %v8092_v10 = vpop.eup %8091 }
0x222f   :  { %v5697_v51 = vmul.f32 %v8092_v10, %v8088_v30 }
0x2230   :  { %7685 = vmatprep.subr.bf16.mxu0 %v7684_v45 }
0x2231   :  { %7687 = vmatpush3.bf16.msra.mxu0 %v7684_v45 }
0x2232   :  { %v8094_v50 = vpop.eup %8093  ;;  %7351 = vmatprep.subr.mxu0 %v4742_v44 }
0x2233   :  { %v5696_v19 = vmul.f32 %v8094_v50, %v8090_v33  ;;  %v6634_v33 = vld [vmem:[%s9189_s12 + $0x60] sm:$0xff] }
0x2235   :  { %7348 = vmatprep.mubr.msk.f32.mxu0 %vm295_vm3, %v5696_v19 }
0x2236   :  { %7349 = vmatmul.mubr.msk.f32.vlgmr.msra.gmra.mrb[48].mxu0 %vm295_vm3, %v5697_v51  ;;  %v6616_v51 = vld [vmem:[%s9187_s10 + $0x3] ss:$0 sm:$0xff] }
0x2237   :  { %7352 = vmatpush3.msra.mxu0 %v4742_v44 }
0x2238   :  { %7697 = vmatprep.subr.bf16.mxu0 %v7696_v17 }
0x2309   :  { %v7350_v52 = vpop.f32.mrb[48].mxu0 }
0x230a   :  { %v5776_v7 = vpop.f32.mrb[49].mxu0 }
0x230b   :  { %7353 = vmatprep.mubr.msk.f32.mxu0 %vm211_vm1, %v5776_v7 }
0x230c   :  { %7354 = vmatmul.mubr.msk.f32.vlgmr.msra.gmra.mrb[44].mxu0 %vm211_vm1, %v7350_v52  ;;  %v6262_v52 = vld [vmem:[#allocation6 + $0xd8] sm:$0xff] }
0x230d   :  { %7699 = vmatpush3.bf16.msra.mxu0 %v7696_v17  ;;  %7383 = vmatprep.mubr.msk.f32.mxu0 %vm1498_vm4, %v6014_v57  ;;  %v7724_v57 = vpack.c.bf16 %v6262_v52, %v6261_v42 }
0x230e   :  { %7701 = vmatprep.subr.bf16.mxu0 %v7700_v5 }
0x2311   :  { %7703 = vmatpush3.bf16.msra.mxu0 %v7700_v5 }
0x2312   :  { %7705 = vmatprep.subr.bf16.mxu0 %v7704_v0 }
0x2315   :  { %7707 = vmatpush3.bf16.msra.mxu0 %v7704_v0  ;;  %v7728_v0 = vpack.c.bf16 %v6264_v58, %v6263_v56  ;;  %v6648_v58 = vld [vmem:[%s9193_s16 + $0x3] ss:$0 sm:$0xff] }
0x2316   :  { %7709 = vmatprep.subr.bf16.mxu0 %v7708_v40 }
0x2319   :  { %7711 = vmatpush3.bf16.msra.mxu0 %v7708_v40  ;;  %v7732_v40 = vpack.c.bf16 %v6266_v2, %v6265_v1  ;;  %v6649_v2 = vld [vmem:[%s9194_s17 + $0x3] ss:$0 sm:$0xff] }
0x231c   :  { %7384 = vmatmul.mubr.msk.f32.vlgmr.msra.gmra.mrb[50].mxu0 %vm1498_vm4, %v6015_v46 }
0x23df   :  { %v7355_v4 = vpop.f32.mrb[44].mxu0 }
0x23e0   :  { %v5877_v6 = vadd.f32 %v7355_v4, %v6613_v3  ;;  %v5857_v8 = vpop.f32.mrb[45].mxu0 }
0x23e1   :  { %v5876_v9 = vadd.f32 %v6613_v3, %v5857_v8 }
0x23e2   :  { %v5879_v31 = vadd.f32 %v5877_v6, %v8766_v38  ;;  %v6627_v38 = vld [vmem:[%s9192_s15 + $0x2] ss:$0 sm:$0xff] }
0x23e3   :  { %v5878_v12 = vadd.f32 %v5876_v9, %v8764_v37 }
0x23e4   :  { %v5887_v14 = vsel %vm2879_vm10, %v5879_v31, 0.0 }
0x23e5   :  { %5888 = vadd.xlane.f32.xlu1 %v5887_v14  ;;  %v5884_v15 = vsel %vm119_vm0, %v5878_v12, 0.0 }
0x23e6   :  { %5885 = vadd.xlane.f32.xlu0 %v5884_v15 }
0x23ef   :  { %v7385_v16 = vpop.f32.mrb[50].mxu0 }
0x23f0   :  { %v6105_v18 = vpop.f32.mrb[51].mxu0  ;;  %v6111_v47 = vadd.f32 %v7385_v16, %v6627_v38  ;;  %v6643_v16 = vld [vmem:[%s9192_s15 + $0x3] ss:$0 sm:$0xff] }
0x23f1   :  { %v6106_v37 = vadd.f32 %v6627_v38, %v6105_v18 }
0x23f2   :  { %v9107_v29 = vadd.f32 %v6111_v47, %v8957_v11  ;;  %v6636_v11 = vld [vmem:[%s9189_s12 + $0x70] sm:$0xff] }
0x23f3   :  { %v9103_v25 = vadd.f32 %v6106_v37, %v8955_v32  ;;  %v6635_v32 = vld [vmem:[%s9189_s12 + $0x68] sm:$0xff]  ;;  %v7716_v26 = vpack.c.bf16 %v6637_v27, %v6636_v11 }
0x23f4   :  { %v6123_v53 = vsel %vm119_vm0, %v9107_v29, 0.0  ;;  %v7712_v34 = vpack.c.bf16 %v6635_v32, %v6634_v33 }
0x23f5   :  { %v6120_v30 = vsel %vm119_vm0, %v9103_v25, 0.0 }
0x23f6   :  { %7713 = vmatprep.subr.bf16.mxu1 %v7712_v34 }
0x23f7   :  { %7715 = vmatpush3.bf16.msra.mxu1 %v7712_v34 }
0x23f8   :  { %7717 = vmatprep.subr.bf16.mxu1 %v7716_v26 }
0x23fb   :  { %7719 = vmatpush3.bf16.msra.mxu1 %v7716_v26 }
0x23fc   :  { %7721 = vmatprep.subr.bf16.mxu1 %v7720_v61 }
0x2472   :  { %v5889_v59 = vpop.xlane.xlu1 %5888 }
0x2473   :  { %v5891_v20 = vmul.f32 0.03125, %v5889_v59  ;;  %v5886_v23 = vpop.xlane.xlu0 %5885 }
0x2474   :  { %v5890_v22 = vmul.f32 0.03125, %v5886_v23 }
0x2475   :  { %v5893_v54 = vsub.f32 %v5879_v31, %v5891_v20 }
0x2476   :  { %v5892_v55 = vsub.f32 %v5878_v12, %v5890_v22 }
0x2477   :  { %v5895_v13 = vmul.f32 %v5893_v54, %v5893_v54 }
0x2478   :  { %v5894_v35 = vmul.f32 %v5892_v55, %v5892_v55 }
0x2479   :  { %v5899_v28 = vsel %vm2879_vm10, %v5895_v13, 0.0 }
0x247a   :  { %v5896_v36 = vsel %vm119_vm0, %v5894_v35, 0.0 }
0x247b   :  { %5897 = vadd.xlane.f32.xlu0 %v5896_v36 }
0x247f   :  { %5900 = vadd.xlane.f32.xlu0 %v5899_v28 }
0x2483   :  { %6121 = vadd.xlane.f32.xlu0 %v6120_v30 }
0x2487   :  { %6124 = vadd.xlane.f32.xlu0 %v6123_v53 }
0x2508   :  { %v5898_v60 = vpop.xlane.xlu0 %5897 }
0x2509   :  { %v5902_v49 = vmul.f32 0.03125, %v5898_v60 }
0x250b   :  { %v5904_v45 = vadd.f32 1e-05, %v5902_v49 }
0x250c   :  { %v5901_v44 = vpop.xlane.xlu0 %5900 }
0x250d   :  { %8095 = vrsqrt.f32 %v5904_v45  ;;  %v5903_v10 = vmul.f32 0.03125, %v5901_v44 }
0x250f   :  { %v5905_v50 = vadd.f32 1e-05, %v5903_v10  ;;  %v6632_v10 = vld [vmem:[%s9193_s16 + $0x2] ss:$0 sm:$0xff] }
0x2510   :  { %v6122_v31 = vpop.xlane.xlu0 %6121 }
0x2511   :  { %8097 = vrsqrt.f32 %v5905_v50  ;;  %v6126_v15 = vmul.f32 0.03125, %v6122_v31 }
0x2513   :  { %v6128_v22 = vsub.f32 %v9103_v25, %v6126_v15 }
0x2514   :  { %v6125_v12 = vpop.xlane.xlu0 %6124 }
0x2515   :  { %v6127_v14 = vmul.f32 0.03125, %v6125_v12  ;;  %v6130_v13 = vmul.f32 %v6128_v22, %v6128_v22 }
0x2517   :  { %v8096_v19 = vpop.eup %8095  ;;  %v6129_v59 = vsub.f32 %v9107_v29, %v6127_v14  ;;  %v6132_v28 = vsel %vm119_vm0, %v6130_v13, 0.0 }
0x2518   :  { %v5908_v63 = vmul.f32 %v8096_v19, %v5892_v55 }
0x2519   :  { %v6131_v37 = vmul.f32 %v6129_v59, %v6129_v59 }
0x251a   :  { %v5916_v17 = vmul.f32 %v6616_v51, %v5908_v63 }
0x251b   :  { %v8098_v24 = vpop.eup %8097  ;;  %v6135_v47 = vsel %vm119_vm0, %v6131_v37, 0.0 }
0x251c   :  { %v5909_v43 = vmul.f32 %v8098_v24, %v5893_v54  ;;  %v5924_v48 = vadd.f32 %v6617_v62, %v5916_v17 }
0x251e   :  { %v5917_v7 = vmul.f32 %v6616_v51, %v5909_v43  ;;  %7394 = vmatprep.mubr.msk.f32.mxu1 %vm119_vm0, %v5924_v48  ;;  %v6633_v51 = vld [vmem:[%s9194_s17 + $0x2] ss:$0 sm:$0xff] }
0x2520   :  { %v5925_v5 = vadd.f32 %v6617_v62, %v5917_v7 }
0x2522   :  { %7395 = vmatmul.mubr.msk.f32.vlgmr.msra.gmra.mrb[44].mxu1 %vm119_vm0, %v5925_v5 }
0x2523   :  { %7723 = vmatpush3.bf16.msra.mxu1 %v7720_v61 }
0x2524   :  { %7725 = vmatprep.subr.bf16.mxu1 %v7724_v57 }
0x2527   :  { %7727 = vmatpush3.bf16.msra.mxu1 %v7724_v57 }
0x2528   :  { %7729 = vmatprep.subr.bf16.mxu1 %v7728_v0 }
0x252b   :  { %7731 = vmatpush3.bf16.msra.mxu1 %v7728_v0 }
0x252c   :  { %7733 = vmatprep.subr.bf16.mxu1 %v7732_v40 }
0x252f   :  { %7735 = vmatpush3.bf16.msra.mxu1 %v7732_v40 }
0x25f5   :  { %v7396_v46 = vpop.f32.mrb[44].mxu1 }
0x25f6   :  { %v6253_v3 = vadd.f32 %v7396_v46, %v6639_v21  ;;  %v6247_v4 = vpop.f32.mrb[45].mxu1 }
0x25f7   :  { %v6248_v6 = vadd.f32 %v6639_v21, %v6247_v4 }
0x25f8   :  { %v6257_v9 = vmax.f32 %v6253_v3, 0.0 }
0x25f9   :  { %v6256_v8 = vmax.f32 %v6248_v6, 0.0 }
0x25fb   :  { %7413 = vmatprep.mubr.msk.f32.mxu1 %vm1498_vm4, %v6256_v8 }
0x25fc   :  { %7414 = vmatmul.mubr.msk.f32.vlgmr.msra.gmra.mrb[46].mxu1 %vm1498_vm4, %v6257_v9 }
0x26cf   :  { %v7415_v18 = vpop.f32.mrb[46].mxu1 }
0x26d0   :  { %v6353_v20 = vadd.f32 %v7415_v18, %v6643_v16  ;;  %v6347_v23 = vpop.f32.mrb[47].mxu1 }
0x26d1   :  { %v6348_v54 = vadd.f32 %v6643_v16, %v6347_v23 }
0x26d2   :  { %v6357_v55 = vadd.f32 %v6353_v20, %v5925_v5 }
0x26d3   :  { %v6356_v38 = vadd.f32 %v6348_v54, %v5924_v48 }
0x26d4   :  { %v6365_v35 = vsel %vm2879_vm10, %v6357_v55, 0.0 }
0x26d5   :  { %6366 = vadd.xlane.f32.xlu1 %v6365_v35  ;;  %v6362_v36 = vsel %vm119_vm0, %v6356_v38, 0.0 }
0x26d6   :  { %6363 = vadd.xlane.f32.xlu0 %v6362_v36 }
0x26d9   :  { %6136 = vadd.xlane.f32.xlu1 %v6135_v47 }
0x26da   :  { %6133 = vadd.xlane.f32.xlu0 %v6132_v28 }
0x2762   :  { %v6367_v29 = vpop.xlane.xlu1 %6366 }
0x2763   :  { %v6369_v30 = vmul.f32 0.03125, %v6367_v29  ;;  %v6364_v25 = vpop.xlane.xlu0 %6363 }
0x2764   :  { %v6368_v53 = vmul.f32 0.03125, %v6364_v25 }
0x2765   :  { %v6371_v33 = vsub.f32 %v6357_v55, %v6369_v30 }
0x2766   :  { %v6370_v32 = vsub.f32 %v6356_v38, %v6368_v53  ;;  %v6137_v34 = vpop.xlane.xlu1 %6136 }
0x2767   :  { %v6139_v11 = vmul.f32 0.03125, %v6137_v34  ;;  %v6134_v27 = vpop.xlane.xlu0 %6133  ;;  %v6373_v26 = vmul.f32 %v6371_v33, %v6371_v33 }
0x2768   :  { %v6138_v39 = vmul.f32 0.03125, %v6134_v27  ;;  %v6372_v41 = vmul.f32 %v6370_v32, %v6370_v32 }
0x2769   :  { %v6141_v61 = vadd.f32 1e-05, %v6139_v11  ;;  %v6377_v60 = vsel %vm2879_vm10, %v6373_v26, 0.0 }
0x276a   :  { %v6140_v49 = vadd.f32 1e-05, %v6138_v39  ;;  %6378 = vadd.xlane.f32.xlu1 %v6377_v60  ;;  %v6374_v45 = vsel %vm119_vm0, %v6372_v41, 0.0 }
0x276b   :  { %8099 = vrsqrt.f32 %v6141_v61  ;;  %6375 = vadd.xlane.f32.xlu0 %v6374_v45 }
0x276c   :  { %8101 = vrsqrt.f32 %v6140_v49 }
0x2775   :  { %v8100_v44 = vpop.eup %8099 }
0x2776   :  { %v8102_v50 = vpop.eup %8101  ;;  %v6145_v19 = vmul.f32 %v8100_v44, %v6129_v59 }
0x2777   :  { %v6144_v63 = vmul.f32 %v8102_v50, %v6128_v22 }
0x2778   :  { %v6153_v62 = vmul.f32 %v6632_v10, %v6145_v19 }
0x2779   :  { %v6152_v17 = vmul.f32 %v6632_v10, %v6144_v63 }
0x277a   :  { %v6161_v24 = vadd.f32 %v6633_v51, %v6153_v62 }
0x277b   :  { %v6160_v43 = vadd.f32 %v6633_v51, %v6152_v17 }
0x277c   :  { %6405 = vst.msk [vmem:[%s9195_s18 + $0x8] sm:$0xff] %vm119_vm0, %v6161_v24 }
0x277d   :  { %6404 = vst.msk [vmem:[%s9195_s18] sm:$0xff] %vm119_vm0, %v6160_v43 }
0x27f7   :  { %v6379_v48 = vpop.xlane.xlu1 %6378 }
0x27f8   :  { %v6381_v42 = vmul.f32 0.03125, %v6379_v48  ;;  %v6376_v52 = vpop.xlane.xlu0 %6375 }
0x27f9   :  { %v6380_v7 = vmul.f32 0.03125, %v6376_v52 }
0x27fa   :  { %v6383_v5 = vadd.f32 1e-05, %v6381_v42 }
0x27fb   :  { %v6382_v57 = vadd.f32 1e-05, %v6380_v7 }
0x27fc   :  { %8103 = vrsqrt.f32 %v6383_v5 }
0x27fd   :  { %8105 = vrsqrt.f32 %v6382_v57 }
0x2806   :  { %v8104_v56 = vpop.eup %8103 }
0x2807   :  { %v8106_v0 = vpop.eup %8105  ;;  %v6387_v1 = vmul.f32 %v8104_v56, %v6371_v33 }
0x2808   :  { %v6386_v40 = vmul.f32 %v8106_v0, %v6370_v32 }
0x2809   :  { %v6395_v21 = vmul.f32 %v6648_v58, %v6387_v1 }
0x280a   :  { %v6394_v46 = vmul.f32 %v6648_v58, %v6386_v40 }
0x280b   :  { %v6403_v3 = vadd.f32 %v6649_v2, %v6395_v21 }
0x280c   :  { %v6402_v4 = vadd.f32 %v6649_v2, %v6394_v46 }
0x280d   :  { %6407 = vst.msk [vmem:[%s9196_s19 + $0x8] sm:$0xf] %vm2879_vm10, %v6403_v3 }
0x280e   :  { %6406 = vst.msk [vmem:[%s9196_s19] sm:$0xff] %vm119_vm0, %v6402_v4 }
0x280f   :  { %6416 = vsyncpa [#allocation3], 1 }
0x2810   :  { %6417 = vsyncpa [#allocation5], 1 }

</bundles_post_ra>
